<compile_context>
chip_gen: v7x
topology: tpu7x:2x2x1
jax: 0.10.0
libtpu: 0.0.40
codegen_flags: <defaults>
</compile_context>

<pallas_src>
import jax
import jax.numpy as jnp
from jax.experimental import pallas as pl
from jax.experimental.pallas import tpu as pltpu


# Geometry for the module's spec input (1, 3, 64, 64):
#   conv1 (k=1, s=2, p=2): v3 is 34x34; its 32x32 interior comes from x[:, :, ::2, ::2];
#     its border equals sigmoid(b1)+3 exactly (pure-padding taps).
#   conv2 (k=6, s=1, p=1): consumes v3 zero-padded to 36x36, produces 31x31.
_CIN1, _COUT1 = 3, 4          # conv1 in/out channels
_COUT2, _K2 = 8, 6            # conv2 out channels / kernel size
_INT = 32                     # interior rows/cols of v3 actually computed from x
_VP = 36                      # rows/cols of conv2's zero-padded input
_XROWS = 40                   # rows of the zero-embedded input plane (covers strip 3)
_LANES = 128                  # lane width
_HOUT = 31                    # conv2 output rows/cols
_NSTRIP = 4                   # output-row strips packed along lanes
_STRIPW = 32                  # lanes per strip (31 valid output cols + 1 pad)
_OROWS = 8                    # output rows per strip (strip 3 has only 7 valid)
_PROWS = 16                   # rows per packed v3 plane (needs 8 + 5 = 13, pad to 16)
_NPLANES = _COUT1 * _K2       # 24 packed (channel, column-tap) planes


def _fused_conv_kernel(xe_ref, w1_ref, b1_ref, w2_ref, b2_ref, o_ref, v3ps_ref):
    """Whole forward pass in one invocation.

    xe_ref : (3, 40, 128) f32 VMEM
        x[:, ::2, ::2] zero-embedded at row/col offset 2 of conv2's padded 36x36
        coordinate frame, padded to 40 rows / 128 lanes.
    w1_ref : (4, 3)   f32 SMEM   conv1 weight (1x1 kernel)
    b1_ref : (4,)     f32 SMEM   conv1 bias
    w2_ref : (8, 144) f32 SMEM   conv2 weight, flat index = (ic*6 + j)*6 + i
    b2_ref : (8,)     f32 SMEM   conv2 bias
    o_ref  : (8, 8, 128) f32 VMEM  packed output: o[oc, r, 32*s + c] = v5[oc, 8*s + r, c]
    v3ps_ref: (24, 16, 128) f32 VMEM scratch — packed, column-shifted, zero-padded v3:
        v3ps[ic*6 + j, rr, 32*s + c] = v3_padded[ic, 8*s + rr, c + j]
    """
    rr = jax.lax.broadcasted_iota(jnp.int32, (_PROWS, _LANES), 0)
    ll = jax.lax.broadcasted_iota(jnp.int32, (_PROWS, _LANES), 1)
    strip = jnp.right_shift(ll, 5)                 # lane // 32
    cloc = jnp.bitwise_and(ll, 31)                 # lane %  32
    pr = strip * _OROWS + rr                       # row index in the padded 36x36 frame
    row_ring = (pr == 0) | (pr >= _VP - 1)
    strip_masks = [strip == s for s in range(_NSTRIP)]

    # ---- Phase 1: conv1 (1x1, VPU) + sigmoid + 3.0, fused with conv2's zero-padding,
    # written straight into the packed per-column-tap layout that conv2 consumes.
    # Wherever the embedded input is zero the value is sigmoid(b1)+3, which is exactly
    # conv1's own padding value, so v3's constant border falls out for free.
    for j in range(_K2):
        xcols = []
        for ch in range(_CIN1):
            col = None
            for s in range(_NSTRIP):
                sh = (s * _STRIPW - j) % _LANES
                win = xe_ref[ch, pl.ds(8 * s, _PROWS), :]          # (16, 128)
                shifted = pltpu.roll(win, shift=sh, axis=1) if sh else win
                col = shifted if col is None else jnp.where(strip_masks[s], shifted, col)
            xcols.append(col)
        ring = row_ring | (cloc >= _VP - 1 - j)                    # conv2 zero-pad cols
        if j == 0:
            ring = ring | (cloc == 0)
        for oc in range(_COUT1):
            pre = (w1_ref[oc, 0] * xcols[0] + w1_ref[oc, 1] * xcols[1]
                   + w1_ref[oc, 2] * xcols[2] + b1_ref[oc])
            v3 = jax.nn.sigmoid(pre) + 3.0
            v3ps_ref[oc * _K2 + j] = jnp.where(ring, 0.0, v3)

    # ---- Phase 2: conv2 as a direct tap loop of scalar-broadcast mul-adds (VPU).
    # All 8 output-channel accumulators are 1 vreg each and live in registers.
    def conv2_step(t, accs):
        accs = list(accs)
        for u in range(2):                                         # manual 2x unroll
            plane = t * 2 + u                                      # = ic*6 + j
            for i in range(_K2):
                win = v3ps_ref[plane, pl.ds(i, _OROWS), :]         # (8, 128)
                base = plane * _K2 + i
                for oc in range(_COUT2):
                    accs[oc] = accs[oc] + w2_ref[oc, base] * win
        return tuple(accs)

    accs0 = tuple(jnp.zeros((_OROWS, _LANES), jnp.float32) for _ in range(_COUT2))
    accs = jax.lax.fori_loop(0, _NPLANES // 2, conv2_step, accs0)

    for oc in range(_COUT2):
        o_ref[oc] = accs[oc] + (b2_ref[oc] + 7.0)                  # bias + 7.0 fused


@jax.jit
def model_forward(x, w1, b1, w2, b2):
    N, C, H, W = x.shape
    # Kernel is specialized to the module's spec input shape.
    assert (N, C, H, W) == (1, 3, 64, 64), (N, C, H, W)

    # conv1 (k=1, s=2, p=2) only ever reads x[:, ::2, ::2]; embed that 32x32 grid at
    # offset (2, 2) of conv2's padded 36x36 frame, padded to 40 rows x 128 lanes.
    xs = x[0].astype(jnp.float32)[:, ::2, ::2]                     # (3, 32, 32)
    xe = jnp.zeros((_CIN1, _XROWS, _LANES), jnp.float32)
    xe = xe.at[:, 2:2 + _INT, 2:2 + _INT].set(xs)

    w1f = w1.reshape(_COUT1, _CIN1).astype(jnp.float32)
    # Reorder conv2 weights so the in-kernel flat index is (ic*6 + j)*6 + i.
    w2f = (w2.astype(jnp.float32).transpose(0, 1, 3, 2)
           .reshape(_COUT2, _COUT1 * _K2 * _K2))

    out = pl.pallas_call(
        _fused_conv_kernel,
        out_shape=jax.ShapeDtypeStruct((_COUT2, _OROWS, _LANES), jnp.float32),
        in_specs=[
            pl.BlockSpec(memory_space=pltpu.MemorySpace.VMEM),     # xe
            pl.BlockSpec(memory_space=pltpu.MemorySpace.SMEM),     # w1
            pl.BlockSpec(memory_space=pltpu.MemorySpace.SMEM),     # b1
            pl.BlockSpec(memory_space=pltpu.MemorySpace.SMEM),     # w2
            pl.BlockSpec(memory_space=pltpu.MemorySpace.SMEM),     # b2
        ],
        out_specs=pl.BlockSpec(memory_space=pltpu.MemorySpace.VMEM),
        scratch_shapes=[pltpu.VMEM((_NPLANES, _PROWS, _LANES), jnp.float32)],
    )(xe, w1f, b1.astype(jnp.float32), w2f, b2.astype(jnp.float32))

    # Unpack the 4 lane-packed row strips -> NCHW result (1, 8, 31, 31).
    out = out.reshape(_COUT2, _OROWS, _NSTRIP, _STRIPW).transpose(0, 2, 1, 3)
    out = out.reshape(_COUT2, _OROWS * _NSTRIP, _STRIPW)[:, :_HOUT, :_HOUT]
    return out[None]


@jax.jit
def reference_forward(x, w1, b1, w2, b2):
    dn = ("NCHW", "OIHW", "NCHW")
    v1 = jax.lax.conv_general_dilated(
        x, w1, window_strides=(2, 2), padding=[(2, 2), (2, 2)],
        dimension_numbers=dn) + b1.reshape(1, -1, 1, 1)
    v3 = jax.nn.sigmoid(v1) + 3.0
    v4 = jax.lax.conv_general_dilated(
        v3, w2, window_strides=(1, 1), padding=[(1, 1), (1, 1)],
        dimension_numbers=dn) + b2.reshape(1, -1, 1, 1)
    return v4 + 7.0


if __name__ == "__main__":
    key = jax.random.PRNGKey(0)
    kx, k1, k2, k3, k4 = jax.random.split(key, 5)

    # Spec input shape: (1, 3, 64, 64)
    x = jax.random.normal(kx, (1, 3, 64, 64), dtype=jnp.float32)

    w1 = jax.random.normal(k1, (4, 3, 1, 1), dtype=jnp.float32) * 0.5
    b1 = jax.random.normal(k2, (4,), dtype=jnp.float32) * 0.1
    # TODO(synk): conv2 declared with in_channels=8 in the original module, but conv1
    # only yields 4 channels (the PyTorch forward raises); implemented with in_channels=4.
    w2 = jax.random.normal(k3, (8, 4, 6, 6), dtype=jnp.float32) * 0.1
    b2 = jax.random.normal(k4, (8,), dtype=jnp.float32) * 0.1

    out = jax.block_until_ready(model_forward(x, w1, b1, w2, b2))
    ref = jax.block_until_ready(reference_forward(x, w1, b1, w2, b2))

    assert out.shape == ref.shape == (1, 8, 31, 31), (out.shape, ref.shape)
    err = float(jnp.max(jnp.abs(out - ref)))
    assert err < 2e-4, err
    print("KERNEL_OK")
</pallas_src>

<mosaic_0001>
module attributes {stable_mosaic.version = 11 : i64} {
  func.func @_fused_conv_kernel(%arg0: memref<3x40x128xf32, #tpu.memory_space<vmem>>, %arg1: memref<4x3xf32, #tpu.memory_space<smem>>, %arg2: memref<4xf32, #tpu.memory_space<smem>>, %arg3: memref<8x144xf32, #tpu.memory_space<smem>>, %arg4: memref<8xf32, #tpu.memory_space<smem>>, %arg5: memref<8x8x128xf32, #tpu.memory_space<vmem>>, %arg6: memref<24x16x128xf32, #tpu.memory_space<vmem>>) attributes {dimension_semantics = [], scalar_prefetch = 0 : i64, scratch_operands = 1 : i64, tpu.core_type = #tpu.core_type<tc>} {
    %0 = tpu.iota {dimensions = array<i32: 0>} : vector<16x128xi32>
    %1 = tpu.iota {dimensions = array<i32: 1>} : vector<16x128xi32>
    %c5_i32 = arith.constant 5 : i32
    %2 = vector.broadcast %c5_i32 : i32 to vector<16x128xi32>
    %3 = arith.shrsi %1, %2 : vector<16x128xi32>
    %c31_i32 = arith.constant 31 : i32
    %4 = vector.broadcast %c31_i32 : i32 to vector<16x128xi32>
    %5 = arith.andi %1, %4 : vector<16x128xi32>
    %c8_i32 = arith.constant 8 : i32
    %6 = vector.broadcast %c8_i32 : i32 to vector<16x128xi32>
    %7 = arith.muli %3, %6 : vector<16x128xi32>
    %8 = arith.addi %7, %0 : vector<16x128xi32>
    %c0_i32 = arith.constant 0 : i32
    %9 = vector.broadcast %c0_i32 : i32 to vector<16x128xi32>
    %10 = arith.cmpi eq, %8, %9 : vector<16x128xi32>
    %c35_i32 = arith.constant 35 : i32
    %11 = vector.broadcast %c35_i32 : i32 to vector<16x128xi32>
    %12 = arith.cmpi sge, %8, %11 : vector<16x128xi32>
    %13 = arith.ori %10, %12 : vector<16x128xi1>
    %c1_i32 = arith.constant 1 : i32
    %14 = vector.broadcast %c1_i32 : i32 to vector<16x128xi32>
    %15 = arith.cmpi eq, %3, %14 : vector<16x128xi32>
    %c2_i32 = arith.constant 2 : i32
    %16 = vector.broadcast %c2_i32 : i32 to vector<16x128xi32>
    %17 = arith.cmpi eq, %3, %16 : vector<16x128xi32>
    %c3_i32 = arith.constant 3 : i32
    %18 = vector.broadcast %c3_i32 : i32 to vector<16x128xi32>
    %19 = arith.cmpi eq, %3, %18 : vector<16x128xi32>
    %c0 = arith.constant 0 : index
    %c0_0 = arith.constant 0 : index
    %c0_1 = arith.constant 0 : index
    %20 = vector.load %arg0[%c0, %c0_0, %c0_1] : memref<3x40x128xf32, #tpu.memory_space<vmem>>, vector<1x16x128xf32>
    %21 = vector.shape_cast %20 : vector<1x16x128xf32> to vector<16x128xf32>
    %c0_2 = arith.constant 0 : index
    %c8 = arith.constant 8 : index
    %c0_3 = arith.constant 0 : index
    %22 = vector.load %arg0[%c0_2, %c8, %c0_3] : memref<3x40x128xf32, #tpu.memory_space<vmem>>, vector<1x16x128xf32>
    %23 = vector.shape_cast %22 : vector<1x16x128xf32> to vector<16x128xf32>
    %c32_i32 = arith.constant 32 : i32
    %24 = tpu.dynamic_rotate %23 by %c32_i32 dim 1 : vector<16x128xf32>, i32 -> vector<16x128xf32>
    %25 = arith.select %15, %24, %21 : vector<16x128xi1>, vector<16x128xf32>
    %c0_4 = arith.constant 0 : index
    %c16 = arith.constant 16 : index
    %c0_5 = arith.constant 0 : index
    %26 = vector.load %arg0[%c0_4, %c16, %c0_5] : memref<3x40x128xf32, #tpu.memory_space<vmem>>, vector<1x16x128xf32>
    %27 = vector.shape_cast %26 : vector<1x16x128xf32> to vector<16x128xf32>
    %c64_i32 = arith.constant 64 : i32
    %28 = tpu.dynamic_rotate %27 by %c64_i32 dim 1 : vector<16x128xf32>, i32 -> vector<16x128xf32>
    %29 = arith.select %17, %28, %25 : vector<16x128xi1>, vector<16x128xf32>
    %c0_6 = arith.constant 0 : index
    %c24 = arith.constant 24 : index
    %c0_7 = arith.constant 0 : index
    %30 = vector.load %arg0[%c0_6, %c24, %c0_7] : memref<3x40x128xf32, #tpu.memory_space<vmem>>, vector<1x16x128xf32>
    %31 = vector.shape_cast %30 : vector<1x16x128xf32> to vector<16x128xf32>
    %c96_i32 = arith.constant 96 : i32
    %32 = tpu.dynamic_rotate %31 by %c96_i32 dim 1 : vector<16x128xf32>, i32 -> vector<16x128xf32>
    %33 = arith.select %19, %32, %29 : vector<16x128xi1>, vector<16x128xf32>
    %c1 = arith.constant 1 : index
    %c0_8 = arith.constant 0 : index
    %c0_9 = arith.constant 0 : index
    %34 = vector.load %arg0[%c1, %c0_8, %c0_9] : memref<3x40x128xf32, #tpu.memory_space<vmem>>, vector<1x16x128xf32>
    %35 = vector.shape_cast %34 : vector<1x16x128xf32> to vector<16x128xf32>
    %c1_10 = arith.constant 1 : index
    %c8_11 = arith.constant 8 : index
    %c0_12 = arith.constant 0 : index
    %36 = vector.load %arg0[%c1_10, %c8_11, %c0_12] : memref<3x40x128xf32, #tpu.memory_space<vmem>>, vector<1x16x128xf32>
    %37 = vector.shape_cast %36 : vector<1x16x128xf32> to vector<16x128xf32>
    %c32_i32_13 = arith.constant 32 : i32
    %38 = tpu.dynamic_rotate %37 by %c32_i32_13 dim 1 : vector<16x128xf32>, i32 -> vector<16x128xf32>
    %39 = arith.select %15, %38, %35 : vector<16x128xi1>, vector<16x128xf32>
    %c1_14 = arith.constant 1 : index
    %c16_15 = arith.constant 16 : index
    %c0_16 = arith.constant 0 : index
    %40 = vector.load %arg0[%c1_14, %c16_15, %c0_16] : memref<3x40x128xf32, #tpu.memory_space<vmem>>, vector<1x16x128xf32>
    %41 = vector.shape_cast %40 : vector<1x16x128xf32> to vector<16x128xf32>
    %c64_i32_17 = arith.constant 64 : i32
    %42 = tpu.dynamic_rotate %41 by %c64_i32_17 dim 1 : vector<16x128xf32>, i32 -> vector<16x128xf32>
    %43 = arith.select %17, %42, %39 : vector<16x128xi1>, vector<16x128xf32>
    %c1_18 = arith.constant 1 : index
    %c24_19 = arith.constant 24 : index
    %c0_20 = arith.constant 0 : index
    %44 = vector.load %arg0[%c1_18, %c24_19, %c0_20] : memref<3x40x128xf32, #tpu.memory_space<vmem>>, vector<1x16x128xf32>
    %45 = vector.shape_cast %44 : vector<1x16x128xf32> to vector<16x128xf32>
    %c96_i32_21 = arith.constant 96 : i32
    %46 = tpu.dynamic_rotate %45 by %c96_i32_21 dim 1 : vector<16x128xf32>, i32 -> vector<16x128xf32>
    %47 = arith.select %19, %46, %43 : vector<16x128xi1>, vector<16x128xf32>
    %c2 = arith.constant 2 : index
    %c0_22 = arith.constant 0 : index
    %c0_23 = arith.constant 0 : index
    %48 = vector.load %arg0[%c2, %c0_22, %c0_23] : memref<3x40x128xf32, #tpu.memory_space<vmem>>, vector<1x16x128xf32>
    %49 = vector.shape_cast %48 : vector<1x16x128xf32> to vector<16x128xf32>
    %c2_24 = arith.constant 2 : index
    %c8_25 = arith.constant 8 : index
    %c0_26 = arith.constant 0 : index
    %50 = vector.load %arg0[%c2_24, %c8_25, %c0_26] : memref<3x40x128xf32, #tpu.memory_space<vmem>>, vector<1x16x128xf32>
    %51 = vector.shape_cast %50 : vector<1x16x128xf32> to vector<16x128xf32>
    %c32_i32_27 = arith.constant 32 : i32
    %52 = tpu.dynamic_rotate %51 by %c32_i32_27 dim 1 : vector<16x128xf32>, i32 -> vector<16x128xf32>
    %53 = arith.select %15, %52, %49 : vector<16x128xi1>, vector<16x128xf32>
    %c2_28 = arith.constant 2 : index
    %c16_29 = arith.constant 16 : index
    %c0_30 = arith.constant 0 : index
    %54 = vector.load %arg0[%c2_28, %c16_29, %c0_30] : memref<3x40x128xf32, #tpu.memory_space<vmem>>, vector<1x16x128xf32>
    %55 = vector.shape_cast %54 : vector<1x16x128xf32> to vector<16x128xf32>
    %c64_i32_31 = arith.constant 64 : i32
    %56 = tpu.dynamic_rotate %55 by %c64_i32_31 dim 1 : vector<16x128xf32>, i32 -> vector<16x128xf32>
    %57 = arith.select %17, %56, %53 : vector<16x128xi1>, vector<16x128xf32>
    %c2_32 = arith.constant 2 : index
    %c24_33 = arith.constant 24 : index
    %c0_34 = arith.constant 0 : index
    %58 = vector.load %arg0[%c2_32, %c24_33, %c0_34] : memref<3x40x128xf32, #tpu.memory_space<vmem>>, vector<1x16x128xf32>
    %59 = vector.shape_cast %58 : vector<1x16x128xf32> to vector<16x128xf32>
    %c96_i32_35 = arith.constant 96 : i32
    %60 = tpu.dynamic_rotate %59 by %c96_i32_35 dim 1 : vector<16x128xf32>, i32 -> vector<16x128xf32>
    %61 = arith.select %19, %60, %57 : vector<16x128xi1>, vector<16x128xf32>
    %c35_i32_36 = arith.constant 35 : i32
    %62 = vector.broadcast %c35_i32_36 : i32 to vector<16x128xi32>
    %63 = arith.cmpi sge, %5, %62 : vector<16x128xi32>
    %64 = arith.ori %13, %63 : vector<16x128xi1>
    %c0_i32_37 = arith.constant 0 : i32
    %65 = vector.broadcast %c0_i32_37 : i32 to vector<16x128xi32>
    %66 = arith.cmpi eq, %5, %65 : vector<16x128xi32>
    %67 = arith.ori %64, %66 : vector<16x128xi1>
    %c0_38 = arith.constant 0 : index
    %c0_39 = arith.constant 0 : index
    %68 = memref.load %arg1[%c0_38, %c0_39] : memref<4x3xf32, #tpu.memory_space<smem>>
    %69 = vector.broadcast %68 : f32 to vector<16x128xf32>
    %70 = arith.mulf %69, %33 : vector<16x128xf32>
    %c0_40 = arith.constant 0 : index
    %c1_41 = arith.constant 1 : index
    %71 = memref.load %arg1[%c0_40, %c1_41] : memref<4x3xf32, #tpu.memory_space<smem>>
    %72 = vector.broadcast %71 : f32 to vector<16x128xf32>
    %73 = arith.mulf %72, %47 : vector<16x128xf32>
    %74 = arith.addf %70, %73 : vector<16x128xf32>
    %c0_42 = arith.constant 0 : index
    %c2_43 = arith.constant 2 : index
    %75 = memref.load %arg1[%c0_42, %c2_43] : memref<4x3xf32, #tpu.memory_space<smem>>
    %76 = vector.broadcast %75 : f32 to vector<16x128xf32>
    %77 = arith.mulf %76, %61 : vector<16x128xf32>
    %78 = arith.addf %74, %77 : vector<16x128xf32>
    %c0_44 = arith.constant 0 : index
    %79 = memref.load %arg2[%c0_44] : memref<4xf32, #tpu.memory_space<smem>>
    %80 = vector.broadcast %79 : f32 to vector<16x128xf32>
    %81 = arith.addf %78, %80 : vector<16x128xf32>
    %82 = arith.negf %81 : vector<16x128xf32>
    %83 = math.exp %82 : vector<16x128xf32>
    %cst = arith.constant 1.000000e+00 : f32
    %84 = vector.broadcast %cst : f32 to vector<16x128xf32>
    %85 = arith.addf %84, %83 : vector<16x128xf32>
    %86 = arith.divf %84, %85 : vector<16x128xf32>
    %cst_45 = arith.constant 3.000000e+00 : f32
    %87 = vector.broadcast %cst_45 : f32 to vector<16x128xf32>
    %88 = arith.addf %86, %87 : vector<16x128xf32>
    %cst_46 = arith.constant 0.000000e+00 : f32
    %89 = vector.broadcast %cst_46 : f32 to vector<16x128xf32>
    %90 = arith.select %67, %89, %88 : vector<16x128xi1>, vector<16x128xf32>
    %c0_47 = arith.constant 0 : index
    %c0_48 = arith.constant 0 : index
    %c0_49 = arith.constant 0 : index
    %91 = vector.load %arg6[%c0_47, %c0_48, %c0_49] : memref<24x16x128xf32, #tpu.memory_space<vmem>>, vector<1x16x128xf32>
    %92 = vector.shape_cast %91 : vector<1x16x128xf32> to vector<16x128xf32>
    %93 = vector.shape_cast %90 : vector<16x128xf32> to vector<1x16x128xf32>
    tpu.vector_store %arg6[%c0_47, %c0_48, %c0_49], %93 {strides = array<i32>} : memref<24x16x128xf32, #tpu.memory_space<vmem>>, vector<1x16x128xf32>,
    %c1_50 = arith.constant 1 : index
    %c0_51 = arith.constant 0 : index
    %94 = memref.load %arg1[%c1_50, %c0_51] : memref<4x3xf32, #tpu.memory_space<smem>>
    %95 = vector.broadcast %94 : f32 to vector<16x128xf32>
    %96 = arith.mulf %95, %33 : vector<16x128xf32>
    %c1_52 = arith.constant 1 : index
    %c1_53 = arith.constant 1 : index
    %97 = memref.load %arg1[%c1_52, %c1_53] : memref<4x3xf32, #tpu.memory_space<smem>>
    %98 = vector.broadcast %97 : f32 to vector<16x128xf32>
    %99 = arith.mulf %98, %47 : vector<16x128xf32>
    %100 = arith.addf %96, %99 : vector<16x128xf32>
    %c1_54 = arith.constant 1 : index
    %c2_55 = arith.constant 2 : index
    %101 = memref.load %arg1[%c1_54, %c2_55] : memref<4x3xf32, #tpu.memory_space<smem>>
    %102 = vector.broadcast %101 : f32 to vector<16x128xf32>
    %103 = arith.mulf %102, %61 : vector<16x128xf32>
    %104 = arith.addf %100, %103 : vector<16x128xf32>
    %c1_56 = arith.constant 1 : index
    %105 = memref.load %arg2[%c1_56] : memref<4xf32, #tpu.memory_space<smem>>
    %106 = vector.broadcast %105 : f32 to vector<16x128xf32>
    %107 = arith.addf %104, %106 : vector<16x128xf32>
    %108 = arith.negf %107 : vector<16x128xf32>
    %109 = math.exp %108 : vector<16x128xf32>
    %cst_57 = arith.constant 1.000000e+00 : f32
    %110 = vector.broadcast %cst_57 : f32 to vector<16x128xf32>
    %111 = arith.addf %110, %109 : vector<16x128xf32>
    %112 = arith.divf %110, %111 : vector<16x128xf32>
    %cst_58 = arith.constant 3.000000e+00 : f32
    %113 = vector.broadcast %cst_58 : f32 to vector<16x128xf32>
    %114 = arith.addf %112, %113 : vector<16x128xf32>
    %cst_59 = arith.constant 0.000000e+00 : f32
    %115 = vector.broadcast %cst_59 : f32 to vector<16x128xf32>
    %116 = arith.select %67, %115, %114 : vector<16x128xi1>, vector<16x128xf32>
    %c6 = arith.constant 6 : index
    %c0_60 = arith.constant 0 : index
    %c0_61 = arith.constant 0 : index
    %117 = vector.load %arg6[%c6, %c0_60, %c0_61] : memref<24x16x128xf32, #tpu.memory_space<vmem>>, vector<1x16x128xf32>
    %118 = vector.shape_cast %117 : vector<1x16x128xf32> to vector<16x128xf32>
    %119 = vector.shape_cast %116 : vector<16x128xf32> to vector<1x16x128xf32>
    tpu.vector_store %arg6[%c6, %c0_60, %c0_61], %119 {strides = array<i32>} : memref<24x16x128xf32, #tpu.memory_space<vmem>>, vector<1x16x128xf32>,
    %c2_62 = arith.constant 2 : index
    %c0_63 = arith.constant 0 : index
    %120 = memref.load %arg1[%c2_62, %c0_63] : memref<4x3xf32, #tpu.memory_space<smem>>
    %121 = vector.broadcast %120 : f32 to vector<16x128xf32>
    %122 = arith.mulf %121, %33 : vector<16x128xf32>
    %c2_64 = arith.constant 2 : index
    %c1_65 = arith.constant 1 : index
    %123 = memref.load %arg1[%c2_64, %c1_65] : memref<4x3xf32, #tpu.memory_space<smem>>
    %124 = vector.broadcast %123 : f32 to vector<16x128xf32>
    %125 = arith.mulf %124, %47 : vector<16x128xf32>
    %126 = arith.addf %122, %125 : vector<16x128xf32>
    %c2_66 = arith.constant 2 : index
    %c2_67 = arith.constant 2 : index
    %127 = memref.load %arg1[%c2_66, %c2_67] : memref<4x3xf32, #tpu.memory_space<smem>>
    %128 = vector.broadcast %127 : f32 to vector<16x128xf32>
    %129 = arith.mulf %128, %61 : vector<16x128xf32>
    %130 = arith.addf %126, %129 : vector<16x128xf32>
    %c2_68 = arith.constant 2 : index
    %131 = memref.load %arg2[%c2_68] : memref<4xf32, #tpu.memory_space<smem>>
    %132 = vector.broadcast %131 : f32 to vector<16x128xf32>
    %133 = arith.addf %130, %132 : vector<16x128xf32>
    %134 = arith.negf %133 : vector<16x128xf32>
    %135 = math.exp %134 : vector<16x128xf32>
    %cst_69 = arith.constant 1.000000e+00 : f32
    %136 = vector.broadcast %cst_69 : f32 to vector<16x128xf32>
    %137 = arith.addf %136, %135 : vector<16x128xf32>
    %138 = arith.divf %136, %137 : vector<16x128xf32>
    %cst_70 = arith.constant 3.000000e+00 : f32
    %139 = vector.broadcast %cst_70 : f32 to vector<16x128xf32>
    %140 = arith.addf %138, %139 : vector<16x128xf32>
    %cst_71 = arith.constant 0.000000e+00 : f32
    %141 = vector.broadcast %cst_71 : f32 to vector<16x128xf32>
    %142 = arith.select %67, %141, %140 : vector<16x128xi1>, vector<16x128xf32>
    %c12 = arith.constant 12 : index
    %c0_72 = arith.constant 0 : index
    %c0_73 = arith.constant 0 : index
    %143 = vector.load %arg6[%c12, %c0_72, %c0_73] : memref<24x16x128xf32, #tpu.memory_space<vmem>>, vector<1x16x128xf32>
    %144 = vector.shape_cast %143 : vector<1x16x128xf32> to vector<16x128xf32>
    %145 = vector.shape_cast %142 : vector<16x128xf32> to vector<1x16x128xf32>
    tpu.vector_store %arg6[%c12, %c0_72, %c0_73], %145 {strides = array<i32>} : memref<24x16x128xf32, #tpu.memory_space<vmem>>, vector<1x16x128xf32>,
    %c3 = arith.constant 3 : index
    %c0_74 = arith.constant 0 : index
    %146 = memref.load %arg1[%c3, %c0_74] : memref<4x3xf32, #tpu.memory_space<smem>>
    %147 = vector.broadcast %146 : f32 to vector<16x128xf32>
    %148 = arith.mulf %147, %33 : vector<16x128xf32>
    %c3_75 = arith.constant 3 : index
    %c1_76 = arith.constant 1 : index
    %149 = memref.load %arg1[%c3_75, %c1_76] : memref<4x3xf32, #tpu.memory_space<smem>>
    %150 = vector.broadcast %149 : f32 to vector<16x128xf32>
    %151 = arith.mulf %150, %47 : vector<16x128xf32>
    %152 = arith.addf %148, %151 : vector<16x128xf32>
    %c3_77 = arith.constant 3 : index
    %c2_78 = arith.constant 2 : index
    %153 = memref.load %arg1[%c3_77, %c2_78] : memref<4x3xf32, #tpu.memory_space<smem>>
    %154 = vector.broadcast %153 : f32 to vector<16x128xf32>
    %155 = arith.mulf %154, %61 : vector<16x128xf32>
    %156 = arith.addf %152, %155 : vector<16x128xf32>
    %c3_79 = arith.constant 3 : index
    %157 = memref.load %arg2[%c3_79] : memref<4xf32, #tpu.memory_space<smem>>
    %158 = vector.broadcast %157 : f32 to vector<16x128xf32>
    %159 = arith.addf %156, %158 : vector<16x128xf32>
    %160 = arith.negf %159 : vector<16x128xf32>
    %161 = math.exp %160 : vector<16x128xf32>
    %cst_80 = arith.constant 1.000000e+00 : f32
    %162 = vector.broadcast %cst_80 : f32 to vector<16x128xf32>
    %163 = arith.addf %162, %161 : vector<16x128xf32>
    %164 = arith.divf %162, %163 : vector<16x128xf32>
    %cst_81 = arith.constant 3.000000e+00 : f32
    %165 = vector.broadcast %cst_81 : f32 to vector<16x128xf32>
    %166 = arith.addf %164, %165 : vector<16x128xf32>
    %cst_82 = arith.constant 0.000000e+00 : f32
    %167 = vector.broadcast %cst_82 : f32 to vector<16x128xf32>
    %168 = arith.select %67, %167, %166 : vector<16x128xi1>, vector<16x128xf32>
    %c18 = arith.constant 18 : index
    %c0_83 = arith.constant 0 : index
    %c0_84 = arith.constant 0 : index
    %169 = vector.load %arg6[%c18, %c0_83, %c0_84] : memref<24x16x128xf32, #tpu.memory_space<vmem>>, vector<1x16x128xf32>
    %170 = vector.shape_cast %169 : vector<1x16x128xf32> to vector<16x128xf32>
    %171 = vector.shape_cast %168 : vector<16x128xf32> to vector<1x16x128xf32>
    tpu.vector_store %arg6[%c18, %c0_83, %c0_84], %171 {strides = array<i32>} : memref<24x16x128xf32, #tpu.memory_space<vmem>>, vector<1x16x128xf32>,
    %c0_85 = arith.constant 0 : index
    %c0_86 = arith.constant 0 : index
    %c0_87 = arith.constant 0 : index
    %172 = vector.load %arg0[%c0_85, %c0_86, %c0_87] : memref<3x40x128xf32, #tpu.memory_space<vmem>>, vector<1x16x128xf32>
    %173 = vector.shape_cast %172 : vector<1x16x128xf32> to vector<16x128xf32>
    %c127_i32 = arith.constant 127 : i32
    %174 = tpu.dynamic_rotate %173 by %c127_i32 dim 1 : vector<16x128xf32>, i32 -> vector<16x128xf32>
    %c0_88 = arith.constant 0 : index
    %c8_89 = arith.constant 8 : index
    %c0_90 = arith.constant 0 : index
    %175 = vector.load %arg0[%c0_88, %c8_89, %c0_90] : memref<3x40x128xf32, #tpu.memory_space<vmem>>, vector<1x16x128xf32>
    %176 = vector.shape_cast %175 : vector<1x16x128xf32> to vector<16x128xf32>
    %c31_i32_91 = arith.constant 31 : i32
    %177 = tpu.dynamic_rotate %176 by %c31_i32_91 dim 1 : vector<16x128xf32>, i32 -> vector<16x128xf32>
    %178 = arith.select %15, %177, %174 : vector<16x128xi1>, vector<16x128xf32>
    %c0_92 = arith.constant 0 : index
    %c16_93 = arith.constant 16 : index
    %c0_94 = arith.constant 0 : index
    %179 = vector.load %arg0[%c0_92, %c16_93, %c0_94] : memref<3x40x128xf32, #tpu.memory_space<vmem>>, vector<1x16x128xf32>
    %180 = vector.shape_cast %179 : vector<1x16x128xf32> to vector<16x128xf32>
    %c63_i32 = arith.constant 63 : i32
    %181 = tpu.dynamic_rotate %180 by %c63_i32 dim 1 : vector<16x128xf32>, i32 -> vector<16x128xf32>
    %182 = arith.select %17, %181, %178 : vector<16x128xi1>, vector<16x128xf32>
    %c0_95 = arith.constant 0 : index
    %c24_96 = arith.constant 24 : index
    %c0_97 = arith.constant 0 : index
    %183 = vector.load %arg0[%c0_95, %c24_96, %c0_97] : memref<3x40x128xf32, #tpu.memory_space<vmem>>, vector<1x16x128xf32>
    %184 = vector.shape_cast %183 : vector<1x16x128xf32> to vector<16x128xf32>
    %c95_i32 = arith.constant 95 : i32
    %185 = tpu.dynamic_rotate %184 by %c95_i32 dim 1 : vector<16x128xf32>, i32 -> vector<16x128xf32>
    %186 = arith.select %19, %185, %182 : vector<16x128xi1>, vector<16x128xf32>
    %c1_98 = arith.constant 1 : index
    %c0_99 = arith.constant 0 : index
    %c0_100 = arith.constant 0 : index
    %187 = vector.load %arg0[%c1_98, %c0_99, %c0_100] : memref<3x40x128xf32, #tpu.memory_space<vmem>>, vector<1x16x128xf32>
    %188 = vector.shape_cast %187 : vector<1x16x128xf32> to vector<16x128xf32>
    %c127_i32_101 = arith.constant 127 : i32
    %189 = tpu.dynamic_rotate %188 by %c127_i32_101 dim 1 : vector<16x128xf32>, i32 -> vector<16x128xf32>
    %c1_102 = arith.constant 1 : index
    %c8_103 = arith.constant 8 : index
    %c0_104 = arith.constant 0 : index
    %190 = vector.load %arg0[%c1_102, %c8_103, %c0_104] : memref<3x40x128xf32, #tpu.memory_space<vmem>>, vector<1x16x128xf32>
    %191 = vector.shape_cast %190 : vector<1x16x128xf32> to vector<16x128xf32>
    %c31_i32_105 = arith.constant 31 : i32
    %192 = tpu.dynamic_rotate %191 by %c31_i32_105 dim 1 : vector<16x128xf32>, i32 -> vector<16x128xf32>
    %193 = arith.select %15, %192, %189 : vector<16x128xi1>, vector<16x128xf32>
    %c1_106 = arith.constant 1 : index
    %c16_107 = arith.constant 16 : index
    %c0_108 = arith.constant 0 : index
    %194 = vector.load %arg0[%c1_106, %c16_107, %c0_108] : memref<3x40x128xf32, #tpu.memory_space<vmem>>, vector<1x16x128xf32>
    %195 = vector.shape_cast %194 : vector<1x16x128xf32> to vector<16x128xf32>
    %c63_i32_109 = arith.constant 63 : i32
    %196 = tpu.dynamic_rotate %195 by %c63_i32_109 dim 1 : vector<16x128xf32>, i32 -> vector<16x128xf32>
    %197 = arith.select %17, %196, %193 : vector<16x128xi1>, vector<16x128xf32>
    %c1_110 = arith.constant 1 : index
    %c24_111 = arith.constant 24 : index
    %c0_112 = arith.constant 0 : index
    %198 = vector.load %arg0[%c1_110, %c24_111, %c0_112] : memref<3x40x128xf32, #tpu.memory_space<vmem>>, vector<1x16x128xf32>
    %199 = vector.shape_cast %198 : vector<1x16x128xf32> to vector<16x128xf32>
    %c95_i32_113 = arith.constant 95 : i32
    %200 = tpu.dynamic_rotate %199 by %c95_i32_113 dim 1 : vector<16x128xf32>, i32 -> vector<16x128xf32>
    %201 = arith.select %19, %200, %197 : vector<16x128xi1>, vector<16x128xf32>
    %c2_114 = arith.constant 2 : index
    %c0_115 = arith.constant 0 : index
    %c0_116 = arith.constant 0 : index
    %202 = vector.load %arg0[%c2_114, %c0_115, %c0_116] : memref<3x40x128xf32, #tpu.memory_space<vmem>>, vector<1x16x128xf32>
    %203 = vector.shape_cast %202 : vector<1x16x128xf32> to vector<16x128xf32>
    %c127_i32_117 = arith.constant 127 : i32
    %204 = tpu.dynamic_rotate %203 by %c127_i32_117 dim 1 : vector<16x128xf32>, i32 -> vector<16x128xf32>
    %c2_118 = arith.constant 2 : index
    %c8_119 = arith.constant 8 : index
    %c0_120 = arith.constant 0 : index
    %205 = vector.load %arg0[%c2_118, %c8_119, %c0_120] : memref<3x40x128xf32, #tpu.memory_space<vmem>>, vector<1x16x128xf32>
    %206 = vector.shape_cast %205 : vector<1x16x128xf32> to vector<16x128xf32>
    %c31_i32_121 = arith.constant 31 : i32
    %207 = tpu.dynamic_rotate %206 by %c31_i32_121 dim 1 : vector<16x128xf32>, i32 -> vector<16x128xf32>
    %208 = arith.select %15, %207, %204 : vector<16x128xi1>, vector<16x128xf32>
    %c2_122 = arith.constant 2 : index
    %c16_123 = arith.constant 16 : index
    %c0_124 = arith.constant 0 : index
    %209 = vector.load %arg0[%c2_122, %c16_123, %c0_124] : memref<3x40x128xf32, #tpu.memory_space<vmem>>, vector<1x16x128xf32>
    %210 = vector.shape_cast %209 : vector<1x16x128xf32> to vector<16x128xf32>
    %c63_i32_125 = arith.constant 63 : i32
    %211 = tpu.dynamic_rotate %210 by %c63_i32_125 dim 1 : vector<16x128xf32>, i32 -> vector<16x128xf32>
    %212 = arith.select %17, %211, %208 : vector<16x128xi1>, vector<16x128xf32>
    %c2_126 = arith.constant 2 : index
    %c24_127 = arith.constant 24 : index
    %c0_128 = arith.constant 0 : index
    %213 = vector.load %arg0[%c2_126, %c24_127, %c0_128] : memref<3x40x128xf32, #tpu.memory_space<vmem>>, vector<1x16x128xf32>
    %214 = vector.shape_cast %213 : vector<1x16x128xf32> to vector<16x128xf32>
    %c95_i32_129 = arith.constant 95 : i32
    %215 = tpu.dynamic_rotate %214 by %c95_i32_129 dim 1 : vector<16x128xf32>, i32 -> vector<16x128xf32>
    %216 = arith.select %19, %215, %212 : vector<16x128xi1>, vector<16x128xf32>
    %c34_i32 = arith.constant 34 : i32
    %217 = vector.broadcast %c34_i32 : i32 to vector<16x128xi32>
    %218 = arith.cmpi sge, %5, %217 : vector<16x128xi32>
    %219 = arith.ori %13, %218 : vector<16x128xi1>
    %c0_130 = arith.constant 0 : index
    %c0_131 = arith.constant 0 : index
    %220 = memref.load %arg1[%c0_130, %c0_131] : memref<4x3xf32, #tpu.memory_space<smem>>
    %221 = vector.broadcast %220 : f32 to vector<16x128xf32>
    %222 = arith.mulf %221, %186 : vector<16x128xf32>
    %c0_132 = arith.constant 0 : index
    %c1_133 = arith.constant 1 : index
    %223 = memref.load %arg1[%c0_132, %c1_133] : memref<4x3xf32, #tpu.memory_space<smem>>
    %224 = vector.broadcast %223 : f32 to vector<16x128xf32>
    %225 = arith.mulf %224, %201 : vector<16x128xf32>
    %226 = arith.addf %222, %225 : vector<16x128xf32>
    %c0_134 = arith.constant 0 : index
    %c2_135 = arith.constant 2 : index
    %227 = memref.load %arg1[%c0_134, %c2_135] : memref<4x3xf32, #tpu.memory_space<smem>>
    %228 = vector.broadcast %227 : f32 to vector<16x128xf32>
    %229 = arith.mulf %228, %216 : vector<16x128xf32>
    %230 = arith.addf %226, %229 : vector<16x128xf32>
    %c0_136 = arith.constant 0 : index
    %231 = memref.load %arg2[%c0_136] : memref<4xf32, #tpu.memory_space<smem>>
    %232 = vector.broadcast %231 : f32 to vector<16x128xf32>
    %233 = arith.addf %230, %232 : vector<16x128xf32>
    %234 = arith.negf %233 : vector<16x128xf32>
    %235 = math.exp %234 : vector<16x128xf32>
    %cst_137 = arith.constant 1.000000e+00 : f32
    %236 = vector.broadcast %cst_137 : f32 to vector<16x128xf32>
    %237 = arith.addf %236, %235 : vector<16x128xf32>
    %238 = arith.divf %236, %237 : vector<16x128xf32>
    %cst_138 = arith.constant 3.000000e+00 : f32
    %239 = vector.broadcast %cst_138 : f32 to vector<16x128xf32>
    %240 = arith.addf %238, %239 : vector<16x128xf32>
    %cst_139 = arith.constant 0.000000e+00 : f32
    %241 = vector.broadcast %cst_139 : f32 to vector<16x128xf32>
    %242 = arith.select %219, %241, %240 : vector<16x128xi1>, vector<16x128xf32>
    %c1_140 = arith.constant 1 : index
    %c0_141 = arith.constant 0 : index
    %c0_142 = arith.constant 0 : index
    %243 = vector.load %arg6[%c1_140, %c0_141, %c0_142] : memref<24x16x128xf32, #tpu.memory_space<vmem>>, vector<1x16x128xf32>
    %244 = vector.shape_cast %243 : vector<1x16x128xf32> to vector<16x128xf32>
    %245 = vector.shape_cast %242 : vector<16x128xf32> to vector<1x16x128xf32>
    tpu.vector_store %arg6[%c1_140, %c0_141, %c0_142], %245 {strides = array<i32>} : memref<24x16x128xf32, #tpu.memory_space<vmem>>, vector<1x16x128xf32>,
    %c1_143 = arith.constant 1 : index
    %c0_144 = arith.constant 0 : index
    %246 = memref.load %arg1[%c1_143, %c0_144] : memref<4x3xf32, #tpu.memory_space<smem>>
    %247 = vector.broadcast %246 : f32 to vector<16x128xf32>
    %248 = arith.mulf %247, %186 : vector<16x128xf32>
    %c1_145 = arith.constant 1 : index
    %c1_146 = arith.constant 1 : index
    %249 = memref.load %arg1[%c1_145, %c1_146] : memref<4x3xf32, #tpu.memory_space<smem>>
    %250 = vector.broadcast %249 : f32 to vector<16x128xf32>
    %251 = arith.mulf %250, %201 : vector<16x128xf32>
    %252 = arith.addf %248, %251 : vector<16x128xf32>
    %c1_147 = arith.constant 1 : index
    %c2_148 = arith.constant 2 : index
    %253 = memref.load %arg1[%c1_147, %c2_148] : memref<4x3xf32, #tpu.memory_space<smem>>
    %254 = vector.broadcast %253 : f32 to vector<16x128xf32>
    %255 = arith.mulf %254, %216 : vector<16x128xf32>
    %256 = arith.addf %252, %255 : vector<16x128xf32>
    %c1_149 = arith.constant 1 : index
    %257 = memref.load %arg2[%c1_149] : memref<4xf32, #tpu.memory_space<smem>>
    %258 = vector.broadcast %257 : f32 to vector<16x128xf32>
    %259 = arith.addf %256, %258 : vector<16x128xf32>
    %260 = arith.negf %259 : vector<16x128xf32>
    %261 = math.exp %260 : vector<16x128xf32>
    %cst_150 = arith.constant 1.000000e+00 : f32
    %262 = vector.broadcast %cst_150 : f32 to vector<16x128xf32>
    %263 = arith.addf %262, %261 : vector<16x128xf32>
    %264 = arith.divf %262, %263 : vector<16x128xf32>
    %cst_151 = arith.constant 3.000000e+00 : f32
    %265 = vector.broadcast %cst_151 : f32 to vector<16x128xf32>
    %266 = arith.addf %264, %265 : vector<16x128xf32>
    %cst_152 = arith.constant 0.000000e+00 : f32
    %267 = vector.broadcast %cst_152 : f32 to vector<16x128xf32>
    %268 = arith.select %219, %267, %266 : vector<16x128xi1>, vector<16x128xf32>
    %c7 = arith.constant 7 : index
    %c0_153 = arith.constant 0 : index
    %c0_154 = arith.constant 0 : index
    %269 = vector.load %arg6[%c7, %c0_153, %c0_154] : memref<24x16x128xf32, #tpu.memory_space<vmem>>, vector<1x16x128xf32>
    %270 = vector.shape_cast %269 : vector<1x16x128xf32> to vector<16x128xf32>
    %271 = vector.shape_cast %268 : vector<16x128xf32> to vector<1x16x128xf32>
    tpu.vector_store %arg6[%c7, %c0_153, %c0_154], %271 {strides = array<i32>} : memref<24x16x128xf32, #tpu.memory_space<vmem>>, vector<1x16x128xf32>,
    %c2_155 = arith.constant 2 : index
    %c0_156 = arith.constant 0 : index
    %272 = memref.load %arg1[%c2_155, %c0_156] : memref<4x3xf32, #tpu.memory_space<smem>>
    %273 = vector.broadcast %272 : f32 to vector<16x128xf32>
    %274 = arith.mulf %273, %186 : vector<16x128xf32>
    %c2_157 = arith.constant 2 : index
    %c1_158 = arith.constant 1 : index
    %275 = memref.load %arg1[%c2_157, %c1_158] : memref<4x3xf32, #tpu.memory_space<smem>>
    %276 = vector.broadcast %275 : f32 to vector<16x128xf32>
    %277 = arith.mulf %276, %201 : vector<16x128xf32>
    %278 = arith.addf %274, %277 : vector<16x128xf32>
    %c2_159 = arith.constant 2 : index
    %c2_160 = arith.constant 2 : index
    %279 = memref.load %arg1[%c2_159, %c2_160] : memref<4x3xf32, #tpu.memory_space<smem>>
    %280 = vector.broadcast %279 : f32 to vector<16x128xf32>
    %281 = arith.mulf %280, %216 : vector<16x128xf32>
    %282 = arith.addf %278, %281 : vector<16x128xf32>
    %c2_161 = arith.constant 2 : index
    %283 = memref.load %arg2[%c2_161] : memref<4xf32, #tpu.memory_space<smem>>
    %284 = vector.broadcast %283 : f32 to vector<16x128xf32>
    %285 = arith.addf %282, %284 : vector<16x128xf32>
    %286 = arith.negf %285 : vector<16x128xf32>
    %287 = math.exp %286 : vector<16x128xf32>
    %cst_162 = arith.constant 1.000000e+00 : f32
    %288 = vector.broadcast %cst_162 : f32 to vector<16x128xf32>
    %289 = arith.addf %288, %287 : vector<16x128xf32>
    %290 = arith.divf %288, %289 : vector<16x128xf32>
    %cst_163 = arith.constant 3.000000e+00 : f32
    %291 = vector.broadcast %cst_163 : f32 to vector<16x128xf32>
    %292 = arith.addf %290, %291 : vector<16x128xf32>
    %cst_164 = arith.constant 0.000000e+00 : f32
    %293 = vector.broadcast %cst_164 : f32 to vector<16x128xf32>
    %294 = arith.select %219, %293, %292 : vector<16x128xi1>, vector<16x128xf32>
    %c13 = arith.constant 13 : index
    %c0_165 = arith.constant 0 : index
    %c0_166 = arith.constant 0 : index
    %295 = vector.load %arg6[%c13, %c0_165, %c0_166] : memref<24x16x128xf32, #tpu.memory_space<vmem>>, vector<1x16x128xf32>
    %296 = vector.shape_cast %295 : vector<1x16x128xf32> to vector<16x128xf32>
    %297 = vector.shape_cast %294 : vector<16x128xf32> to vector<1x16x128xf32>
    tpu.vector_store %arg6[%c13, %c0_165, %c0_166], %297 {strides = array<i32>} : memref<24x16x128xf32, #tpu.memory_space<vmem>>, vector<1x16x128xf32>,
    %c3_167 = arith.constant 3 : index
    %c0_168 = arith.constant 0 : index
    %298 = memref.load %arg1[%c3_167, %c0_168] : memref<4x3xf32, #tpu.memory_space<smem>>
    %299 = vector.broadcast %298 : f32 to vector<16x128xf32>
    %300 = arith.mulf %299, %186 : vector<16x128xf32>
    %c3_169 = arith.constant 3 : index
    %c1_170 = arith.constant 1 : index
    %301 = memref.load %arg1[%c3_169, %c1_170] : memref<4x3xf32, #tpu.memory_space<smem>>
    %302 = vector.broadcast %301 : f32 to vector<16x128xf32>
    %303 = arith.mulf %302, %201 : vector<16x128xf32>
    %304 = arith.addf %300, %303 : vector<16x128xf32>
    %c3_171 = arith.constant 3 : index
    %c2_172 = arith.constant 2 : index
    %305 = memref.load %arg1[%c3_171, %c2_172] : memref<4x3xf32, #tpu.memory_space<smem>>
    %306 = vector.broadcast %305 : f32 to vector<16x128xf32>
    %307 = arith.mulf %306, %216 : vector<16x128xf32>
    %308 = arith.addf %304, %307 : vector<16x128xf32>
    %c3_173 = arith.constant 3 : index
    %309 = memref.load %arg2[%c3_173] : memref<4xf32, #tpu.memory_space<smem>>
    %310 = vector.broadcast %309 : f32 to vector<16x128xf32>
    %311 = arith.addf %308, %310 : vector<16x128xf32>
    %312 = arith.negf %311 : vector<16x128xf32>
    %313 = math.exp %312 : vector<16x128xf32>
    %cst_174 = arith.constant 1.000000e+00 : f32
    %314 = vector.broadcast %cst_174 : f32 to vector<16x128xf32>
    %315 = arith.addf %314, %313 : vector<16x128xf32>
    %316 = arith.divf %314, %315 : vector<16x128xf32>
    %cst_175 = arith.constant 3.000000e+00 : f32
    %317 = vector.broadcast %cst_175 : f32 to vector<16x128xf32>
    %318 = arith.addf %316, %317 : vector<16x128xf32>
    %cst_176 = arith.constant 0.000000e+00 : f32
    %319 = vector.broadcast %cst_176 : f32 to vector<16x128xf32>
    %320 = arith.select %219, %319, %318 : vector<16x128xi1>, vector<16x128xf32>
    %c19 = arith.constant 19 : index
    %c0_177 = arith.constant 0 : index
    %c0_178 = arith.constant 0 : index
    %321 = vector.load %arg6[%c19, %c0_177, %c0_178] : memref<24x16x128xf32, #tpu.memory_space<vmem>>, vector<1x16x128xf32>
    %322 = vector.shape_cast %321 : vector<1x16x128xf32> to vector<16x128xf32>
    %323 = vector.shape_cast %320 : vector<16x128xf32> to vector<1x16x128xf32>
    tpu.vector_store %arg6[%c19, %c0_177, %c0_178], %323 {strides = array<i32>} : memref<24x16x128xf32, #tpu.memory_space<vmem>>, vector<1x16x128xf32>,
    %c0_179 = arith.constant 0 : index
    %c0_180 = arith.constant 0 : index
    %c0_181 = arith.constant 0 : index
    %324 = vector.load %arg0[%c0_179, %c0_180, %c0_181] : memref<3x40x128xf32, #tpu.memory_space<vmem>>, vector<1x16x128xf32>
    %325 = vector.shape_cast %324 : vector<1x16x128xf32> to vector<16x128xf32>
    %c126_i32 = arith.constant 126 : i32
    %326 = tpu.dynamic_rotate %325 by %c126_i32 dim 1 : vector<16x128xf32>, i32 -> vector<16x128xf32>
    %c0_182 = arith.constant 0 : index
    %c8_183 = arith.constant 8 : index
    %c0_184 = arith.constant 0 : index
    %327 = vector.load %arg0[%c0_182, %c8_183, %c0_184] : memref<3x40x128xf32, #tpu.memory_space<vmem>>, vector<1x16x128xf32>
    %328 = vector.shape_cast %327 : vector<1x16x128xf32> to vector<16x128xf32>
    %c30_i32 = arith.constant 30 : i32
    %329 = tpu.dynamic_rotate %328 by %c30_i32 dim 1 : vector<16x128xf32>, i32 -> vector<16x128xf32>
    %330 = arith.select %15, %329, %326 : vector<16x128xi1>, vector<16x128xf32>
    %c0_185 = arith.constant 0 : index
    %c16_186 = arith.constant 16 : index
    %c0_187 = arith.constant 0 : index
    %331 = vector.load %arg0[%c0_185, %c16_186, %c0_187] : memref<3x40x128xf32, #tpu.memory_space<vmem>>, vector<1x16x128xf32>
    %332 = vector.shape_cast %331 : vector<1x16x128xf32> to vector<16x128xf32>
    %c62_i32 = arith.constant 62 : i32
    %333 = tpu.dynamic_rotate %332 by %c62_i32 dim 1 : vector<16x128xf32>, i32 -> vector<16x128xf32>
    %334 = arith.select %17, %333, %330 : vector<16x128xi1>, vector<16x128xf32>
    %c0_188 = arith.constant 0 : index
    %c24_189 = arith.constant 24 : index
    %c0_190 = arith.constant 0 : index
    %335 = vector.load %arg0[%c0_188, %c24_189, %c0_190] : memref<3x40x128xf32, #tpu.memory_space<vmem>>, vector<1x16x128xf32>
    %336 = vector.shape_cast %335 : vector<1x16x128xf32> to vector<16x128xf32>
    %c94_i32 = arith.constant 94 : i32
    %337 = tpu.dynamic_rotate %336 by %c94_i32 dim 1 : vector<16x128xf32>, i32 -> vector<16x128xf32>
    %338 = arith.select %19, %337, %334 : vector<16x128xi1>, vector<16x128xf32>
    %c1_191 = arith.constant 1 : index
    %c0_192 = arith.constant 0 : index
    %c0_193 = arith.constant 0 : index
    %339 = vector.load %arg0[%c1_191, %c0_192, %c0_193] : memref<3x40x128xf32, #tpu.memory_space<vmem>>, vector<1x16x128xf32>
    %340 = vector.shape_cast %339 : vector<1x16x128xf32> to vector<16x128xf32>
    %c126_i32_194 = arith.constant 126 : i32
    %341 = tpu.dynamic_rotate %340 by %c126_i32_194 dim 1 : vector<16x128xf32>, i32 -> vector<16x128xf32>
    %c1_195 = arith.constant 1 : index
    %c8_196 = arith.constant 8 : index
    %c0_197 = arith.constant 0 : index
    %342 = vector.load %arg0[%c1_195, %c8_196, %c0_197] : memref<3x40x128xf32, #tpu.memory_space<vmem>>, vector<1x16x128xf32>
    %343 = vector.shape_cast %342 : vector<1x16x128xf32> to vector<16x128xf32>
    %c30_i32_198 = arith.constant 30 : i32
    %344 = tpu.dynamic_rotate %343 by %c30_i32_198 dim 1 : vector<16x128xf32>, i32 -> vector<16x128xf32>
    %345 = arith.select %15, %344, %341 : vector<16x128xi1>, vector<16x128xf32>
    %c1_199 = arith.constant 1 : index
    %c16_200 = arith.constant 16 : index
    %c0_201 = arith.constant 0 : index
    %346 = vector.load %arg0[%c1_199, %c16_200, %c0_201] : memref<3x40x128xf32, #tpu.memory_space<vmem>>, vector<1x16x128xf32>
    %347 = vector.shape_cast %346 : vector<1x16x128xf32> to vector<16x128xf32>
    %c62_i32_202 = arith.constant 62 : i32
    %348 = tpu.dynamic_rotate %347 by %c62_i32_202 dim 1 : vector<16x128xf32>, i32 -> vector<16x128xf32>
    %349 = arith.select %17, %348, %345 : vector<16x128xi1>, vector<16x128xf32>
    %c1_203 = arith.constant 1 : index
    %c24_204 = arith.constant 24 : index
    %c0_205 = arith.constant 0 : index
    %350 = vector.load %arg0[%c1_203, %c24_204, %c0_205] : memref<3x40x128xf32, #tpu.memory_space<vmem>>, vector<1x16x128xf32>
    %351 = vector.shape_cast %350 : vector<1x16x128xf32> to vector<16x128xf32>
    %c94_i32_206 = arith.constant 94 : i32
    %352 = tpu.dynamic_rotate %351 by %c94_i32_206 dim 1 : vector<16x128xf32>, i32 -> vector<16x128xf32>
    %353 = arith.select %19, %352, %349 : vector<16x128xi1>, vector<16x128xf32>
    %c2_207 = arith.constant 2 : index
    %c0_208 = arith.constant 0 : index
    %c0_209 = arith.constant 0 : index
    %354 = vector.load %arg0[%c2_207, %c0_208, %c0_209] : memref<3x40x128xf32, #tpu.memory_space<vmem>>, vector<1x16x128xf32>
    %355 = vector.shape_cast %354 : vector<1x16x128xf32> to vector<16x128xf32>
    %c126_i32_210 = arith.constant 126 : i32
    %356 = tpu.dynamic_rotate %355 by %c126_i32_210 dim 1 : vector<16x128xf32>, i32 -> vector<16x128xf32>
    %c2_211 = arith.constant 2 : index
    %c8_212 = arith.constant 8 : index
    %c0_213 = arith.constant 0 : index
    %357 = vector.load %arg0[%c2_211, %c8_212, %c0_213] : memref<3x40x128xf32, #tpu.memory_space<vmem>>, vector<1x16x128xf32>
    %358 = vector.shape_cast %357 : vector<1x16x128xf32> to vector<16x128xf32>
    %c30_i32_214 = arith.constant 30 : i32
    %359 = tpu.dynamic_rotate %358 by %c30_i32_214 dim 1 : vector<16x128xf32>, i32 -> vector<16x128xf32>
    %360 = arith.select %15, %359, %356 : vector<16x128xi1>, vector<16x128xf32>
    %c2_215 = arith.constant 2 : index
    %c16_216 = arith.constant 16 : index
    %c0_217 = arith.constant 0 : index
    %361 = vector.load %arg0[%c2_215, %c16_216, %c0_217] : memref<3x40x128xf32, #tpu.memory_space<vmem>>, vector<1x16x128xf32>
    %362 = vector.shape_cast %361 : vector<1x16x128xf32> to vector<16x128xf32>
    %c62_i32_218 = arith.constant 62 : i32
    %363 = tpu.dynamic_rotate %362 by %c62_i32_218 dim 1 : vector<16x128xf32>, i32 -> vector<16x128xf32>
    %364 = arith.select %17, %363, %360 : vector<16x128xi1>, vector<16x128xf32>
    %c2_219 = arith.constant 2 : index
    %c24_220 = arith.constant 24 : index
    %c0_221 = arith.constant 0 : index
    %365 = vector.load %arg0[%c2_219, %c24_220, %c0_221] : memref<3x40x128xf32, #tpu.memory_space<vmem>>, vector<1x16x128xf32>
    %366 = vector.shape_cast %365 : vector<1x16x128xf32> to vector<16x128xf32>
    %c94_i32_222 = arith.constant 94 : i32
    %367 = tpu.dynamic_rotate %366 by %c94_i32_222 dim 1 : vector<16x128xf32>, i32 -> vector<16x128xf32>
    %368 = arith.select %19, %367, %364 : vector<16x128xi1>, vector<16x128xf32>
    %c33_i32 = arith.constant 33 : i32
    %369 = vector.broadcast %c33_i32 : i32 to vector<16x128xi32>
    %370 = arith.cmpi sge, %5, %369 : vector<16x128xi32>
    %371 = arith.ori %13, %370 : vector<16x128xi1>
    %c0_223 = arith.constant 0 : index
    %c0_224 = arith.constant 0 : index
    %372 = memref.load %arg1[%c0_223, %c0_224] : memref<4x3xf32, #tpu.memory_space<smem>>
    %373 = vector.broadcast %372 : f32 to vector<16x128xf32>
    %374 = arith.mulf %373, %338 : vector<16x128xf32>
    %c0_225 = arith.constant 0 : index
    %c1_226 = arith.constant 1 : index
    %375 = memref.load %arg1[%c0_225, %c1_226] : memref<4x3xf32, #tpu.memory_space<smem>>
    %376 = vector.broadcast %375 : f32 to vector<16x128xf32>
    %377 = arith.mulf %376, %353 : vector<16x128xf32>
    %378 = arith.addf %374, %377 : vector<16x128xf32>
    %c0_227 = arith.constant 0 : index
    %c2_228 = arith.constant 2 : index
    %379 = memref.load %arg1[%c0_227, %c2_228] : memref<4x3xf32, #tpu.memory_space<smem>>
    %380 = vector.broadcast %379 : f32 to vector<16x128xf32>
    %381 = arith.mulf %380, %368 : vector<16x128xf32>
    %382 = arith.addf %378, %381 : vector<16x128xf32>
    %c0_229 = arith.constant 0 : index
    %383 = memref.load %arg2[%c0_229] : memref<4xf32, #tpu.memory_space<smem>>
    %384 = vector.broadcast %383 : f32 to vector<16x128xf32>
    %385 = arith.addf %382, %384 : vector<16x128xf32>
    %386 = arith.negf %385 : vector<16x128xf32>
    %387 = math.exp %386 : vector<16x128xf32>
    %cst_230 = arith.constant 1.000000e+00 : f32
    %388 = vector.broadcast %cst_230 : f32 to vector<16x128xf32>
    %389 = arith.addf %388, %387 : vector<16x128xf32>
    %390 = arith.divf %388, %389 : vector<16x128xf32>
    %cst_231 = arith.constant 3.000000e+00 : f32
    %391 = vector.broadcast %cst_231 : f32 to vector<16x128xf32>
    %392 = arith.addf %390, %391 : vector<16x128xf32>
    %cst_232 = arith.constant 0.000000e+00 : f32
    %393 = vector.broadcast %cst_232 : f32 to vector<16x128xf32>
    %394 = arith.select %371, %393, %392 : vector<16x128xi1>, vector<16x128xf32>
    %c2_233 = arith.constant 2 : index
    %c0_234 = arith.constant 0 : index
    %c0_235 = arith.constant 0 : index
    %395 = vector.load %arg6[%c2_233, %c0_234, %c0_235] : memref<24x16x128xf32, #tpu.memory_space<vmem>>, vector<1x16x128xf32>
    %396 = vector.shape_cast %395 : vector<1x16x128xf32> to vector<16x128xf32>
    %397 = vector.shape_cast %394 : vector<16x128xf32> to vector<1x16x128xf32>
    tpu.vector_store %arg6[%c2_233, %c0_234, %c0_235], %397 {strides = array<i32>} : memref<24x16x128xf32, #tpu.memory_space<vmem>>, vector<1x16x128xf32>,
    %c1_236 = arith.constant 1 : index
    %c0_237 = arith.constant 0 : index
    %398 = memref.load %arg1[%c1_236, %c0_237] : memref<4x3xf32, #tpu.memory_space<smem>>
    %399 = vector.broadcast %398 : f32 to vector<16x128xf32>
    %400 = arith.mulf %399, %338 : vector<16x128xf32>
    %c1_238 = arith.constant 1 : index
    %c1_239 = arith.constant 1 : index
    %401 = memref.load %arg1[%c1_238, %c1_239] : memref<4x3xf32, #tpu.memory_space<smem>>
    %402 = vector.broadcast %401 : f32 to vector<16x128xf32>
    %403 = arith.mulf %402, %353 : vector<16x128xf32>
    %404 = arith.addf %400, %403 : vector<16x128xf32>
    %c1_240 = arith.constant 1 : index
    %c2_241 = arith.constant 2 : index
    %405 = memref.load %arg1[%c1_240, %c2_241] : memref<4x3xf32, #tpu.memory_space<smem>>
    %406 = vector.broadcast %405 : f32 to vector<16x128xf32>
    %407 = arith.mulf %406, %368 : vector<16x128xf32>
    %408 = arith.addf %404, %407 : vector<16x128xf32>
    %c1_242 = arith.constant 1 : index
    %409 = memref.load %arg2[%c1_242] : memref<4xf32, #tpu.memory_space<smem>>
    %410 = vector.broadcast %409 : f32 to vector<16x128xf32>
    %411 = arith.addf %408, %410 : vector<16x128xf32>
    %412 = arith.negf %411 : vector<16x128xf32>
    %413 = math.exp %412 : vector<16x128xf32>
    %cst_243 = arith.constant 1.000000e+00 : f32
    %414 = vector.broadcast %cst_243 : f32 to vector<16x128xf32>
    %415 = arith.addf %414, %413 : vector<16x128xf32>
    %416 = arith.divf %414, %415 : vector<16x128xf32>
    %cst_244 = arith.constant 3.000000e+00 : f32
    %417 = vector.broadcast %cst_244 : f32 to vector<16x128xf32>
    %418 = arith.addf %416, %417 : vector<16x128xf32>
    %cst_245 = arith.constant 0.000000e+00 : f32
    %419 = vector.broadcast %cst_245 : f32 to vector<16x128xf32>
    %420 = arith.select %371, %419, %418 : vector<16x128xi1>, vector<16x128xf32>
    %c8_246 = arith.constant 8 : index
    %c0_247 = arith.constant 0 : index
    %c0_248 = arith.constant 0 : index
    %421 = vector.load %arg6[%c8_246, %c0_247, %c0_248] : memref<24x16x128xf32, #tpu.memory_space<vmem>>, vector<1x16x128xf32>
    %422 = vector.shape_cast %421 : vector<1x16x128xf32> to vector<16x128xf32>
    %423 = vector.shape_cast %420 : vector<16x128xf32> to vector<1x16x128xf32>
    tpu.vector_store %arg6[%c8_246, %c0_247, %c0_248], %423 {strides = array<i32>} : memref<24x16x128xf32, #tpu.memory_space<vmem>>, vector<1x16x128xf32>,
    %c2_249 = arith.constant 2 : index
    %c0_250 = arith.constant 0 : index
    %424 = memref.load %arg1[%c2_249, %c0_250] : memref<4x3xf32, #tpu.memory_space<smem>>
    %425 = vector.broadcast %424 : f32 to vector<16x128xf32>
    %426 = arith.mulf %425, %338 : vector<16x128xf32>
    %c2_251 = arith.constant 2 : index
    %c1_252 = arith.constant 1 : index
    %427 = memref.load %arg1[%c2_251, %c1_252] : memref<4x3xf32, #tpu.memory_space<smem>>
    %428 = vector.broadcast %427 : f32 to vector<16x128xf32>
    %429 = arith.mulf %428, %353 : vector<16x128xf32>
    %430 = arith.addf %426, %429 : vector<16x128xf32>
    %c2_253 = arith.constant 2 : index
    %c2_254 = arith.constant 2 : index
    %431 = memref.load %arg1[%c2_253, %c2_254] : memref<4x3xf32, #tpu.memory_space<smem>>
    %432 = vector.broadcast %431 : f32 to vector<16x128xf32>
    %433 = arith.mulf %432, %368 : vector<16x128xf32>
    %434 = arith.addf %430, %433 : vector<16x128xf32>
    %c2_255 = arith.constant 2 : index
    %435 = memref.load %arg2[%c2_255] : memref<4xf32, #tpu.memory_space<smem>>
    %436 = vector.broadcast %435 : f32 to vector<16x128xf32>
    %437 = arith.addf %434, %436 : vector<16x128xf32>
    %438 = arith.negf %437 : vector<16x128xf32>
    %439 = math.exp %438 : vector<16x128xf32>
    %cst_256 = arith.constant 1.000000e+00 : f32
    %440 = vector.broadcast %cst_256 : f32 to vector<16x128xf32>
    %441 = arith.addf %440, %439 : vector<16x128xf32>
    %442 = arith.divf %440, %441 : vector<16x128xf32>
    %cst_257 = arith.constant 3.000000e+00 : f32
    %443 = vector.broadcast %cst_257 : f32 to vector<16x128xf32>
    %444 = arith.addf %442, %443 : vector<16x128xf32>
    %cst_258 = arith.constant 0.000000e+00 : f32
    %445 = vector.broadcast %cst_258 : f32 to vector<16x128xf32>
    %446 = arith.select %371, %445, %444 : vector<16x128xi1>, vector<16x128xf32>
    %c14 = arith.constant 14 : index
    %c0_259 = arith.constant 0 : index
    %c0_260 = arith.constant 0 : index
    %447 = vector.load %arg6[%c14, %c0_259, %c0_260] : memref<24x16x128xf32, #tpu.memory_space<vmem>>, vector<1x16x128xf32>
    %448 = vector.shape_cast %447 : vector<1x16x128xf32> to vector<16x128xf32>
    %449 = vector.shape_cast %446 : vector<16x128xf32> to vector<1x16x128xf32>
    tpu.vector_store %arg6[%c14, %c0_259, %c0_260], %449 {strides = array<i32>} : memref<24x16x128xf32, #tpu.memory_space<vmem>>, vector<1x16x128xf32>,
    %c3_261 = arith.constant 3 : index
    %c0_262 = arith.constant 0 : index
    %450 = memref.load %arg1[%c3_261, %c0_262] : memref<4x3xf32, #tpu.memory_space<smem>>
    %451 = vector.broadcast %450 : f32 to vector<16x128xf32>
    %452 = arith.mulf %451, %338 : vector<16x128xf32>
    %c3_263 = arith.constant 3 : index
    %c1_264 = arith.constant 1 : index
    %453 = memref.load %arg1[%c3_263, %c1_264] : memref<4x3xf32, #tpu.memory_space<smem>>
    %454 = vector.broadcast %453 : f32 to vector<16x128xf32>
    %455 = arith.mulf %454, %353 : vector<16x128xf32>
    %456 = arith.addf %452, %455 : vector<16x128xf32>
    %c3_265 = arith.constant 3 : index
    %c2_266 = arith.constant 2 : index
    %457 = memref.load %arg1[%c3_265, %c2_266] : memref<4x3xf32, #tpu.memory_space<smem>>
    %458 = vector.broadcast %457 : f32 to vector<16x128xf32>
    %459 = arith.mulf %458, %368 : vector<16x128xf32>
    %460 = arith.addf %456, %459 : vector<16x128xf32>
    %c3_267 = arith.constant 3 : index
    %461 = memref.load %arg2[%c3_267] : memref<4xf32, #tpu.memory_space<smem>>
    %462 = vector.broadcast %461 : f32 to vector<16x128xf32>
    %463 = arith.addf %460, %462 : vector<16x128xf32>
    %464 = arith.negf %463 : vector<16x128xf32>
    %465 = math.exp %464 : vector<16x128xf32>
    %cst_268 = arith.constant 1.000000e+00 : f32
    %466 = vector.broadcast %cst_268 : f32 to vector<16x128xf32>
    %467 = arith.addf %466, %465 : vector<16x128xf32>
    %468 = arith.divf %466, %467 : vector<16x128xf32>
    %cst_269 = arith.constant 3.000000e+00 : f32
    %469 = vector.broadcast %cst_269 : f32 to vector<16x128xf32>
    %470 = arith.addf %468, %469 : vector<16x128xf32>
    %cst_270 = arith.constant 0.000000e+00 : f32
    %471 = vector.broadcast %cst_270 : f32 to vector<16x128xf32>
    %472 = arith.select %371, %471, %470 : vector<16x128xi1>, vector<16x128xf32>
    %c20 = arith.constant 20 : index
    %c0_271 = arith.constant 0 : index
    %c0_272 = arith.constant 0 : index
    %473 = vector.load %arg6[%c20, %c0_271, %c0_272] : memref<24x16x128xf32, #tpu.memory_space<vmem>>, vector<1x16x128xf32>
    %474 = vector.shape_cast %473 : vector<1x16x128xf32> to vector<16x128xf32>
    %475 = vector.shape_cast %472 : vector<16x128xf32> to vector<1x16x128xf32>
    tpu.vector_store %arg6[%c20, %c0_271, %c0_272], %475 {strides = array<i32>} : memref<24x16x128xf32, #tpu.memory_space<vmem>>, vector<1x16x128xf32>,
    %c0_273 = arith.constant 0 : index
    %c0_274 = arith.constant 0 : index
    %c0_275 = arith.constant 0 : index
    %476 = vector.load %arg0[%c0_273, %c0_274, %c0_275] : memref<3x40x128xf32, #tpu.memory_space<vmem>>, vector<1x16x128xf32>
    %477 = vector.shape_cast %476 : vector<1x16x128xf32> to vector<16x128xf32>
    %c125_i32 = arith.constant 125 : i32
    %478 = tpu.dynamic_rotate %477 by %c125_i32 dim 1 : vector<16x128xf32>, i32 -> vector<16x128xf32>
    %c0_276 = arith.constant 0 : index
    %c8_277 = arith.constant 8 : index
    %c0_278 = arith.constant 0 : index
    %479 = vector.load %arg0[%c0_276, %c8_277, %c0_278] : memref<3x40x128xf32, #tpu.memory_space<vmem>>, vector<1x16x128xf32>
    %480 = vector.shape_cast %479 : vector<1x16x128xf32> to vector<16x128xf32>
    %c29_i32 = arith.constant 29 : i32
    %481 = tpu.dynamic_rotate %480 by %c29_i32 dim 1 : vector<16x128xf32>, i32 -> vector<16x128xf32>
    %482 = arith.select %15, %481, %478 : vector<16x128xi1>, vector<16x128xf32>
    %c0_279 = arith.constant 0 : index
    %c16_280 = arith.constant 16 : index
    %c0_281 = arith.constant 0 : index
    %483 = vector.load %arg0[%c0_279, %c16_280, %c0_281] : memref<3x40x128xf32, #tpu.memory_space<vmem>>, vector<1x16x128xf32>
    %484 = vector.shape_cast %483 : vector<1x16x128xf32> to vector<16x128xf32>
    %c61_i32 = arith.constant 61 : i32
    %485 = tpu.dynamic_rotate %484 by %c61_i32 dim 1 : vector<16x128xf32>, i32 -> vector<16x128xf32>
    %486 = arith.select %17, %485, %482 : vector<16x128xi1>, vector<16x128xf32>
    %c0_282 = arith.constant 0 : index
    %c24_283 = arith.constant 24 : index
    %c0_284 = arith.constant 0 : index
    %487 = vector.load %arg0[%c0_282, %c24_283, %c0_284] : memref<3x40x128xf32, #tpu.memory_space<vmem>>, vector<1x16x128xf32>
    %488 = vector.shape_cast %487 : vector<1x16x128xf32> to vector<16x128xf32>
    %c93_i32 = arith.constant 93 : i32
    %489 = tpu.dynamic_rotate %488 by %c93_i32 dim 1 : vector<16x128xf32>, i32 -> vector<16x128xf32>
    %490 = arith.select %19, %489, %486 : vector<16x128xi1>, vector<16x128xf32>
    %c1_285 = arith.constant 1 : index
    %c0_286 = arith.constant 0 : index
    %c0_287 = arith.constant 0 : index
    %491 = vector.load %arg0[%c1_285, %c0_286, %c0_287] : memref<3x40x128xf32, #tpu.memory_space<vmem>>, vector<1x16x128xf32>
    %492 = vector.shape_cast %491 : vector<1x16x128xf32> to vector<16x128xf32>
    %c125_i32_288 = arith.constant 125 : i32
    %493 = tpu.dynamic_rotate %492 by %c125_i32_288 dim 1 : vector<16x128xf32>, i32 -> vector<16x128xf32>
    %c1_289 = arith.constant 1 : index
    %c8_290 = arith.constant 8 : index
    %c0_291 = arith.constant 0 : index
    %494 = vector.load %arg0[%c1_289, %c8_290, %c0_291] : memref<3x40x128xf32, #tpu.memory_space<vmem>>, vector<1x16x128xf32>
    %495 = vector.shape_cast %494 : vector<1x16x128xf32> to vector<16x128xf32>
    %c29_i32_292 = arith.constant 29 : i32
    %496 = tpu.dynamic_rotate %495 by %c29_i32_292 dim 1 : vector<16x128xf32>, i32 -> vector<16x128xf32>
    %497 = arith.select %15, %496, %493 : vector<16x128xi1>, vector<16x128xf32>
    %c1_293 = arith.constant 1 : index
    %c16_294 = arith.constant 16 : index
    %c0_295 = arith.constant 0 : index
    %498 = vector.load %arg0[%c1_293, %c16_294, %c0_295] : memref<3x40x128xf32, #tpu.memory_space<vmem>>, vector<1x16x128xf32>
    %499 = vector.shape_cast %498 : vector<1x16x128xf32> to vector<16x128xf32>
    %c61_i32_296 = arith.constant 61 : i32
    %500 = tpu.dynamic_rotate %499 by %c61_i32_296 dim 1 : vector<16x128xf32>, i32 -> vector<16x128xf32>
    %501 = arith.select %17, %500, %497 : vector<16x128xi1>, vector<16x128xf32>
    %c1_297 = arith.constant 1 : index
    %c24_298 = arith.constant 24 : index
    %c0_299 = arith.constant 0 : index
    %502 = vector.load %arg0[%c1_297, %c24_298, %c0_299] : memref<3x40x128xf32, #tpu.memory_space<vmem>>, vector<1x16x128xf32>
    %503 = vector.shape_cast %502 : vector<1x16x128xf32> to vector<16x128xf32>
    %c93_i32_300 = arith.constant 93 : i32
    %504 = tpu.dynamic_rotate %503 by %c93_i32_300 dim 1 : vector<16x128xf32>, i32 -> vector<16x128xf32>
    %505 = arith.select %19, %504, %501 : vector<16x128xi1>, vector<16x128xf32>
    %c2_301 = arith.constant 2 : index
    %c0_302 = arith.constant 0 : index
    %c0_303 = arith.constant 0 : index
    %506 = vector.load %arg0[%c2_301, %c0_302, %c0_303] : memref<3x40x128xf32, #tpu.memory_space<vmem>>, vector<1x16x128xf32>
    %507 = vector.shape_cast %506 : vector<1x16x128xf32> to vector<16x128xf32>
    %c125_i32_304 = arith.constant 125 : i32
    %508 = tpu.dynamic_rotate %507 by %c125_i32_304 dim 1 : vector<16x128xf32>, i32 -> vector<16x128xf32>
    %c2_305 = arith.constant 2 : index
    %c8_306 = arith.constant 8 : index
    %c0_307 = arith.constant 0 : index
    %509 = vector.load %arg0[%c2_305, %c8_306, %c0_307] : memref<3x40x128xf32, #tpu.memory_space<vmem>>, vector<1x16x128xf32>
    %510 = vector.shape_cast %509 : vector<1x16x128xf32> to vector<16x128xf32>
    %c29_i32_308 = arith.constant 29 : i32
    %511 = tpu.dynamic_rotate %510 by %c29_i32_308 dim 1 : vector<16x128xf32>, i32 -> vector<16x128xf32>
    %512 = arith.select %15, %511, %508 : vector<16x128xi1>, vector<16x128xf32>
    %c2_309 = arith.constant 2 : index
    %c16_310 = arith.constant 16 : index
    %c0_311 = arith.constant 0 : index
    %513 = vector.load %arg0[%c2_309, %c16_310, %c0_311] : memref<3x40x128xf32, #tpu.memory_space<vmem>>, vector<1x16x128xf32>
    %514 = vector.shape_cast %513 : vector<1x16x128xf32> to vector<16x128xf32>
    %c61_i32_312 = arith.constant 61 : i32
    %515 = tpu.dynamic_rotate %514 by %c61_i32_312 dim 1 : vector<16x128xf32>, i32 -> vector<16x128xf32>
    %516 = arith.select %17, %515, %512 : vector<16x128xi1>, vector<16x128xf32>
    %c2_313 = arith.constant 2 : index
    %c24_314 = arith.constant 24 : index
    %c0_315 = arith.constant 0 : index
    %517 = vector.load %arg0[%c2_313, %c24_314, %c0_315] : memref<3x40x128xf32, #tpu.memory_space<vmem>>, vector<1x16x128xf32>
    %518 = vector.shape_cast %517 : vector<1x16x128xf32> to vector<16x128xf32>
    %c93_i32_316 = arith.constant 93 : i32
    %519 = tpu.dynamic_rotate %518 by %c93_i32_316 dim 1 : vector<16x128xf32>, i32 -> vector<16x128xf32>
    %520 = arith.select %19, %519, %516 : vector<16x128xi1>, vector<16x128xf32>
    %c32_i32_317 = arith.constant 32 : i32
    %521 = vector.broadcast %c32_i32_317 : i32 to vector<16x128xi32>
    %522 = arith.cmpi sge, %5, %521 : vector<16x128xi32>
    %523 = arith.ori %13, %522 : vector<16x128xi1>
    %c0_318 = arith.constant 0 : index
    %c0_319 = arith.constant 0 : index
    %524 = memref.load %arg1[%c0_318, %c0_319] : memref<4x3xf32, #tpu.memory_space<smem>>
    %525 = vector.broadcast %524 : f32 to vector<16x128xf32>
    %526 = arith.mulf %525, %490 : vector<16x128xf32>
    %c0_320 = arith.constant 0 : index
    %c1_321 = arith.constant 1 : index
    %527 = memref.load %arg1[%c0_320, %c1_321] : memref<4x3xf32, #tpu.memory_space<smem>>
    %528 = vector.broadcast %527 : f32 to vector<16x128xf32>
    %529 = arith.mulf %528, %505 : vector<16x128xf32>
    %530 = arith.addf %526, %529 : vector<16x128xf32>
    %c0_322 = arith.constant 0 : index
    %c2_323 = arith.constant 2 : index
    %531 = memref.load %arg1[%c0_322, %c2_323] : memref<4x3xf32, #tpu.memory_space<smem>>
    %532 = vector.broadcast %531 : f32 to vector<16x128xf32>
    %533 = arith.mulf %532, %520 : vector<16x128xf32>
    %534 = arith.addf %530, %533 : vector<16x128xf32>
    %c0_324 = arith.constant 0 : index
    %535 = memref.load %arg2[%c0_324] : memref<4xf32, #tpu.memory_space<smem>>
    %536 = vector.broadcast %535 : f32 to vector<16x128xf32>
    %537 = arith.addf %534, %536 : vector<16x128xf32>
    %538 = arith.negf %537 : vector<16x128xf32>
    %539 = math.exp %538 : vector<16x128xf32>
    %cst_325 = arith.constant 1.000000e+00 : f32
    %540 = vector.broadcast %cst_325 : f32 to vector<16x128xf32>
    %541 = arith.addf %540, %539 : vector<16x128xf32>
    %542 = arith.divf %540, %541 : vector<16x128xf32>
    %cst_326 = arith.constant 3.000000e+00 : f32
    %543 = vector.broadcast %cst_326 : f32 to vector<16x128xf32>
    %544 = arith.addf %542, %543 : vector<16x128xf32>
    %cst_327 = arith.constant 0.000000e+00 : f32
    %545 = vector.broadcast %cst_327 : f32 to vector<16x128xf32>
    %546 = arith.select %523, %545, %544 : vector<16x128xi1>, vector<16x128xf32>
    %c3_328 = arith.constant 3 : index
    %c0_329 = arith.constant 0 : index
    %c0_330 = arith.constant 0 : index
    %547 = vector.load %arg6[%c3_328, %c0_329, %c0_330] : memref<24x16x128xf32, #tpu.memory_space<vmem>>, vector<1x16x128xf32>
    %548 = vector.shape_cast %547 : vector<1x16x128xf32> to vector<16x128xf32>
    %549 = vector.shape_cast %546 : vector<16x128xf32> to vector<1x16x128xf32>
    tpu.vector_store %arg6[%c3_328, %c0_329, %c0_330], %549 {strides = array<i32>} : memref<24x16x128xf32, #tpu.memory_space<vmem>>, vector<1x16x128xf32>,
    %c1_331 = arith.constant 1 : index
    %c0_332 = arith.constant 0 : index
    %550 = memref.load %arg1[%c1_331, %c0_332] : memref<4x3xf32, #tpu.memory_space<smem>>
    %551 = vector.broadcast %550 : f32 to vector<16x128xf32>
    %552 = arith.mulf %551, %490 : vector<16x128xf32>
    %c1_333 = arith.constant 1 : index
    %c1_334 = arith.constant 1 : index
    %553 = memref.load %arg1[%c1_333, %c1_334] : memref<4x3xf32, #tpu.memory_space<smem>>
    %554 = vector.broadcast %553 : f32 to vector<16x128xf32>
    %555 = arith.mulf %554, %505 : vector<16x128xf32>
    %556 = arith.addf %552, %555 : vector<16x128xf32>
    %c1_335 = arith.constant 1 : index
    %c2_336 = arith.constant 2 : index
    %557 = memref.load %arg1[%c1_335, %c2_336] : memref<4x3xf32, #tpu.memory_space<smem>>
    %558 = vector.broadcast %557 : f32 to vector<16x128xf32>
    %559 = arith.mulf %558, %520 : vector<16x128xf32>
    %560 = arith.addf %556, %559 : vector<16x128xf32>
    %c1_337 = arith.constant 1 : index
    %561 = memref.load %arg2[%c1_337] : memref<4xf32, #tpu.memory_space<smem>>
    %562 = vector.broadcast %561 : f32 to vector<16x128xf32>
    %563 = arith.addf %560, %562 : vector<16x128xf32>
    %564 = arith.negf %563 : vector<16x128xf32>
    %565 = math.exp %564 : vector<16x128xf32>
    %cst_338 = arith.constant 1.000000e+00 : f32
    %566 = vector.broadcast %cst_338 : f32 to vector<16x128xf32>
    %567 = arith.addf %566, %565 : vector<16x128xf32>
    %568 = arith.divf %566, %567 : vector<16x128xf32>
    %cst_339 = arith.constant 3.000000e+00 : f32
    %569 = vector.broadcast %cst_339 : f32 to vector<16x128xf32>
    %570 = arith.addf %568, %569 : vector<16x128xf32>
    %cst_340 = arith.constant 0.000000e+00 : f32
    %571 = vector.broadcast %cst_340 : f32 to vector<16x128xf32>
    %572 = arith.select %523, %571, %570 : vector<16x128xi1>, vector<16x128xf32>
    %c9 = arith.constant 9 : index
    %c0_341 = arith.constant 0 : index
    %c0_342 = arith.constant 0 : index
    %573 = vector.load %arg6[%c9, %c0_341, %c0_342] : memref<24x16x128xf32, #tpu.memory_space<vmem>>, vector<1x16x128xf32>
    %574 = vector.shape_cast %573 : vector<1x16x128xf32> to vector<16x128xf32>
    %575 = vector.shape_cast %572 : vector<16x128xf32> to vector<1x16x128xf32>
    tpu.vector_store %arg6[%c9, %c0_341, %c0_342], %575 {strides = array<i32>} : memref<24x16x128xf32, #tpu.memory_space<vmem>>, vector<1x16x128xf32>,
    %c2_343 = arith.constant 2 : index
    %c0_344 = arith.constant 0 : index
    %576 = memref.load %arg1[%c2_343, %c0_344] : memref<4x3xf32, #tpu.memory_space<smem>>
    %577 = vector.broadcast %576 : f32 to vector<16x128xf32>
    %578 = arith.mulf %577, %490 : vector<16x128xf32>
    %c2_345 = arith.constant 2 : index
    %c1_346 = arith.constant 1 : index
    %579 = memref.load %arg1[%c2_345, %c1_346] : memref<4x3xf32, #tpu.memory_space<smem>>
    %580 = vector.broadcast %579 : f32 to vector<16x128xf32>
    %581 = arith.mulf %580, %505 : vector<16x128xf32>
    %582 = arith.addf %578, %581 : vector<16x128xf32>
    %c2_347 = arith.constant 2 : index
    %c2_348 = arith.constant 2 : index
    %583 = memref.load %arg1[%c2_347, %c2_348] : memref<4x3xf32, #tpu.memory_space<smem>>
    %584 = vector.broadcast %583 : f32 to vector<16x128xf32>
    %585 = arith.mulf %584, %520 : vector<16x128xf32>
    %586 = arith.addf %582, %585 : vector<16x128xf32>
    %c2_349 = arith.constant 2 : index
    %587 = memref.load %arg2[%c2_349] : memref<4xf32, #tpu.memory_space<smem>>
    %588 = vector.broadcast %587 : f32 to vector<16x128xf32>
    %589 = arith.addf %586, %588 : vector<16x128xf32>
    %590 = arith.negf %589 : vector<16x128xf32>
    %591 = math.exp %590 : vector<16x128xf32>
    %cst_350 = arith.constant 1.000000e+00 : f32
    %592 = vector.broadcast %cst_350 : f32 to vector<16x128xf32>
    %593 = arith.addf %592, %591 : vector<16x128xf32>
    %594 = arith.divf %592, %593 : vector<16x128xf32>
    %cst_351 = arith.constant 3.000000e+00 : f32
    %595 = vector.broadcast %cst_351 : f32 to vector<16x128xf32>
    %596 = arith.addf %594, %595 : vector<16x128xf32>
    %cst_352 = arith.constant 0.000000e+00 : f32
    %597 = vector.broadcast %cst_352 : f32 to vector<16x128xf32>
    %598 = arith.select %523, %597, %596 : vector<16x128xi1>, vector<16x128xf32>
    %c15 = arith.constant 15 : index
    %c0_353 = arith.constant 0 : index
    %c0_354 = arith.constant 0 : index
    %599 = vector.load %arg6[%c15, %c0_353, %c0_354] : memref<24x16x128xf32, #tpu.memory_space<vmem>>, vector<1x16x128xf32>
    %600 = vector.shape_cast %599 : vector<1x16x128xf32> to vector<16x128xf32>
    %601 = vector.shape_cast %598 : vector<16x128xf32> to vector<1x16x128xf32>
    tpu.vector_store %arg6[%c15, %c0_353, %c0_354], %601 {strides = array<i32>} : memref<24x16x128xf32, #tpu.memory_space<vmem>>, vector<1x16x128xf32>,
    %c3_355 = arith.constant 3 : index
    %c0_356 = arith.constant 0 : index
    %602 = memref.load %arg1[%c3_355, %c0_356] : memref<4x3xf32, #tpu.memory_space<smem>>
    %603 = vector.broadcast %602 : f32 to vector<16x128xf32>
    %604 = arith.mulf %603, %490 : vector<16x128xf32>
    %c3_357 = arith.constant 3 : index
    %c1_358 = arith.constant 1 : index
    %605 = memref.load %arg1[%c3_357, %c1_358] : memref<4x3xf32, #tpu.memory_space<smem>>
    %606 = vector.broadcast %605 : f32 to vector<16x128xf32>
    %607 = arith.mulf %606, %505 : vector<16x128xf32>
    %608 = arith.addf %604, %607 : vector<16x128xf32>
    %c3_359 = arith.constant 3 : index
    %c2_360 = arith.constant 2 : index
    %609 = memref.load %arg1[%c3_359, %c2_360] : memref<4x3xf32, #tpu.memory_space<smem>>
    %610 = vector.broadcast %609 : f32 to vector<16x128xf32>
    %611 = arith.mulf %610, %520 : vector<16x128xf32>
    %612 = arith.addf %608, %611 : vector<16x128xf32>
    %c3_361 = arith.constant 3 : index
    %613 = memref.load %arg2[%c3_361] : memref<4xf32, #tpu.memory_space<smem>>
    %614 = vector.broadcast %613 : f32 to vector<16x128xf32>
    %615 = arith.addf %612, %614 : vector<16x128xf32>
    %616 = arith.negf %615 : vector<16x128xf32>
    %617 = math.exp %616 : vector<16x128xf32>
    %cst_362 = arith.constant 1.000000e+00 : f32
    %618 = vector.broadcast %cst_362 : f32 to vector<16x128xf32>
    %619 = arith.addf %618, %617 : vector<16x128xf32>
    %620 = arith.divf %618, %619 : vector<16x128xf32>
    %cst_363 = arith.constant 3.000000e+00 : f32
    %621 = vector.broadcast %cst_363 : f32 to vector<16x128xf32>
    %622 = arith.addf %620, %621 : vector<16x128xf32>
    %cst_364 = arith.constant 0.000000e+00 : f32
    %623 = vector.broadcast %cst_364 : f32 to vector<16x128xf32>
    %624 = arith.select %523, %623, %622 : vector<16x128xi1>, vector<16x128xf32>
    %c21 = arith.constant 21 : index
    %c0_365 = arith.constant 0 : index
    %c0_366 = arith.constant 0 : index
    %625 = vector.load %arg6[%c21, %c0_365, %c0_366] : memref<24x16x128xf32, #tpu.memory_space<vmem>>, vector<1x16x128xf32>
    %626 = vector.shape_cast %625 : vector<1x16x128xf32> to vector<16x128xf32>
    %627 = vector.shape_cast %624 : vector<16x128xf32> to vector<1x16x128xf32>
    tpu.vector_store %arg6[%c21, %c0_365, %c0_366], %627 {strides = array<i32>} : memref<24x16x128xf32, #tpu.memory_space<vmem>>, vector<1x16x128xf32>,
    %c0_367 = arith.constant 0 : index
    %c0_368 = arith.constant 0 : index
    %c0_369 = arith.constant 0 : index
    %628 = vector.load %arg0[%c0_367, %c0_368, %c0_369] : memref<3x40x128xf32, #tpu.memory_space<vmem>>, vector<1x16x128xf32>
    %629 = vector.shape_cast %628 : vector<1x16x128xf32> to vector<16x128xf32>
    %c124_i32 = arith.constant 124 : i32
    %630 = tpu.dynamic_rotate %629 by %c124_i32 dim 1 : vector<16x128xf32>, i32 -> vector<16x128xf32>
    %c0_370 = arith.constant 0 : index
    %c8_371 = arith.constant 8 : index
    %c0_372 = arith.constant 0 : index
    %631 = vector.load %arg0[%c0_370, %c8_371, %c0_372] : memref<3x40x128xf32, #tpu.memory_space<vmem>>, vector<1x16x128xf32>
    %632 = vector.shape_cast %631 : vector<1x16x128xf32> to vector<16x128xf32>
    %c28_i32 = arith.constant 28 : i32
    %633 = tpu.dynamic_rotate %632 by %c28_i32 dim 1 : vector<16x128xf32>, i32 -> vector<16x128xf32>
    %634 = arith.select %15, %633, %630 : vector<16x128xi1>, vector<16x128xf32>
    %c0_373 = arith.constant 0 : index
    %c16_374 = arith.constant 16 : index
    %c0_375 = arith.constant 0 : index
    %635 = vector.load %arg0[%c0_373, %c16_374, %c0_375] : memref<3x40x128xf32, #tpu.memory_space<vmem>>, vector<1x16x128xf32>
    %636 = vector.shape_cast %635 : vector<1x16x128xf32> to vector<16x128xf32>
    %c60_i32 = arith.constant 60 : i32
    %637 = tpu.dynamic_rotate %636 by %c60_i32 dim 1 : vector<16x128xf32>, i32 -> vector<16x128xf32>
    %638 = arith.select %17, %637, %634 : vector<16x128xi1>, vector<16x128xf32>
    %c0_376 = arith.constant 0 : index
    %c24_377 = arith.constant 24 : index
    %c0_378 = arith.constant 0 : index
    %639 = vector.load %arg0[%c0_376, %c24_377, %c0_378] : memref<3x40x128xf32, #tpu.memory_space<vmem>>, vector<1x16x128xf32>
    %640 = vector.shape_cast %639 : vector<1x16x128xf32> to vector<16x128xf32>
    %c92_i32 = arith.constant 92 : i32
    %641 = tpu.dynamic_rotate %640 by %c92_i32 dim 1 : vector<16x128xf32>, i32 -> vector<16x128xf32>
    %642 = arith.select %19, %641, %638 : vector<16x128xi1>, vector<16x128xf32>
    %c1_379 = arith.constant 1 : index
    %c0_380 = arith.constant 0 : index
    %c0_381 = arith.constant 0 : index
    %643 = vector.load %arg0[%c1_379, %c0_380, %c0_381] : memref<3x40x128xf32, #tpu.memory_space<vmem>>, vector<1x16x128xf32>
    %644 = vector.shape_cast %643 : vector<1x16x128xf32> to vector<16x128xf32>
    %c124_i32_382 = arith.constant 124 : i32
    %645 = tpu.dynamic_rotate %644 by %c124_i32_382 dim 1 : vector<16x128xf32>, i32 -> vector<16x128xf32>
    %c1_383 = arith.constant 1 : index
    %c8_384 = arith.constant 8 : index
    %c0_385 = arith.constant 0 : index
    %646 = vector.load %arg0[%c1_383, %c8_384, %c0_385] : memref<3x40x128xf32, #tpu.memory_space<vmem>>, vector<1x16x128xf32>
    %647 = vector.shape_cast %646 : vector<1x16x128xf32> to vector<16x128xf32>
    %c28_i32_386 = arith.constant 28 : i32
    %648 = tpu.dynamic_rotate %647 by %c28_i32_386 dim 1 : vector<16x128xf32>, i32 -> vector<16x128xf32>
    %649 = arith.select %15, %648, %645 : vector<16x128xi1>, vector<16x128xf32>
    %c1_387 = arith.constant 1 : index
    %c16_388 = arith.constant 16 : index
    %c0_389 = arith.constant 0 : index
    %650 = vector.load %arg0[%c1_387, %c16_388, %c0_389] : memref<3x40x128xf32, #tpu.memory_space<vmem>>, vector<1x16x128xf32>
    %651 = vector.shape_cast %650 : vector<1x16x128xf32> to vector<16x128xf32>
    %c60_i32_390 = arith.constant 60 : i32
    %652 = tpu.dynamic_rotate %651 by %c60_i32_390 dim 1 : vector<16x128xf32>, i32 -> vector<16x128xf32>
    %653 = arith.select %17, %652, %649 : vector<16x128xi1>, vector<16x128xf32>
    %c1_391 = arith.constant 1 : index
    %c24_392 = arith.constant 24 : index
    %c0_393 = arith.constant 0 : index
    %654 = vector.load %arg0[%c1_391, %c24_392, %c0_393] : memref<3x40x128xf32, #tpu.memory_space<vmem>>, vector<1x16x128xf32>
    %655 = vector.shape_cast %654 : vector<1x16x128xf32> to vector<16x128xf32>
    %c92_i32_394 = arith.constant 92 : i32
    %656 = tpu.dynamic_rotate %655 by %c92_i32_394 dim 1 : vector<16x128xf32>, i32 -> vector<16x128xf32>
    %657 = arith.select %19, %656, %653 : vector<16x128xi1>, vector<16x128xf32>
    %c2_395 = arith.constant 2 : index
    %c0_396 = arith.constant 0 : index
    %c0_397 = arith.constant 0 : index
    %658 = vector.load %arg0[%c2_395, %c0_396, %c0_397] : memref<3x40x128xf32, #tpu.memory_space<vmem>>, vector<1x16x128xf32>
    %659 = vector.shape_cast %658 : vector<1x16x128xf32> to vector<16x128xf32>
    %c124_i32_398 = arith.constant 124 : i32
    %660 = tpu.dynamic_rotate %659 by %c124_i32_398 dim 1 : vector<16x128xf32>, i32 -> vector<16x128xf32>
    %c2_399 = arith.constant 2 : index
    %c8_400 = arith.constant 8 : index
    %c0_401 = arith.constant 0 : index
    %661 = vector.load %arg0[%c2_399, %c8_400, %c0_401] : memref<3x40x128xf32, #tpu.memory_space<vmem>>, vector<1x16x128xf32>
    %662 = vector.shape_cast %661 : vector<1x16x128xf32> to vector<16x128xf32>
    %c28_i32_402 = arith.constant 28 : i32
    %663 = tpu.dynamic_rotate %662 by %c28_i32_402 dim 1 : vector<16x128xf32>, i32 -> vector<16x128xf32>
    %664 = arith.select %15, %663, %660 : vector<16x128xi1>, vector<16x128xf32>
    %c2_403 = arith.constant 2 : index
    %c16_404 = arith.constant 16 : index
    %c0_405 = arith.constant 0 : index
    %665 = vector.load %arg0[%c2_403, %c16_404, %c0_405] : memref<3x40x128xf32, #tpu.memory_space<vmem>>, vector<1x16x128xf32>
    %666 = vector.shape_cast %665 : vector<1x16x128xf32> to vector<16x128xf32>
    %c60_i32_406 = arith.constant 60 : i32
    %667 = tpu.dynamic_rotate %666 by %c60_i32_406 dim 1 : vector<16x128xf32>, i32 -> vector<16x128xf32>
    %668 = arith.select %17, %667, %664 : vector<16x128xi1>, vector<16x128xf32>
    %c2_407 = arith.constant 2 : index
    %c24_408 = arith.constant 24 : index
    %c0_409 = arith.constant 0 : index
    %669 = vector.load %arg0[%c2_407, %c24_408, %c0_409] : memref<3x40x128xf32, #tpu.memory_space<vmem>>, vector<1x16x128xf32>
    %670 = vector.shape_cast %669 : vector<1x16x128xf32> to vector<16x128xf32>
    %c92_i32_410 = arith.constant 92 : i32
    %671 = tpu.dynamic_rotate %670 by %c92_i32_410 dim 1 : vector<16x128xf32>, i32 -> vector<16x128xf32>
    %672 = arith.select %19, %671, %668 : vector<16x128xi1>, vector<16x128xf32>
    %c31_i32_411 = arith.constant 31 : i32
    %673 = vector.broadcast %c31_i32_411 : i32 to vector<16x128xi32>
    %674 = arith.cmpi sge, %5, %673 : vector<16x128xi32>
    %675 = arith.ori %13, %674 : vector<16x128xi1>
    %c0_412 = arith.constant 0 : index
    %c0_413 = arith.constant 0 : index
    %676 = memref.load %arg1[%c0_412, %c0_413] : memref<4x3xf32, #tpu.memory_space<smem>>
    %677 = vector.broadcast %676 : f32 to vector<16x128xf32>
    %678 = arith.mulf %677, %642 : vector<16x128xf32>
    %c0_414 = arith.constant 0 : index
    %c1_415 = arith.constant 1 : index
    %679 = memref.load %arg1[%c0_414, %c1_415] : memref<4x3xf32, #tpu.memory_space<smem>>
    %680 = vector.broadcast %679 : f32 to vector<16x128xf32>
    %681 = arith.mulf %680, %657 : vector<16x128xf32>
    %682 = arith.addf %678, %681 : vector<16x128xf32>
    %c0_416 = arith.constant 0 : index
    %c2_417 = arith.constant 2 : index
    %683 = memref.load %arg1[%c0_416, %c2_417] : memref<4x3xf32, #tpu.memory_space<smem>>
    %684 = vector.broadcast %683 : f32 to vector<16x128xf32>
    %685 = arith.mulf %684, %672 : vector<16x128xf32>
    %686 = arith.addf %682, %685 : vector<16x128xf32>
    %c0_418 = arith.constant 0 : index
    %687 = memref.load %arg2[%c0_418] : memref<4xf32, #tpu.memory_space<smem>>
    %688 = vector.broadcast %687 : f32 to vector<16x128xf32>
    %689 = arith.addf %686, %688 : vector<16x128xf32>
    %690 = arith.negf %689 : vector<16x128xf32>
    %691 = math.exp %690 : vector<16x128xf32>
    %cst_419 = arith.constant 1.000000e+00 : f32
    %692 = vector.broadcast %cst_419 : f32 to vector<16x128xf32>
    %693 = arith.addf %692, %691 : vector<16x128xf32>
    %694 = arith.divf %692, %693 : vector<16x128xf32>
    %cst_420 = arith.constant 3.000000e+00 : f32
    %695 = vector.broadcast %cst_420 : f32 to vector<16x128xf32>
    %696 = arith.addf %694, %695 : vector<16x128xf32>
    %cst_421 = arith.constant 0.000000e+00 : f32
    %697 = vector.broadcast %cst_421 : f32 to vector<16x128xf32>
    %698 = arith.select %675, %697, %696 : vector<16x128xi1>, vector<16x128xf32>
    %c4 = arith.constant 4 : index
    %c0_422 = arith.constant 0 : index
    %c0_423 = arith.constant 0 : index
    %699 = vector.load %arg6[%c4, %c0_422, %c0_423] : memref<24x16x128xf32, #tpu.memory_space<vmem>>, vector<1x16x128xf32>
    %700 = vector.shape_cast %699 : vector<1x16x128xf32> to vector<16x128xf32>
    %701 = vector.shape_cast %698 : vector<16x128xf32> to vector<1x16x128xf32>
    tpu.vector_store %arg6[%c4, %c0_422, %c0_423], %701 {strides = array<i32>} : memref<24x16x128xf32, #tpu.memory_space<vmem>>, vector<1x16x128xf32>,
    %c1_424 = arith.constant 1 : index
    %c0_425 = arith.constant 0 : index
    %702 = memref.load %arg1[%c1_424, %c0_425] : memref<4x3xf32, #tpu.memory_space<smem>>
    %703 = vector.broadcast %702 : f32 to vector<16x128xf32>
    %704 = arith.mulf %703, %642 : vector<16x128xf32>
    %c1_426 = arith.constant 1 : index
    %c1_427 = arith.constant 1 : index
    %705 = memref.load %arg1[%c1_426, %c1_427] : memref<4x3xf32, #tpu.memory_space<smem>>
    %706 = vector.broadcast %705 : f32 to vector<16x128xf32>
    %707 = arith.mulf %706, %657 : vector<16x128xf32>
    %708 = arith.addf %704, %707 : vector<16x128xf32>
    %c1_428 = arith.constant 1 : index
    %c2_429 = arith.constant 2 : index
    %709 = memref.load %arg1[%c1_428, %c2_429] : memref<4x3xf32, #tpu.memory_space<smem>>
    %710 = vector.broadcast %709 : f32 to vector<16x128xf32>
    %711 = arith.mulf %710, %672 : vector<16x128xf32>
    %712 = arith.addf %708, %711 : vector<16x128xf32>
    %c1_430 = arith.constant 1 : index
    %713 = memref.load %arg2[%c1_430] : memref<4xf32, #tpu.memory_space<smem>>
    %714 = vector.broadcast %713 : f32 to vector<16x128xf32>
    %715 = arith.addf %712, %714 : vector<16x128xf32>
    %716 = arith.negf %715 : vector<16x128xf32>
    %717 = math.exp %716 : vector<16x128xf32>
    %cst_431 = arith.constant 1.000000e+00 : f32
    %718 = vector.broadcast %cst_431 : f32 to vector<16x128xf32>
    %719 = arith.addf %718, %717 : vector<16x128xf32>
    %720 = arith.divf %718, %719 : vector<16x128xf32>
    %cst_432 = arith.constant 3.000000e+00 : f32
    %721 = vector.broadcast %cst_432 : f32 to vector<16x128xf32>
    %722 = arith.addf %720, %721 : vector<16x128xf32>
    %cst_433 = arith.constant 0.000000e+00 : f32
    %723 = vector.broadcast %cst_433 : f32 to vector<16x128xf32>
    %724 = arith.select %675, %723, %722 : vector<16x128xi1>, vector<16x128xf32>
    %c10 = arith.constant 10 : index
    %c0_434 = arith.constant 0 : index
    %c0_435 = arith.constant 0 : index
    %725 = vector.load %arg6[%c10, %c0_434, %c0_435] : memref<24x16x128xf32, #tpu.memory_space<vmem>>, vector<1x16x128xf32>
    %726 = vector.shape_cast %725 : vector<1x16x128xf32> to vector<16x128xf32>
    %727 = vector.shape_cast %724 : vector<16x128xf32> to vector<1x16x128xf32>
    tpu.vector_store %arg6[%c10, %c0_434, %c0_435], %727 {strides = array<i32>} : memref<24x16x128xf32, #tpu.memory_space<vmem>>, vector<1x16x128xf32>,
    %c2_436 = arith.constant 2 : index
    %c0_437 = arith.constant 0 : index
    %728 = memref.load %arg1[%c2_436, %c0_437] : memref<4x3xf32, #tpu.memory_space<smem>>
    %729 = vector.broadcast %728 : f32 to vector<16x128xf32>
    %730 = arith.mulf %729, %642 : vector<16x128xf32>
    %c2_438 = arith.constant 2 : index
    %c1_439 = arith.constant 1 : index
    %731 = memref.load %arg1[%c2_438, %c1_439] : memref<4x3xf32, #tpu.memory_space<smem>>
    %732 = vector.broadcast %731 : f32 to vector<16x128xf32>
    %733 = arith.mulf %732, %657 : vector<16x128xf32>
    %734 = arith.addf %730, %733 : vector<16x128xf32>
    %c2_440 = arith.constant 2 : index
    %c2_441 = arith.constant 2 : index
    %735 = memref.load %arg1[%c2_440, %c2_441] : memref<4x3xf32, #tpu.memory_space<smem>>
    %736 = vector.broadcast %735 : f32 to vector<16x128xf32>
    %737 = arith.mulf %736, %672 : vector<16x128xf32>
    %738 = arith.addf %734, %737 : vector<16x128xf32>
    %c2_442 = arith.constant 2 : index
    %739 = memref.load %arg2[%c2_442] : memref<4xf32, #tpu.memory_space<smem>>
    %740 = vector.broadcast %739 : f32 to vector<16x128xf32>
    %741 = arith.addf %738, %740 : vector<16x128xf32>
    %742 = arith.negf %741 : vector<16x128xf32>
    %743 = math.exp %742 : vector<16x128xf32>
    %cst_443 = arith.constant 1.000000e+00 : f32
    %744 = vector.broadcast %cst_443 : f32 to vector<16x128xf32>
    %745 = arith.addf %744, %743 : vector<16x128xf32>
    %746 = arith.divf %744, %745 : vector<16x128xf32>
    %cst_444 = arith.constant 3.000000e+00 : f32
    %747 = vector.broadcast %cst_444 : f32 to vector<16x128xf32>
    %748 = arith.addf %746, %747 : vector<16x128xf32>
    %cst_445 = arith.constant 0.000000e+00 : f32
    %749 = vector.broadcast %cst_445 : f32 to vector<16x128xf32>
    %750 = arith.select %675, %749, %748 : vector<16x128xi1>, vector<16x128xf32>
    %c16_446 = arith.constant 16 : index
    %c0_447 = arith.constant 0 : index
    %c0_448 = arith.constant 0 : index
    %751 = vector.load %arg6[%c16_446, %c0_447, %c0_448] : memref<24x16x128xf32, #tpu.memory_space<vmem>>, vector<1x16x128xf32>
    %752 = vector.shape_cast %751 : vector<1x16x128xf32> to vector<16x128xf32>
    %753 = vector.shape_cast %750 : vector<16x128xf32> to vector<1x16x128xf32>
    tpu.vector_store %arg6[%c16_446, %c0_447, %c0_448], %753 {strides = array<i32>} : memref<24x16x128xf32, #tpu.memory_space<vmem>>, vector<1x16x128xf32>,
    %c3_449 = arith.constant 3 : index
    %c0_450 = arith.constant 0 : index
    %754 = memref.load %arg1[%c3_449, %c0_450] : memref<4x3xf32, #tpu.memory_space<smem>>
    %755 = vector.broadcast %754 : f32 to vector<16x128xf32>
    %756 = arith.mulf %755, %642 : vector<16x128xf32>
    %c3_451 = arith.constant 3 : index
    %c1_452 = arith.constant 1 : index
    %757 = memref.load %arg1[%c3_451, %c1_452] : memref<4x3xf32, #tpu.memory_space<smem>>
    %758 = vector.broadcast %757 : f32 to vector<16x128xf32>
    %759 = arith.mulf %758, %657 : vector<16x128xf32>
    %760 = arith.addf %756, %759 : vector<16x128xf32>
    %c3_453 = arith.constant 3 : index
    %c2_454 = arith.constant 2 : index
    %761 = memref.load %arg1[%c3_453, %c2_454] : memref<4x3xf32, #tpu.memory_space<smem>>
    %762 = vector.broadcast %761 : f32 to vector<16x128xf32>
    %763 = arith.mulf %762, %672 : vector<16x128xf32>
    %764 = arith.addf %760, %763 : vector<16x128xf32>
    %c3_455 = arith.constant 3 : index
    %765 = memref.load %arg2[%c3_455] : memref<4xf32, #tpu.memory_space<smem>>
    %766 = vector.broadcast %765 : f32 to vector<16x128xf32>
    %767 = arith.addf %764, %766 : vector<16x128xf32>
    %768 = arith.negf %767 : vector<16x128xf32>
    %769 = math.exp %768 : vector<16x128xf32>
    %cst_456 = arith.constant 1.000000e+00 : f32
    %770 = vector.broadcast %cst_456 : f32 to vector<16x128xf32>
    %771 = arith.addf %770, %769 : vector<16x128xf32>
    %772 = arith.divf %770, %771 : vector<16x128xf32>
    %cst_457 = arith.constant 3.000000e+00 : f32
    %773 = vector.broadcast %cst_457 : f32 to vector<16x128xf32>
    %774 = arith.addf %772, %773 : vector<16x128xf32>
    %cst_458 = arith.constant 0.000000e+00 : f32
    %775 = vector.broadcast %cst_458 : f32 to vector<16x128xf32>
    %776 = arith.select %675, %775, %774 : vector<16x128xi1>, vector<16x128xf32>
    %c22 = arith.constant 22 : index
    %c0_459 = arith.constant 0 : index
    %c0_460 = arith.constant 0 : index
    %777 = vector.load %arg6[%c22, %c0_459, %c0_460] : memref<24x16x128xf32, #tpu.memory_space<vmem>>, vector<1x16x128xf32>
    %778 = vector.shape_cast %777 : vector<1x16x128xf32> to vector<16x128xf32>
    %779 = vector.shape_cast %776 : vector<16x128xf32> to vector<1x16x128xf32>
    tpu.vector_store %arg6[%c22, %c0_459, %c0_460], %779 {strides = array<i32>} : memref<24x16x128xf32, #tpu.memory_space<vmem>>, vector<1x16x128xf32>,
    %c0_461 = arith.constant 0 : index
    %c0_462 = arith.constant 0 : index
    %c0_463 = arith.constant 0 : index
    %780 = vector.load %arg0[%c0_461, %c0_462, %c0_463] : memref<3x40x128xf32, #tpu.memory_space<vmem>>, vector<1x16x128xf32>
    %781 = vector.shape_cast %780 : vector<1x16x128xf32> to vector<16x128xf32>
    %c123_i32 = arith.constant 123 : i32
    %782 = tpu.dynamic_rotate %781 by %c123_i32 dim 1 : vector<16x128xf32>, i32 -> vector<16x128xf32>
    %c0_464 = arith.constant 0 : index
    %c8_465 = arith.constant 8 : index
    %c0_466 = arith.constant 0 : index
    %783 = vector.load %arg0[%c0_464, %c8_465, %c0_466] : memref<3x40x128xf32, #tpu.memory_space<vmem>>, vector<1x16x128xf32>
    %784 = vector.shape_cast %783 : vector<1x16x128xf32> to vector<16x128xf32>
    %c27_i32 = arith.constant 27 : i32
    %785 = tpu.dynamic_rotate %784 by %c27_i32 dim 1 : vector<16x128xf32>, i32 -> vector<16x128xf32>
    %786 = arith.select %15, %785, %782 : vector<16x128xi1>, vector<16x128xf32>
    %c0_467 = arith.constant 0 : index
    %c16_468 = arith.constant 16 : index
    %c0_469 = arith.constant 0 : index
    %787 = vector.load %arg0[%c0_467, %c16_468, %c0_469] : memref<3x40x128xf32, #tpu.memory_space<vmem>>, vector<1x16x128xf32>
    %788 = vector.shape_cast %787 : vector<1x16x128xf32> to vector<16x128xf32>
    %c59_i32 = arith.constant 59 : i32
    %789 = tpu.dynamic_rotate %788 by %c59_i32 dim 1 : vector<16x128xf32>, i32 -> vector<16x128xf32>
    %790 = arith.select %17, %789, %786 : vector<16x128xi1>, vector<16x128xf32>
    %c0_470 = arith.constant 0 : index
    %c24_471 = arith.constant 24 : index
    %c0_472 = arith.constant 0 : index
    %791 = vector.load %arg0[%c0_470, %c24_471, %c0_472] : memref<3x40x128xf32, #tpu.memory_space<vmem>>, vector<1x16x128xf32>
    %792 = vector.shape_cast %791 : vector<1x16x128xf32> to vector<16x128xf32>
    %c91_i32 = arith.constant 91 : i32
    %793 = tpu.dynamic_rotate %792 by %c91_i32 dim 1 : vector<16x128xf32>, i32 -> vector<16x128xf32>
    %794 = arith.select %19, %793, %790 : vector<16x128xi1>, vector<16x128xf32>
    %c1_473 = arith.constant 1 : index
    %c0_474 = arith.constant 0 : index
    %c0_475 = arith.constant 0 : index
    %795 = vector.load %arg0[%c1_473, %c0_474, %c0_475] : memref<3x40x128xf32, #tpu.memory_space<vmem>>, vector<1x16x128xf32>
    %796 = vector.shape_cast %795 : vector<1x16x128xf32> to vector<16x128xf32>
    %c123_i32_476 = arith.constant 123 : i32
    %797 = tpu.dynamic_rotate %796 by %c123_i32_476 dim 1 : vector<16x128xf32>, i32 -> vector<16x128xf32>
    %c1_477 = arith.constant 1 : index
    %c8_478 = arith.constant 8 : index
    %c0_479 = arith.constant 0 : index
    %798 = vector.load %arg0[%c1_477, %c8_478, %c0_479] : memref<3x40x128xf32, #tpu.memory_space<vmem>>, vector<1x16x128xf32>
    %799 = vector.shape_cast %798 : vector<1x16x128xf32> to vector<16x128xf32>
    %c27_i32_480 = arith.constant 27 : i32
    %800 = tpu.dynamic_rotate %799 by %c27_i32_480 dim 1 : vector<16x128xf32>, i32 -> vector<16x128xf32>
    %801 = arith.select %15, %800, %797 : vector<16x128xi1>, vector<16x128xf32>
    %c1_481 = arith.constant 1 : index
    %c16_482 = arith.constant 16 : index
    %c0_483 = arith.constant 0 : index
    %802 = vector.load %arg0[%c1_481, %c16_482, %c0_483] : memref<3x40x128xf32, #tpu.memory_space<vmem>>, vector<1x16x128xf32>
    %803 = vector.shape_cast %802 : vector<1x16x128xf32> to vector<16x128xf32>
    %c59_i32_484 = arith.constant 59 : i32
    %804 = tpu.dynamic_rotate %803 by %c59_i32_484 dim 1 : vector<16x128xf32>, i32 -> vector<16x128xf32>
    %805 = arith.select %17, %804, %801 : vector<16x128xi1>, vector<16x128xf32>
    %c1_485 = arith.constant 1 : index
    %c24_486 = arith.constant 24 : index
    %c0_487 = arith.constant 0 : index
    %806 = vector.load %arg0[%c1_485, %c24_486, %c0_487] : memref<3x40x128xf32, #tpu.memory_space<vmem>>, vector<1x16x128xf32>
    %807 = vector.shape_cast %806 : vector<1x16x128xf32> to vector<16x128xf32>
    %c91_i32_488 = arith.constant 91 : i32
    %808 = tpu.dynamic_rotate %807 by %c91_i32_488 dim 1 : vector<16x128xf32>, i32 -> vector<16x128xf32>
    %809 = arith.select %19, %808, %805 : vector<16x128xi1>, vector<16x128xf32>
    %c2_489 = arith.constant 2 : index
    %c0_490 = arith.constant 0 : index
    %c0_491 = arith.constant 0 : index
    %810 = vector.load %arg0[%c2_489, %c0_490, %c0_491] : memref<3x40x128xf32, #tpu.memory_space<vmem>>, vector<1x16x128xf32>
    %811 = vector.shape_cast %810 : vector<1x16x128xf32> to vector<16x128xf32>
    %c123_i32_492 = arith.constant 123 : i32
    %812 = tpu.dynamic_rotate %811 by %c123_i32_492 dim 1 : vector<16x128xf32>, i32 -> vector<16x128xf32>
    %c2_493 = arith.constant 2 : index
    %c8_494 = arith.constant 8 : index
    %c0_495 = arith.constant 0 : index
    %813 = vector.load %arg0[%c2_493, %c8_494, %c0_495] : memref<3x40x128xf32, #tpu.memory_space<vmem>>, vector<1x16x128xf32>
    %814 = vector.shape_cast %813 : vector<1x16x128xf32> to vector<16x128xf32>
    %c27_i32_496 = arith.constant 27 : i32
    %815 = tpu.dynamic_rotate %814 by %c27_i32_496 dim 1 : vector<16x128xf32>, i32 -> vector<16x128xf32>
    %816 = arith.select %15, %815, %812 : vector<16x128xi1>, vector<16x128xf32>
    %c2_497 = arith.constant 2 : index
    %c16_498 = arith.constant 16 : index
    %c0_499 = arith.constant 0 : index
    %817 = vector.load %arg0[%c2_497, %c16_498, %c0_499] : memref<3x40x128xf32, #tpu.memory_space<vmem>>, vector<1x16x128xf32>
    %818 = vector.shape_cast %817 : vector<1x16x128xf32> to vector<16x128xf32>
    %c59_i32_500 = arith.constant 59 : i32
    %819 = tpu.dynamic_rotate %818 by %c59_i32_500 dim 1 : vector<16x128xf32>, i32 -> vector<16x128xf32>
    %820 = arith.select %17, %819, %816 : vector<16x128xi1>, vector<16x128xf32>
    %c2_501 = arith.constant 2 : index
    %c24_502 = arith.constant 24 : index
    %c0_503 = arith.constant 0 : index
    %821 = vector.load %arg0[%c2_501, %c24_502, %c0_503] : memref<3x40x128xf32, #tpu.memory_space<vmem>>, vector<1x16x128xf32>
    %822 = vector.shape_cast %821 : vector<1x16x128xf32> to vector<16x128xf32>
    %c91_i32_504 = arith.constant 91 : i32
    %823 = tpu.dynamic_rotate %822 by %c91_i32_504 dim 1 : vector<16x128xf32>, i32 -> vector<16x128xf32>
    %824 = arith.select %19, %823, %820 : vector<16x128xi1>, vector<16x128xf32>
    %c30_i32_505 = arith.constant 30 : i32
    %825 = vector.broadcast %c30_i32_505 : i32 to vector<16x128xi32>
    %826 = arith.cmpi sge, %5, %825 : vector<16x128xi32>
    %827 = arith.ori %13, %826 : vector<16x128xi1>
    %c0_506 = arith.constant 0 : index
    %c0_507 = arith.constant 0 : index
    %828 = memref.load %arg1[%c0_506, %c0_507] : memref<4x3xf32, #tpu.memory_space<smem>>
    %829 = vector.broadcast %828 : f32 to vector<16x128xf32>
    %830 = arith.mulf %829, %794 : vector<16x128xf32>
    %c0_508 = arith.constant 0 : index
    %c1_509 = arith.constant 1 : index
    %831 = memref.load %arg1[%c0_508, %c1_509] : memref<4x3xf32, #tpu.memory_space<smem>>
    %832 = vector.broadcast %831 : f32 to vector<16x128xf32>
    %833 = arith.mulf %832, %809 : vector<16x128xf32>
    %834 = arith.addf %830, %833 : vector<16x128xf32>
    %c0_510 = arith.constant 0 : index
    %c2_511 = arith.constant 2 : index
    %835 = memref.load %arg1[%c0_510, %c2_511] : memref<4x3xf32, #tpu.memory_space<smem>>
    %836 = vector.broadcast %835 : f32 to vector<16x128xf32>
    %837 = arith.mulf %836, %824 : vector<16x128xf32>
    %838 = arith.addf %834, %837 : vector<16x128xf32>
    %c0_512 = arith.constant 0 : index
    %839 = memref.load %arg2[%c0_512] : memref<4xf32, #tpu.memory_space<smem>>
    %840 = vector.broadcast %839 : f32 to vector<16x128xf32>
    %841 = arith.addf %838, %840 : vector<16x128xf32>
    %842 = arith.negf %841 : vector<16x128xf32>
    %843 = math.exp %842 : vector<16x128xf32>
    %cst_513 = arith.constant 1.000000e+00 : f32
    %844 = vector.broadcast %cst_513 : f32 to vector<16x128xf32>
    %845 = arith.addf %844, %843 : vector<16x128xf32>
    %846 = arith.divf %844, %845 : vector<16x128xf32>
    %cst_514 = arith.constant 3.000000e+00 : f32
    %847 = vector.broadcast %cst_514 : f32 to vector<16x128xf32>
    %848 = arith.addf %846, %847 : vector<16x128xf32>
    %cst_515 = arith.constant 0.000000e+00 : f32
    %849 = vector.broadcast %cst_515 : f32 to vector<16x128xf32>
    %850 = arith.select %827, %849, %848 : vector<16x128xi1>, vector<16x128xf32>
    %c5 = arith.constant 5 : index
    %c0_516 = arith.constant 0 : index
    %c0_517 = arith.constant 0 : index
    %851 = vector.load %arg6[%c5, %c0_516, %c0_517] : memref<24x16x128xf32, #tpu.memory_space<vmem>>, vector<1x16x128xf32>
    %852 = vector.shape_cast %851 : vector<1x16x128xf32> to vector<16x128xf32>
    %853 = vector.shape_cast %850 : vector<16x128xf32> to vector<1x16x128xf32>
    tpu.vector_store %arg6[%c5, %c0_516, %c0_517], %853 {strides = array<i32>} : memref<24x16x128xf32, #tpu.memory_space<vmem>>, vector<1x16x128xf32>,
    %c1_518 = arith.constant 1 : index
    %c0_519 = arith.constant 0 : index
    %854 = memref.load %arg1[%c1_518, %c0_519] : memref<4x3xf32, #tpu.memory_space<smem>>
    %855 = vector.broadcast %854 : f32 to vector<16x128xf32>
    %856 = arith.mulf %855, %794 : vector<16x128xf32>
    %c1_520 = arith.constant 1 : index
    %c1_521 = arith.constant 1 : index
    %857 = memref.load %arg1[%c1_520, %c1_521] : memref<4x3xf32, #tpu.memory_space<smem>>
    %858 = vector.broadcast %857 : f32 to vector<16x128xf32>
    %859 = arith.mulf %858, %809 : vector<16x128xf32>
    %860 = arith.addf %856, %859 : vector<16x128xf32>
    %c1_522 = arith.constant 1 : index
    %c2_523 = arith.constant 2 : index
    %861 = memref.load %arg1[%c1_522, %c2_523] : memref<4x3xf32, #tpu.memory_space<smem>>
    %862 = vector.broadcast %861 : f32 to vector<16x128xf32>
    %863 = arith.mulf %862, %824 : vector<16x128xf32>
    %864 = arith.addf %860, %863 : vector<16x128xf32>
    %c1_524 = arith.constant 1 : index
    %865 = memref.load %arg2[%c1_524] : memref<4xf32, #tpu.memory_space<smem>>
    %866 = vector.broadcast %865 : f32 to vector<16x128xf32>
    %867 = arith.addf %864, %866 : vector<16x128xf32>
    %868 = arith.negf %867 : vector<16x128xf32>
    %869 = math.exp %868 : vector<16x128xf32>
    %cst_525 = arith.constant 1.000000e+00 : f32
    %870 = vector.broadcast %cst_525 : f32 to vector<16x128xf32>
    %871 = arith.addf %870, %869 : vector<16x128xf32>
    %872 = arith.divf %870, %871 : vector<16x128xf32>
    %cst_526 = arith.constant 3.000000e+00 : f32
    %873 = vector.broadcast %cst_526 : f32 to vector<16x128xf32>
    %874 = arith.addf %872, %873 : vector<16x128xf32>
    %cst_527 = arith.constant 0.000000e+00 : f32
    %875 = vector.broadcast %cst_527 : f32 to vector<16x128xf32>
    %876 = arith.select %827, %875, %874 : vector<16x128xi1>, vector<16x128xf32>
    %c11 = arith.constant 11 : index
    %c0_528 = arith.constant 0 : index
    %c0_529 = arith.constant 0 : index
    %877 = vector.load %arg6[%c11, %c0_528, %c0_529] : memref<24x16x128xf32, #tpu.memory_space<vmem>>, vector<1x16x128xf32>
    %878 = vector.shape_cast %877 : vector<1x16x128xf32> to vector<16x128xf32>
    %879 = vector.shape_cast %876 : vector<16x128xf32> to vector<1x16x128xf32>
    tpu.vector_store %arg6[%c11, %c0_528, %c0_529], %879 {strides = array<i32>} : memref<24x16x128xf32, #tpu.memory_space<vmem>>, vector<1x16x128xf32>,
    %c2_530 = arith.constant 2 : index
    %c0_531 = arith.constant 0 : index
    %880 = memref.load %arg1[%c2_530, %c0_531] : memref<4x3xf32, #tpu.memory_space<smem>>
    %881 = vector.broadcast %880 : f32 to vector<16x128xf32>
    %882 = arith.mulf %881, %794 : vector<16x128xf32>
    %c2_532 = arith.constant 2 : index
    %c1_533 = arith.constant 1 : index
    %883 = memref.load %arg1[%c2_532, %c1_533] : memref<4x3xf32, #tpu.memory_space<smem>>
    %884 = vector.broadcast %883 : f32 to vector<16x128xf32>
    %885 = arith.mulf %884, %809 : vector<16x128xf32>
    %886 = arith.addf %882, %885 : vector<16x128xf32>
    %c2_534 = arith.constant 2 : index
    %c2_535 = arith.constant 2 : index
    %887 = memref.load %arg1[%c2_534, %c2_535] : memref<4x3xf32, #tpu.memory_space<smem>>
    %888 = vector.broadcast %887 : f32 to vector<16x128xf32>
    %889 = arith.mulf %888, %824 : vector<16x128xf32>
    %890 = arith.addf %886, %889 : vector<16x128xf32>
    %c2_536 = arith.constant 2 : index
    %891 = memref.load %arg2[%c2_536] : memref<4xf32, #tpu.memory_space<smem>>
    %892 = vector.broadcast %891 : f32 to vector<16x128xf32>
    %893 = arith.addf %890, %892 : vector<16x128xf32>
    %894 = arith.negf %893 : vector<16x128xf32>
    %895 = math.exp %894 : vector<16x128xf32>
    %cst_537 = arith.constant 1.000000e+00 : f32
    %896 = vector.broadcast %cst_537 : f32 to vector<16x128xf32>
    %897 = arith.addf %896, %895 : vector<16x128xf32>
    %898 = arith.divf %896, %897 : vector<16x128xf32>
    %cst_538 = arith.constant 3.000000e+00 : f32
    %899 = vector.broadcast %cst_538 : f32 to vector<16x128xf32>
    %900 = arith.addf %898, %899 : vector<16x128xf32>
    %cst_539 = arith.constant 0.000000e+00 : f32
    %901 = vector.broadcast %cst_539 : f32 to vector<16x128xf32>
    %902 = arith.select %827, %901, %900 : vector<16x128xi1>, vector<16x128xf32>
    %c17 = arith.constant 17 : index
    %c0_540 = arith.constant 0 : index
    %c0_541 = arith.constant 0 : index
    %903 = vector.load %arg6[%c17, %c0_540, %c0_541] : memref<24x16x128xf32, #tpu.memory_space<vmem>>, vector<1x16x128xf32>
    %904 = vector.shape_cast %903 : vector<1x16x128xf32> to vector<16x128xf32>
    %905 = vector.shape_cast %902 : vector<16x128xf32> to vector<1x16x128xf32>
    tpu.vector_store %arg6[%c17, %c0_540, %c0_541], %905 {strides = array<i32>} : memref<24x16x128xf32, #tpu.memory_space<vmem>>, vector<1x16x128xf32>,
    %c3_542 = arith.constant 3 : index
    %c0_543 = arith.constant 0 : index
    %906 = memref.load %arg1[%c3_542, %c0_543] : memref<4x3xf32, #tpu.memory_space<smem>>
    %907 = vector.broadcast %906 : f32 to vector<16x128xf32>
    %908 = arith.mulf %907, %794 : vector<16x128xf32>
    %c3_544 = arith.constant 3 : index
    %c1_545 = arith.constant 1 : index
    %909 = memref.load %arg1[%c3_544, %c1_545] : memref<4x3xf32, #tpu.memory_space<smem>>
    %910 = vector.broadcast %909 : f32 to vector<16x128xf32>
    %911 = arith.mulf %910, %809 : vector<16x128xf32>
    %912 = arith.addf %908, %911 : vector<16x128xf32>
    %c3_546 = arith.constant 3 : index
    %c2_547 = arith.constant 2 : index
    %913 = memref.load %arg1[%c3_546, %c2_547] : memref<4x3xf32, #tpu.memory_space<smem>>
    %914 = vector.broadcast %913 : f32 to vector<16x128xf32>
    %915 = arith.mulf %914, %824 : vector<16x128xf32>
    %916 = arith.addf %912, %915 : vector<16x128xf32>
    %c3_548 = arith.constant 3 : index
    %917 = memref.load %arg2[%c3_548] : memref<4xf32, #tpu.memory_space<smem>>
    %918 = vector.broadcast %917 : f32 to vector<16x128xf32>
    %919 = arith.addf %916, %918 : vector<16x128xf32>
    %920 = arith.negf %919 : vector<16x128xf32>
    %921 = math.exp %920 : vector<16x128xf32>
    %cst_549 = arith.constant 1.000000e+00 : f32
    %922 = vector.broadcast %cst_549 : f32 to vector<16x128xf32>
    %923 = arith.addf %922, %921 : vector<16x128xf32>
    %924 = arith.divf %922, %923 : vector<16x128xf32>
    %cst_550 = arith.constant 3.000000e+00 : f32
    %925 = vector.broadcast %cst_550 : f32 to vector<16x128xf32>
    %926 = arith.addf %924, %925 : vector<16x128xf32>
    %cst_551 = arith.constant 0.000000e+00 : f32
    %927 = vector.broadcast %cst_551 : f32 to vector<16x128xf32>
    %928 = arith.select %827, %927, %926 : vector<16x128xi1>, vector<16x128xf32>
    %c23 = arith.constant 23 : index
    %c0_552 = arith.constant 0 : index
    %c0_553 = arith.constant 0 : index
    %929 = vector.load %arg6[%c23, %c0_552, %c0_553] : memref<24x16x128xf32, #tpu.memory_space<vmem>>, vector<1x16x128xf32>
    %930 = vector.shape_cast %929 : vector<1x16x128xf32> to vector<16x128xf32>
    %931 = vector.shape_cast %928 : vector<16x128xf32> to vector<1x16x128xf32>
    tpu.vector_store %arg6[%c23, %c0_552, %c0_553], %931 {strides = array<i32>} : memref<24x16x128xf32, #tpu.memory_space<vmem>>, vector<1x16x128xf32>,
    %cst_554 = arith.constant 0.000000e+00 : f32
    %932 = vector.broadcast %cst_554 : f32 to vector<8x128xf32>
    %cst_555 = arith.constant 0.000000e+00 : f32
    %933 = vector.broadcast %cst_555 : f32 to vector<8x128xf32>
    %cst_556 = arith.constant 0.000000e+00 : f32
    %934 = vector.broadcast %cst_556 : f32 to vector<8x128xf32>
    %cst_557 = arith.constant 0.000000e+00 : f32
    %935 = vector.broadcast %cst_557 : f32 to vector<8x128xf32>
    %cst_558 = arith.constant 0.000000e+00 : f32
    %936 = vector.broadcast %cst_558 : f32 to vector<8x128xf32>
    %cst_559 = arith.constant 0.000000e+00 : f32
    %937 = vector.broadcast %cst_559 : f32 to vector<8x128xf32>
    %cst_560 = arith.constant 0.000000e+00 : f32
    %938 = vector.broadcast %cst_560 : f32 to vector<8x128xf32>
    %cst_561 = arith.constant 0.000000e+00 : f32
    %939 = vector.broadcast %cst_561 : f32 to vector<8x128xf32>
    %c0_i32_562 = arith.constant 0 : i32
    %c12_i32 = arith.constant 12 : i32
    %940 = arith.addi %c0_i32_562, %c12_i32 : i32
    %c1_i32_563 = arith.constant 1 : i32
    %941:8 = scf.for %arg7 = %c0_i32_562 to %940 step %c1_i32_563 iter_args(%arg8 = %932, %arg9 = %933, %arg10 = %934, %arg11 = %935, %arg12 = %936, %arg13 = %937, %arg14 = %938, %arg15 = %939) -> (vector<8x128xf32>, vector<8x128xf32>, vector<8x128xf32>, vector<8x128xf32>, vector<8x128xf32>, vector<8x128xf32>, vector<8x128xf32>, vector<8x128xf32>)  : i32 {
      %c2_i32_605 = arith.constant 2 : i32
      %998 = arith.muli %arg7, %c2_i32_605 : i32
      %c0_i32_606 = arith.constant 0 : i32
      %999 = arith.addi %998, %c0_i32_606 : i32
      %1000 = arith.index_cast %999 : i32 to index
      %c0_607 = arith.constant 0 : index
      %c0_608 = arith.constant 0 : index
      %1001 = vector.load %arg6[%1000, %c0_607, %c0_608] : memref<24x16x128xf32, #tpu.memory_space<vmem>>, vector<1x8x128xf32>
      %1002 = vector.shape_cast %1001 : vector<1x8x128xf32> to vector<8x128xf32>
      %c6_i32 = arith.constant 6 : i32
      %1003 = arith.muli %999, %c6_i32 : i32
      %c0_i32_609 = arith.constant 0 : i32
      %1004 = arith.addi %1003, %c0_i32_609 : i32
      %c0_610 = arith.constant 0 : index
      %1005 = arith.index_cast %1004 : i32 to index
      %1006 = memref.load %arg3[%c0_610, %1005] : memref<8x144xf32, #tpu.memory_space<smem>>
      %1007 = vector.broadcast %1006 : f32 to vector<8x128xf32>
      %1008 = arith.mulf %1007, %1002 : vector<8x128xf32>
      %1009 = arith.addf %arg8, %1008 : vector<8x128xf32>
      %c1_611 = arith.constant 1 : index
      %1010 = arith.index_cast %1004 : i32 to index
      %1011 = memref.load %arg3[%c1_611, %1010] : memref<8x144xf32, #tpu.memory_space<smem>>
      %1012 = vector.broadcast %1011 : f32 to vector<8x128xf32>
      %1013 = arith.mulf %1012, %1002 : vector<8x128xf32>
      %1014 = arith.addf %arg9, %1013 : vector<8x128xf32>
      %c2_612 = arith.constant 2 : index
      %1015 = arith.index_cast %1004 : i32 to index
      %1016 = memref.load %arg3[%c2_612, %1015] : memref<8x144xf32, #tpu.memory_space<smem>>
      %1017 = vector.broadcast %1016 : f32 to vector<8x128xf32>
      %1018 = arith.mulf %1017, %1002 : vector<8x128xf32>
      %1019 = arith.addf %arg10, %1018 : vector<8x128xf32>
      %c3_613 = arith.constant 3 : index
      %1020 = arith.index_cast %1004 : i32 to index
      %1021 = memref.load %arg3[%c3_613, %1020] : memref<8x144xf32, #tpu.memory_space<smem>>
      %1022 = vector.broadcast %1021 : f32 to vector<8x128xf32>
      %1023 = arith.mulf %1022, %1002 : vector<8x128xf32>
      %1024 = arith.addf %arg11, %1023 : vector<8x128xf32>
      %c4_614 = arith.constant 4 : index
      %1025 = arith.index_cast %1004 : i32 to index
      %1026 = memref.load %arg3[%c4_614, %1025] : memref<8x144xf32, #tpu.memory_space<smem>>
      %1027 = vector.broadcast %1026 : f32 to vector<8x128xf32>
      %1028 = arith.mulf %1027, %1002 : vector<8x128xf32>
      %1029 = arith.addf %arg12, %1028 : vector<8x128xf32>
      %c5_615 = arith.constant 5 : index
      %1030 = arith.index_cast %1004 : i32 to index
      %1031 = memref.load %arg3[%c5_615, %1030] : memref<8x144xf32, #tpu.memory_space<smem>>
      %1032 = vector.broadcast %1031 : f32 to vector<8x128xf32>
      %1033 = arith.mulf %1032, %1002 : vector<8x128xf32>
      %1034 = arith.addf %arg13, %1033 : vector<8x128xf32>
      %c6_616 = arith.constant 6 : index
      %1035 = arith.index_cast %1004 : i32 to index
      %1036 = memref.load %arg3[%c6_616, %1035] : memref<8x144xf32, #tpu.memory_space<smem>>
      %1037 = vector.broadcast %1036 : f32 to vector<8x128xf32>
      %1038 = arith.mulf %1037, %1002 : vector<8x128xf32>
      %1039 = arith.addf %arg14, %1038 : vector<8x128xf32>
      %c7_617 = arith.constant 7 : index
      %1040 = arith.index_cast %1004 : i32 to index
      %1041 = memref.load %arg3[%c7_617, %1040] : memref<8x144xf32, #tpu.memory_space<smem>>
      %1042 = vector.broadcast %1041 : f32 to vector<8x128xf32>
      %1043 = arith.mulf %1042, %1002 : vector<8x128xf32>
      %1044 = arith.addf %arg15, %1043 : vector<8x128xf32>
      %1045 = arith.index_cast %999 : i32 to index
      %c1_618 = arith.constant 1 : index
      %c0_619 = arith.constant 0 : index
      %1046 = vector.load %arg6[%1045, %c1_618, %c0_619] : memref<24x16x128xf32, #tpu.memory_space<vmem>>, vector<1x8x128xf32>
      %1047 = vector.shape_cast %1046 : vector<1x8x128xf32> to vector<8x128xf32>
      %c6_i32_620 = arith.constant 6 : i32
      %1048 = arith.muli %999, %c6_i32_620 : i32
      %c1_i32_621 = arith.constant 1 : i32
      %1049 = arith.addi %1048, %c1_i32_621 : i32
      %c0_622 = arith.constant 0 : index
      %1050 = arith.index_cast %1049 : i32 to index
      %1051 = memref.load %arg3[%c0_622, %1050] : memref<8x144xf32, #tpu.memory_space<smem>>
      %1052 = vector.broadcast %1051 : f32 to vector<8x128xf32>
      %1053 = arith.mulf %1052, %1047 : vector<8x128xf32>
      %1054 = arith.addf %1009, %1053 : vector<8x128xf32>
      %c1_623 = arith.constant 1 : index
      %1055 = arith.index_cast %1049 : i32 to index
      %1056 = memref.load %arg3[%c1_623, %1055] : memref<8x144xf32, #tpu.memory_space<smem>>
      %1057 = vector.broadcast %1056 : f32 to vector<8x128xf32>
      %1058 = arith.mulf %1057, %1047 : vector<8x128xf32>
      %1059 = arith.addf %1014, %1058 : vector<8x128xf32>
      %c2_624 = arith.constant 2 : index
      %1060 = arith.index_cast %1049 : i32 to index
      %1061 = memref.load %arg3[%c2_624, %1060] : memref<8x144xf32, #tpu.memory_space<smem>>
      %1062 = vector.broadcast %1061 : f32 to vector<8x128xf32>
      %1063 = arith.mulf %1062, %1047 : vector<8x128xf32>
      %1064 = arith.addf %1019, %1063 : vector<8x128xf32>
      %c3_625 = arith.constant 3 : index
      %1065 = arith.index_cast %1049 : i32 to index
      %1066 = memref.load %arg3[%c3_625, %1065] : memref<8x144xf32, #tpu.memory_space<smem>>
      %1067 = vector.broadcast %1066 : f32 to vector<8x128xf32>
      %1068 = arith.mulf %1067, %1047 : vector<8x128xf32>
      %1069 = arith.addf %1024, %1068 : vector<8x128xf32>
      %c4_626 = arith.constant 4 : index
      %1070 = arith.index_cast %1049 : i32 to index
      %1071 = memref.load %arg3[%c4_626, %1070] : memref<8x144xf32, #tpu.memory_space<smem>>
      %1072 = vector.broadcast %1071 : f32 to vector<8x128xf32>
      %1073 = arith.mulf %1072, %1047 : vector<8x128xf32>
      %1074 = arith.addf %1029, %1073 : vector<8x128xf32>
      %c5_627 = arith.constant 5 : index
      %1075 = arith.index_cast %1049 : i32 to index
      %1076 = memref.load %arg3[%c5_627, %1075] : memref<8x144xf32, #tpu.memory_space<smem>>
      %1077 = vector.broadcast %1076 : f32 to vector<8x128xf32>
      %1078 = arith.mulf %1077, %1047 : vector<8x128xf32>
      %1079 = arith.addf %1034, %1078 : vector<8x128xf32>
      %c6_628 = arith.constant 6 : index
      %1080 = arith.index_cast %1049 : i32 to index
      %1081 = memref.load %arg3[%c6_628, %1080] : memref<8x144xf32, #tpu.memory_space<smem>>
      %1082 = vector.broadcast %1081 : f32 to vector<8x128xf32>
      %1083 = arith.mulf %1082, %1047 : vector<8x128xf32>
      %1084 = arith.addf %1039, %1083 : vector<8x128xf32>
      %c7_629 = arith.constant 7 : index
      %1085 = arith.index_cast %1049 : i32 to index
      %1086 = memref.load %arg3[%c7_629, %1085] : memref<8x144xf32, #tpu.memory_space<smem>>
      %1087 = vector.broadcast %1086 : f32 to vector<8x128xf32>
      %1088 = arith.mulf %1087, %1047 : vector<8x128xf32>
      %1089 = arith.addf %1044, %1088 : vector<8x128xf32>
      %1090 = arith.index_cast %999 : i32 to index
      %c2_630 = arith.constant 2 : index
      %c0_631 = arith.constant 0 : index
      %1091 = vector.load %arg6[%1090, %c2_630, %c0_631] : memref<24x16x128xf32, #tpu.memory_space<vmem>>, vector<1x8x128xf32>
      %1092 = vector.shape_cast %1091 : vector<1x8x128xf32> to vector<8x128xf32>
      %c6_i32_632 = arith.constant 6 : i32
      %1093 = arith.muli %999, %c6_i32_632 : i32
      %c2_i32_633 = arith.constant 2 : i32
      %1094 = arith.addi %1093, %c2_i32_633 : i32
      %c0_634 = arith.constant 0 : index
      %1095 = arith.index_cast %1094 : i32 to index
      %1096 = memref.load %arg3[%c0_634, %1095] : memref<8x144xf32, #tpu.memory_space<smem>>
      %1097 = vector.broadcast %1096 : f32 to vector<8x128xf32>
      %1098 = arith.mulf %1097, %1092 : vector<8x128xf32>
      %1099 = arith.addf %1054, %1098 : vector<8x128xf32>
      %c1_635 = arith.constant 1 : index
      %1100 = arith.index_cast %1094 : i32 to index
      %1101 = memref.load %arg3[%c1_635, %1100] : memref<8x144xf32, #tpu.memory_space<smem>>
      %1102 = vector.broadcast %1101 : f32 to vector<8x128xf32>
      %1103 = arith.mulf %1102, %1092 : vector<8x128xf32>
      %1104 = arith.addf %1059, %1103 : vector<8x128xf32>
      %c2_636 = arith.constant 2 : index
      %1105 = arith.index_cast %1094 : i32 to index
      %1106 = memref.load %arg3[%c2_636, %1105] : memref<8x144xf32, #tpu.memory_space<smem>>
      %1107 = vector.broadcast %1106 : f32 to vector<8x128xf32>
      %1108 = arith.mulf %1107, %1092 : vector<8x128xf32>
      %1109 = arith.addf %1064, %1108 : vector<8x128xf32>
      %c3_637 = arith.constant 3 : index
      %1110 = arith.index_cast %1094 : i32 to index
      %1111 = memref.load %arg3[%c3_637, %1110] : memref<8x144xf32, #tpu.memory_space<smem>>
      %1112 = vector.broadcast %1111 : f32 to vector<8x128xf32>
      %1113 = arith.mulf %1112, %1092 : vector<8x128xf32>
      %1114 = arith.addf %1069, %1113 : vector<8x128xf32>
      %c4_638 = arith.constant 4 : index
      %1115 = arith.index_cast %1094 : i32 to index
      %1116 = memref.load %arg3[%c4_638, %1115] : memref<8x144xf32, #tpu.memory_space<smem>>
      %1117 = vector.broadcast %1116 : f32 to vector<8x128xf32>
      %1118 = arith.mulf %1117, %1092 : vector<8x128xf32>
      %1119 = arith.addf %1074, %1118 : vector<8x128xf32>
      %c5_639 = arith.constant 5 : index
      %1120 = arith.index_cast %1094 : i32 to index
      %1121 = memref.load %arg3[%c5_639, %1120] : memref<8x144xf32, #tpu.memory_space<smem>>
      %1122 = vector.broadcast %1121 : f32 to vector<8x128xf32>
      %1123 = arith.mulf %1122, %1092 : vector<8x128xf32>
      %1124 = arith.addf %1079, %1123 : vector<8x128xf32>
      %c6_640 = arith.constant 6 : index
      %1125 = arith.index_cast %1094 : i32 to index
      %1126 = memref.load %arg3[%c6_640, %1125] : memref<8x144xf32, #tpu.memory_space<smem>>
      %1127 = vector.broadcast %1126 : f32 to vector<8x128xf32>
      %1128 = arith.mulf %1127, %1092 : vector<8x128xf32>
      %1129 = arith.addf %1084, %1128 : vector<8x128xf32>
      %c7_641 = arith.constant 7 : index
      %1130 = arith.index_cast %1094 : i32 to index
      %1131 = memref.load %arg3[%c7_641, %1130] : memref<8x144xf32, #tpu.memory_space<smem>>
      %1132 = vector.broadcast %1131 : f32 to vector<8x128xf32>
      %1133 = arith.mulf %1132, %1092 : vector<8x128xf32>
      %1134 = arith.addf %1089, %1133 : vector<8x128xf32>
      %1135 = arith.index_cast %999 : i32 to index
      %c3_642 = arith.constant 3 : index
      %c0_643 = arith.constant 0 : index
      %1136 = vector.load %arg6[%1135, %c3_642, %c0_643] : memref<24x16x128xf32, #tpu.memory_space<vmem>>, vector<1x8x128xf32>
      %1137 = vector.shape_cast %1136 : vector<1x8x128xf32> to vector<8x128xf32>
      %c6_i32_644 = arith.constant 6 : i32
      %1138 = arith.muli %999, %c6_i32_644 : i32
      %c3_i32_645 = arith.constant 3 : i32
      %1139 = arith.addi %1138, %c3_i32_645 : i32
      %c0_646 = arith.constant 0 : index
      %1140 = arith.index_cast %1139 : i32 to index
      %1141 = memref.load %arg3[%c0_646, %1140] : memref<8x144xf32, #tpu.memory_space<smem>>
      %1142 = vector.broadcast %1141 : f32 to vector<8x128xf32>
      %1143 = arith.mulf %1142, %1137 : vector<8x128xf32>
      %1144 = arith.addf %1099, %1143 : vector<8x128xf32>
      %c1_647 = arith.constant 1 : index
      %1145 = arith.index_cast %1139 : i32 to index
      %1146 = memref.load %arg3[%c1_647, %1145] : memref<8x144xf32, #tpu.memory_space<smem>>
      %1147 = vector.broadcast %1146 : f32 to vector<8x128xf32>
      %1148 = arith.mulf %1147, %1137 : vector<8x128xf32>
      %1149 = arith.addf %1104, %1148 : vector<8x128xf32>
      %c2_648 = arith.constant 2 : index
      %1150 = arith.index_cast %1139 : i32 to index
      %1151 = memref.load %arg3[%c2_648, %1150] : memref<8x144xf32, #tpu.memory_space<smem>>
      %1152 = vector.broadcast %1151 : f32 to vector<8x128xf32>
      %1153 = arith.mulf %1152, %1137 : vector<8x128xf32>
      %1154 = arith.addf %1109, %1153 : vector<8x128xf32>
      %c3_649 = arith.constant 3 : index
      %1155 = arith.index_cast %1139 : i32 to index
      %1156 = memref.load %arg3[%c3_649, %1155] : memref<8x144xf32, #tpu.memory_space<smem>>
      %1157 = vector.broadcast %1156 : f32 to vector<8x128xf32>
      %1158 = arith.mulf %1157, %1137 : vector<8x128xf32>
      %1159 = arith.addf %1114, %1158 : vector<8x128xf32>
      %c4_650 = arith.constant 4 : index
      %1160 = arith.index_cast %1139 : i32 to index
      %1161 = memref.load %arg3[%c4_650, %1160] : memref<8x144xf32, #tpu.memory_space<smem>>
      %1162 = vector.broadcast %1161 : f32 to vector<8x128xf32>
      %1163 = arith.mulf %1162, %1137 : vector<8x128xf32>
      %1164 = arith.addf %1119, %1163 : vector<8x128xf32>
      %c5_651 = arith.constant 5 : index
      %1165 = arith.index_cast %1139 : i32 to index
      %1166 = memref.load %arg3[%c5_651, %1165] : memref<8x144xf32, #tpu.memory_space<smem>>
      %1167 = vector.broadcast %1166 : f32 to vector<8x128xf32>
      %1168 = arith.mulf %1167, %1137 : vector<8x128xf32>
      %1169 = arith.addf %1124, %1168 : vector<8x128xf32>
      %c6_652 = arith.constant 6 : index
      %1170 = arith.index_cast %1139 : i32 to index
      %1171 = memref.load %arg3[%c6_652, %1170] : memref<8x144xf32, #tpu.memory_space<smem>>
      %1172 = vector.broadcast %1171 : f32 to vector<8x128xf32>
      %1173 = arith.mulf %1172, %1137 : vector<8x128xf32>
      %1174 = arith.addf %1129, %1173 : vector<8x128xf32>
      %c7_653 = arith.constant 7 : index
      %1175 = arith.index_cast %1139 : i32 to index
      %1176 = memref.load %arg3[%c7_653, %1175] : memref<8x144xf32, #tpu.memory_space<smem>>
      %1177 = vector.broadcast %1176 : f32 to vector<8x128xf32>
      %1178 = arith.mulf %1177, %1137 : vector<8x128xf32>
      %1179 = arith.addf %1134, %1178 : vector<8x128xf32>
      %1180 = arith.index_cast %999 : i32 to index
      %c4_654 = arith.constant 4 : index
      %c0_655 = arith.constant 0 : index
      %1181 = vector.load %arg6[%1180, %c4_654, %c0_655] : memref<24x16x128xf32, #tpu.memory_space<vmem>>, vector<1x8x128xf32>
      %1182 = vector.shape_cast %1181 : vector<1x8x128xf32> to vector<8x128xf32>
      %c6_i32_656 = arith.constant 6 : i32
      %1183 = arith.muli %999, %c6_i32_656 : i32
      %c4_i32 = arith.constant 4 : i32
      %1184 = arith.addi %1183, %c4_i32 : i32
      %c0_657 = arith.constant 0 : index
      %1185 = arith.index_cast %1184 : i32 to index
      %1186 = memref.load %arg3[%c0_657, %1185] : memref<8x144xf32, #tpu.memory_space<smem>>
      %1187 = vector.broadcast %1186 : f32 to vector<8x128xf32>
      %1188 = arith.mulf %1187, %1182 : vector<8x128xf32>
      %1189 = arith.addf %1144, %1188 : vector<8x128xf32>
      %c1_658 = arith.constant 1 : index
      %1190 = arith.index_cast %1184 : i32 to index
      %1191 = memref.load %arg3[%c1_658, %1190] : memref<8x144xf32, #tpu.memory_space<smem>>
      %1192 = vector.broadcast %1191 : f32 to vector<8x128xf32>
      %1193 = arith.mulf %1192, %1182 : vector<8x128xf32>
      %1194 = arith.addf %1149, %1193 : vector<8x128xf32>
      %c2_659 = arith.constant 2 : index
      %1195 = arith.index_cast %1184 : i32 to index
      %1196 = memref.load %arg3[%c2_659, %1195] : memref<8x144xf32, #tpu.memory_space<smem>>
      %1197 = vector.broadcast %1196 : f32 to vector<8x128xf32>
      %1198 = arith.mulf %1197, %1182 : vector<8x128xf32>
      %1199 = arith.addf %1154, %1198 : vector<8x128xf32>
      %c3_660 = arith.constant 3 : index
      %1200 = arith.index_cast %1184 : i32 to index
      %1201 = memref.load %arg3[%c3_660, %1200] : memref<8x144xf32, #tpu.memory_space<smem>>
      %1202 = vector.broadcast %1201 : f32 to vector<8x128xf32>
      %1203 = arith.mulf %1202, %1182 : vector<8x128xf32>
      %1204 = arith.addf %1159, %1203 : vector<8x128xf32>
      %c4_661 = arith.constant 4 : index
      %1205 = arith.index_cast %1184 : i32 to index
      %1206 = memref.load %arg3[%c4_661, %1205] : memref<8x144xf32, #tpu.memory_space<smem>>
      %1207 = vector.broadcast %1206 : f32 to vector<8x128xf32>
      %1208 = arith.mulf %1207, %1182 : vector<8x128xf32>
      %1209 = arith.addf %1164, %1208 : vector<8x128xf32>
      %c5_662 = arith.constant 5 : index
      %1210 = arith.index_cast %1184 : i32 to index
      %1211 = memref.load %arg3[%c5_662, %1210] : memref<8x144xf32, #tpu.memory_space<smem>>
      %1212 = vector.broadcast %1211 : f32 to vector<8x128xf32>
      %1213 = arith.mulf %1212, %1182 : vector<8x128xf32>
      %1214 = arith.addf %1169, %1213 : vector<8x128xf32>
      %c6_663 = arith.constant 6 : index
      %1215 = arith.index_cast %1184 : i32 to index
      %1216 = memref.load %arg3[%c6_663, %1215] : memref<8x144xf32, #tpu.memory_space<smem>>
      %1217 = vector.broadcast %1216 : f32 to vector<8x128xf32>
      %1218 = arith.mulf %1217, %1182 : vector<8x128xf32>
      %1219 = arith.addf %1174, %1218 : vector<8x128xf32>
      %c7_664 = arith.constant 7 : index
      %1220 = arith.index_cast %1184 : i32 to index
      %1221 = memref.load %arg3[%c7_664, %1220] : memref<8x144xf32, #tpu.memory_space<smem>>
      %1222 = vector.broadcast %1221 : f32 to vector<8x128xf32>
      %1223 = arith.mulf %1222, %1182 : vector<8x128xf32>
      %1224 = arith.addf %1179, %1223 : vector<8x128xf32>
      %1225 = arith.index_cast %999 : i32 to index
      %c5_665 = arith.constant 5 : index
      %c0_666 = arith.constant 0 : index
      %1226 = vector.load %arg6[%1225, %c5_665, %c0_666] : memref<24x16x128xf32, #tpu.memory_space<vmem>>, vector<1x8x128xf32>
      %1227 = vector.shape_cast %1226 : vector<1x8x128xf32> to vector<8x128xf32>
      %c6_i32_667 = arith.constant 6 : i32
      %1228 = arith.muli %999, %c6_i32_667 : i32
      %c5_i32_668 = arith.constant 5 : i32
      %1229 = arith.addi %1228, %c5_i32_668 : i32
      %c0_669 = arith.constant 0 : index
      %1230 = arith.index_cast %1229 : i32 to index
      %1231 = memref.load %arg3[%c0_669, %1230] : memref<8x144xf32, #tpu.memory_space<smem>>
      %1232 = vector.broadcast %1231 : f32 to vector<8x128xf32>
      %1233 = arith.mulf %1232, %1227 : vector<8x128xf32>
      %1234 = arith.addf %1189, %1233 : vector<8x128xf32>
      %c1_670 = arith.constant 1 : index
      %1235 = arith.index_cast %1229 : i32 to index
      %1236 = memref.load %arg3[%c1_670, %1235] : memref<8x144xf32, #tpu.memory_space<smem>>
      %1237 = vector.broadcast %1236 : f32 to vector<8x128xf32>
      %1238 = arith.mulf %1237, %1227 : vector<8x128xf32>
      %1239 = arith.addf %1194, %1238 : vector<8x128xf32>
      %c2_671 = arith.constant 2 : index
      %1240 = arith.index_cast %1229 : i32 to index
      %1241 = memref.load %arg3[%c2_671, %1240] : memref<8x144xf32, #tpu.memory_space<smem>>
      %1242 = vector.broadcast %1241 : f32 to vector<8x128xf32>
      %1243 = arith.mulf %1242, %1227 : vector<8x128xf32>
      %1244 = arith.addf %1199, %1243 : vector<8x128xf32>
      %c3_672 = arith.constant 3 : index
      %1245 = arith.index_cast %1229 : i32 to index
      %1246 = memref.load %arg3[%c3_672, %1245] : memref<8x144xf32, #tpu.memory_space<smem>>
      %1247 = vector.broadcast %1246 : f32 to vector<8x128xf32>
      %1248 = arith.mulf %1247, %1227 : vector<8x128xf32>
      %1249 = arith.addf %1204, %1248 : vector<8x128xf32>
      %c4_673 = arith.constant 4 : index
      %1250 = arith.index_cast %1229 : i32 to index
      %1251 = memref.load %arg3[%c4_673, %1250] : memref<8x144xf32, #tpu.memory_space<smem>>
      %1252 = vector.broadcast %1251 : f32 to vector<8x128xf32>
      %1253 = arith.mulf %1252, %1227 : vector<8x128xf32>
      %1254 = arith.addf %1209, %1253 : vector<8x128xf32>
      %c5_674 = arith.constant 5 : index
      %1255 = arith.index_cast %1229 : i32 to index
      %1256 = memref.load %arg3[%c5_674, %1255] : memref<8x144xf32, #tpu.memory_space<smem>>
      %1257 = vector.broadcast %1256 : f32 to vector<8x128xf32>
      %1258 = arith.mulf %1257, %1227 : vector<8x128xf32>
      %1259 = arith.addf %1214, %1258 : vector<8x128xf32>
      %c6_675 = arith.constant 6 : index
      %1260 = arith.index_cast %1229 : i32 to index
      %1261 = memref.load %arg3[%c6_675, %1260] : memref<8x144xf32, #tpu.memory_space<smem>>
      %1262 = vector.broadcast %1261 : f32 to vector<8x128xf32>
      %1263 = arith.mulf %1262, %1227 : vector<8x128xf32>
      %1264 = arith.addf %1219, %1263 : vector<8x128xf32>
      %c7_676 = arith.constant 7 : index
      %1265 = arith.index_cast %1229 : i32 to index
      %1266 = memref.load %arg3[%c7_676, %1265] : memref<8x144xf32, #tpu.memory_space<smem>>
      %1267 = vector.broadcast %1266 : f32 to vector<8x128xf32>
      %1268 = arith.mulf %1267, %1227 : vector<8x128xf32>
      %1269 = arith.addf %1224, %1268 : vector<8x128xf32>
      %c2_i32_677 = arith.constant 2 : i32
      %1270 = arith.muli %arg7, %c2_i32_677 : i32
      %c1_i32_678 = arith.constant 1 : i32
      %1271 = arith.addi %1270, %c1_i32_678 : i32
      %1272 = arith.index_cast %1271 : i32 to index
      %c0_679 = arith.constant 0 : index
      %c0_680 = arith.constant 0 : index
      %1273 = vector.load %arg6[%1272, %c0_679, %c0_680] : memref<24x16x128xf32, #tpu.memory_space<vmem>>, vector<1x8x128xf32>
      %1274 = vector.shape_cast %1273 : vector<1x8x128xf32> to vector<8x128xf32>
      %c6_i32_681 = arith.constant 6 : i32
      %1275 = arith.muli %1271, %c6_i32_681 : i32
      %c0_i32_682 = arith.constant 0 : i32
      %1276 = arith.addi %1275, %c0_i32_682 : i32
      %c0_683 = arith.constant 0 : index
      %1277 = arith.index_cast %1276 : i32 to index
      %1278 = memref.load %arg3[%c0_683, %1277] : memref<8x144xf32, #tpu.memory_space<smem>>
      %1279 = vector.broadcast %1278 : f32 to vector<8x128xf32>
      %1280 = arith.mulf %1279, %1274 : vector<8x128xf32>
      %1281 = arith.addf %1234, %1280 : vector<8x128xf32>
      %c1_684 = arith.constant 1 : index
      %1282 = arith.index_cast %1276 : i32 to index
      %1283 = memref.load %arg3[%c1_684, %1282] : memref<8x144xf32, #tpu.memory_space<smem>>
      %1284 = vector.broadcast %1283 : f32 to vector<8x128xf32>
      %1285 = arith.mulf %1284, %1274 : vector<8x128xf32>
      %1286 = arith.addf %1239, %1285 : vector<8x128xf32>
      %c2_685 = arith.constant 2 : index
      %1287 = arith.index_cast %1276 : i32 to index
      %1288 = memref.load %arg3[%c2_685, %1287] : memref<8x144xf32, #tpu.memory_space<smem>>
      %1289 = vector.broadcast %1288 : f32 to vector<8x128xf32>
      %1290 = arith.mulf %1289, %1274 : vector<8x128xf32>
      %1291 = arith.addf %1244, %1290 : vector<8x128xf32>
      %c3_686 = arith.constant 3 : index
      %1292 = arith.index_cast %1276 : i32 to index
      %1293 = memref.load %arg3[%c3_686, %1292] : memref<8x144xf32, #tpu.memory_space<smem>>
      %1294 = vector.broadcast %1293 : f32 to vector<8x128xf32>
      %1295 = arith.mulf %1294, %1274 : vector<8x128xf32>
      %1296 = arith.addf %1249, %1295 : vector<8x128xf32>
      %c4_687 = arith.constant 4 : index
      %1297 = arith.index_cast %1276 : i32 to index
      %1298 = memref.load %arg3[%c4_687, %1297] : memref<8x144xf32, #tpu.memory_space<smem>>
      %1299 = vector.broadcast %1298 : f32 to vector<8x128xf32>
      %1300 = arith.mulf %1299, %1274 : vector<8x128xf32>
      %1301 = arith.addf %1254, %1300 : vector<8x128xf32>
      %c5_688 = arith.constant 5 : index
      %1302 = arith.index_cast %1276 : i32 to index
      %1303 = memref.load %arg3[%c5_688, %1302] : memref<8x144xf32, #tpu.memory_space<smem>>
      %1304 = vector.broadcast %1303 : f32 to vector<8x128xf32>
      %1305 = arith.mulf %1304, %1274 : vector<8x128xf32>
      %1306 = arith.addf %1259, %1305 : vector<8x128xf32>
      %c6_689 = arith.constant 6 : index
      %1307 = arith.index_cast %1276 : i32 to index
      %1308 = memref.load %arg3[%c6_689, %1307] : memref<8x144xf32, #tpu.memory_space<smem>>
      %1309 = vector.broadcast %1308 : f32 to vector<8x128xf32>
      %1310 = arith.mulf %1309, %1274 : vector<8x128xf32>
      %1311 = arith.addf %1264, %1310 : vector<8x128xf32>
      %c7_690 = arith.constant 7 : index
      %1312 = arith.index_cast %1276 : i32 to index
      %1313 = memref.load %arg3[%c7_690, %1312] : memref<8x144xf32, #tpu.memory_space<smem>>
      %1314 = vector.broadcast %1313 : f32 to vector<8x128xf32>
      %1315 = arith.mulf %1314, %1274 : vector<8x128xf32>
      %1316 = arith.addf %1269, %1315 : vector<8x128xf32>
      %1317 = arith.index_cast %1271 : i32 to index
      %c1_691 = arith.constant 1 : index
      %c0_692 = arith.constant 0 : index
      %1318 = vector.load %arg6[%1317, %c1_691, %c0_692] : memref<24x16x128xf32, #tpu.memory_space<vmem>>, vector<1x8x128xf32>
      %1319 = vector.shape_cast %1318 : vector<1x8x128xf32> to vector<8x128xf32>
      %c6_i32_693 = arith.constant 6 : i32
      %1320 = arith.muli %1271, %c6_i32_693 : i32
      %c1_i32_694 = arith.constant 1 : i32
      %1321 = arith.addi %1320, %c1_i32_694 : i32
      %c0_695 = arith.constant 0 : index
      %1322 = arith.index_cast %1321 : i32 to index
      %1323 = memref.load %arg3[%c0_695, %1322] : memref<8x144xf32, #tpu.memory_space<smem>>
      %1324 = vector.broadcast %1323 : f32 to vector<8x128xf32>
      %1325 = arith.mulf %1324, %1319 : vector<8x128xf32>
      %1326 = arith.addf %1281, %1325 : vector<8x128xf32>
      %c1_696 = arith.constant 1 : index
      %1327 = arith.index_cast %1321 : i32 to index
      %1328 = memref.load %arg3[%c1_696, %1327] : memref<8x144xf32, #tpu.memory_space<smem>>
      %1329 = vector.broadcast %1328 : f32 to vector<8x128xf32>
      %1330 = arith.mulf %1329, %1319 : vector<8x128xf32>
      %1331 = arith.addf %1286, %1330 : vector<8x128xf32>
      %c2_697 = arith.constant 2 : index
      %1332 = arith.index_cast %1321 : i32 to index
      %1333 = memref.load %arg3[%c2_697, %1332] : memref<8x144xf32, #tpu.memory_space<smem>>
      %1334 = vector.broadcast %1333 : f32 to vector<8x128xf32>
      %1335 = arith.mulf %1334, %1319 : vector<8x128xf32>
      %1336 = arith.addf %1291, %1335 : vector<8x128xf32>
      %c3_698 = arith.constant 3 : index
      %1337 = arith.index_cast %1321 : i32 to index
      %1338 = memref.load %arg3[%c3_698, %1337] : memref<8x144xf32, #tpu.memory_space<smem>>
      %1339 = vector.broadcast %1338 : f32 to vector<8x128xf32>
      %1340 = arith.mulf %1339, %1319 : vector<8x128xf32>
      %1341 = arith.addf %1296, %1340 : vector<8x128xf32>
      %c4_699 = arith.constant 4 : index
      %1342 = arith.index_cast %1321 : i32 to index
      %1343 = memref.load %arg3[%c4_699, %1342] : memref<8x144xf32, #tpu.memory_space<smem>>
      %1344 = vector.broadcast %1343 : f32 to vector<8x128xf32>
      %1345 = arith.mulf %1344, %1319 : vector<8x128xf32>
      %1346 = arith.addf %1301, %1345 : vector<8x128xf32>
      %c5_700 = arith.constant 5 : index
      %1347 = arith.index_cast %1321 : i32 to index
      %1348 = memref.load %arg3[%c5_700, %1347] : memref<8x144xf32, #tpu.memory_space<smem>>
      %1349 = vector.broadcast %1348 : f32 to vector<8x128xf32>
      %1350 = arith.mulf %1349, %1319 : vector<8x128xf32>
      %1351 = arith.addf %1306, %1350 : vector<8x128xf32>
      %c6_701 = arith.constant 6 : index
      %1352 = arith.index_cast %1321 : i32 to index
      %1353 = memref.load %arg3[%c6_701, %1352] : memref<8x144xf32, #tpu.memory_space<smem>>
      %1354 = vector.broadcast %1353 : f32 to vector<8x128xf32>
      %1355 = arith.mulf %1354, %1319 : vector<8x128xf32>
      %1356 = arith.addf %1311, %1355 : vector<8x128xf32>
      %c7_702 = arith.constant 7 : index
      %1357 = arith.index_cast %1321 : i32 to index
      %1358 = memref.load %arg3[%c7_702, %1357] : memref<8x144xf32, #tpu.memory_space<smem>>
      %1359 = vector.broadcast %1358 : f32 to vector<8x128xf32>
      %1360 = arith.mulf %1359, %1319 : vector<8x128xf32>
      %1361 = arith.addf %1316, %1360 : vector<8x128xf32>
      %1362 = arith.index_cast %1271 : i32 to index
      %c2_703 = arith.constant 2 : index
      %c0_704 = arith.constant 0 : index
      %1363 = vector.load %arg6[%1362, %c2_703, %c0_704] : memref<24x16x128xf32, #tpu.memory_space<vmem>>, vector<1x8x128xf32>
      %1364 = vector.shape_cast %1363 : vector<1x8x128xf32> to vector<8x128xf32>
      %c6_i32_705 = arith.constant 6 : i32
      %1365 = arith.muli %1271, %c6_i32_705 : i32
      %c2_i32_706 = arith.constant 2 : i32
      %1366 = arith.addi %1365, %c2_i32_706 : i32
      %c0_707 = arith.constant 0 : index
      %1367 = arith.index_cast %1366 : i32 to index
      %1368 = memref.load %arg3[%c0_707, %1367] : memref<8x144xf32, #tpu.memory_space<smem>>
      %1369 = vector.broadcast %1368 : f32 to vector<8x128xf32>
      %1370 = arith.mulf %1369, %1364 : vector<8x128xf32>
      %1371 = arith.addf %1326, %1370 : vector<8x128xf32>
      %c1_708 = arith.constant 1 : index
      %1372 = arith.index_cast %1366 : i32 to index
      %1373 = memref.load %arg3[%c1_708, %1372] : memref<8x144xf32, #tpu.memory_space<smem>>
      %1374 = vector.broadcast %1373 : f32 to vector<8x128xf32>
      %1375 = arith.mulf %1374, %1364 : vector<8x128xf32>
      %1376 = arith.addf %1331, %1375 : vector<8x128xf32>
      %c2_709 = arith.constant 2 : index
      %1377 = arith.index_cast %1366 : i32 to index
      %1378 = memref.load %arg3[%c2_709, %1377] : memref<8x144xf32, #tpu.memory_space<smem>>
      %1379 = vector.broadcast %1378 : f32 to vector<8x128xf32>
      %1380 = arith.mulf %1379, %1364 : vector<8x128xf32>
      %1381 = arith.addf %1336, %1380 : vector<8x128xf32>
      %c3_710 = arith.constant 3 : index
      %1382 = arith.index_cast %1366 : i32 to index
      %1383 = memref.load %arg3[%c3_710, %1382] : memref<8x144xf32, #tpu.memory_space<smem>>
      %1384 = vector.broadcast %1383 : f32 to vector<8x128xf32>
      %1385 = arith.mulf %1384, %1364 : vector<8x128xf32>
      %1386 = arith.addf %1341, %1385 : vector<8x128xf32>
      %c4_711 = arith.constant 4 : index
      %1387 = arith.index_cast %1366 : i32 to index
      %1388 = memref.load %arg3[%c4_711, %1387] : memref<8x144xf32, #tpu.memory_space<smem>>
      %1389 = vector.broadcast %1388 : f32 to vector<8x128xf32>
      %1390 = arith.mulf %1389, %1364 : vector<8x128xf32>
      %1391 = arith.addf %1346, %1390 : vector<8x128xf32>
      %c5_712 = arith.constant 5 : index
      %1392 = arith.index_cast %1366 : i32 to index
      %1393 = memref.load %arg3[%c5_712, %1392] : memref<8x144xf32, #tpu.memory_space<smem>>
      %1394 = vector.broadcast %1393 : f32 to vector<8x128xf32>
      %1395 = arith.mulf %1394, %1364 : vector<8x128xf32>
      %1396 = arith.addf %1351, %1395 : vector<8x128xf32>
      %c6_713 = arith.constant 6 : index
      %1397 = arith.index_cast %1366 : i32 to index
      %1398 = memref.load %arg3[%c6_713, %1397] : memref<8x144xf32, #tpu.memory_space<smem>>
      %1399 = vector.broadcast %1398 : f32 to vector<8x128xf32>
      %1400 = arith.mulf %1399, %1364 : vector<8x128xf32>
      %1401 = arith.addf %1356, %1400 : vector<8x128xf32>
      %c7_714 = arith.constant 7 : index
      %1402 = arith.index_cast %1366 : i32 to index
      %1403 = memref.load %arg3[%c7_714, %1402] : memref<8x144xf32, #tpu.memory_space<smem>>
      %1404 = vector.broadcast %1403 : f32 to vector<8x128xf32>
      %1405 = arith.mulf %1404, %1364 : vector<8x128xf32>
      %1406 = arith.addf %1361, %1405 : vector<8x128xf32>
      %1407 = arith.index_cast %1271 : i32 to index
      %c3_715 = arith.constant 3 : index
      %c0_716 = arith.constant 0 : index
      %1408 = vector.load %arg6[%1407, %c3_715, %c0_716] : memref<24x16x128xf32, #tpu.memory_space<vmem>>, vector<1x8x128xf32>
      %1409 = vector.shape_cast %1408 : vector<1x8x128xf32> to vector<8x128xf32>
      %c6_i32_717 = arith.constant 6 : i32
      %1410 = arith.muli %1271, %c6_i32_717 : i32
      %c3_i32_718 = arith.constant 3 : i32
      %1411 = arith.addi %1410, %c3_i32_718 : i32
      %c0_719 = arith.constant 0 : index
      %1412 = arith.index_cast %1411 : i32 to index
      %1413 = memref.load %arg3[%c0_719, %1412] : memref<8x144xf32, #tpu.memory_space<smem>>
      %1414 = vector.broadcast %1413 : f32 to vector<8x128xf32>
      %1415 = arith.mulf %1414, %1409 : vector<8x128xf32>
      %1416 = arith.addf %1371, %1415 : vector<8x128xf32>
      %c1_720 = arith.constant 1 : index
      %1417 = arith.index_cast %1411 : i32 to index
      %1418 = memref.load %arg3[%c1_720, %1417] : memref<8x144xf32, #tpu.memory_space<smem>>
      %1419 = vector.broadcast %1418 : f32 to vector<8x128xf32>
      %1420 = arith.mulf %1419, %1409 : vector<8x128xf32>
      %1421 = arith.addf %1376, %1420 : vector<8x128xf32>
      %c2_721 = arith.constant 2 : index
      %1422 = arith.index_cast %1411 : i32 to index
      %1423 = memref.load %arg3[%c2_721, %1422] : memref<8x144xf32, #tpu.memory_space<smem>>
      %1424 = vector.broadcast %1423 : f32 to vector<8x128xf32>
      %1425 = arith.mulf %1424, %1409 : vector<8x128xf32>
      %1426 = arith.addf %1381, %1425 : vector<8x128xf32>
      %c3_722 = arith.constant 3 : index
      %1427 = arith.index_cast %1411 : i32 to index
      %1428 = memref.load %arg3[%c3_722, %1427] : memref<8x144xf32, #tpu.memory_space<smem>>
      %1429 = vector.broadcast %1428 : f32 to vector<8x128xf32>
      %1430 = arith.mulf %1429, %1409 : vector<8x128xf32>
      %1431 = arith.addf %1386, %1430 : vector<8x128xf32>
      %c4_723 = arith.constant 4 : index
      %1432 = arith.index_cast %1411 : i32 to index
      %1433 = memref.load %arg3[%c4_723, %1432] : memref<8x144xf32, #tpu.memory_space<smem>>
      %1434 = vector.broadcast %1433 : f32 to vector<8x128xf32>
      %1435 = arith.mulf %1434, %1409 : vector<8x128xf32>
      %1436 = arith.addf %1391, %1435 : vector<8x128xf32>
      %c5_724 = arith.constant 5 : index
      %1437 = arith.index_cast %1411 : i32 to index
      %1438 = memref.load %arg3[%c5_724, %1437] : memref<8x144xf32, #tpu.memory_space<smem>>
      %1439 = vector.broadcast %1438 : f32 to vector<8x128xf32>
      %1440 = arith.mulf %1439, %1409 : vector<8x128xf32>
      %1441 = arith.addf %1396, %1440 : vector<8x128xf32>
      %c6_725 = arith.constant 6 : index
      %1442 = arith.index_cast %1411 : i32 to index
      %1443 = memref.load %arg3[%c6_725, %1442] : memref<8x144xf32, #tpu.memory_space<smem>>
      %1444 = vector.broadcast %1443 : f32 to vector<8x128xf32>
      %1445 = arith.mulf %1444, %1409 : vector<8x128xf32>
      %1446 = arith.addf %1401, %1445 : vector<8x128xf32>
      %c7_726 = arith.constant 7 : index
      %1447 = arith.index_cast %1411 : i32 to index
      %1448 = memref.load %arg3[%c7_726, %1447] : memref<8x144xf32, #tpu.memory_space<smem>>
      %1449 = vector.broadcast %1448 : f32 to vector<8x128xf32>
      %1450 = arith.mulf %1449, %1409 : vector<8x128xf32>
      %1451 = arith.addf %1406, %1450 : vector<8x128xf32>
      %1452 = arith.index_cast %1271 : i32 to index
      %c4_727 = arith.constant 4 : index
      %c0_728 = arith.constant 0 : index
      %1453 = vector.load %arg6[%1452, %c4_727, %c0_728] : memref<24x16x128xf32, #tpu.memory_space<vmem>>, vector<1x8x128xf32>
      %1454 = vector.shape_cast %1453 : vector<1x8x128xf32> to vector<8x128xf32>
      %c6_i32_729 = arith.constant 6 : i32
      %1455 = arith.muli %1271, %c6_i32_729 : i32
      %c4_i32_730 = arith.constant 4 : i32
      %1456 = arith.addi %1455, %c4_i32_730 : i32
      %c0_731 = arith.constant 0 : index
      %1457 = arith.index_cast %1456 : i32 to index
      %1458 = memref.load %arg3[%c0_731, %1457] : memref<8x144xf32, #tpu.memory_space<smem>>
      %1459 = vector.broadcast %1458 : f32 to vector<8x128xf32>
      %1460 = arith.mulf %1459, %1454 : vector<8x128xf32>
      %1461 = arith.addf %1416, %1460 : vector<8x128xf32>
      %c1_732 = arith.constant 1 : index
      %1462 = arith.index_cast %1456 : i32 to index
      %1463 = memref.load %arg3[%c1_732, %1462] : memref<8x144xf32, #tpu.memory_space<smem>>
      %1464 = vector.broadcast %1463 : f32 to vector<8x128xf32>
      %1465 = arith.mulf %1464, %1454 : vector<8x128xf32>
      %1466 = arith.addf %1421, %1465 : vector<8x128xf32>
      %c2_733 = arith.constant 2 : index
      %1467 = arith.index_cast %1456 : i32 to index
      %1468 = memref.load %arg3[%c2_733, %1467] : memref<8x144xf32, #tpu.memory_space<smem>>
      %1469 = vector.broadcast %1468 : f32 to vector<8x128xf32>
      %1470 = arith.mulf %1469, %1454 : vector<8x128xf32>
      %1471 = arith.addf %1426, %1470 : vector<8x128xf32>
      %c3_734 = arith.constant 3 : index
      %1472 = arith.index_cast %1456 : i32 to index
      %1473 = memref.load %arg3[%c3_734, %1472] : memref<8x144xf32, #tpu.memory_space<smem>>
      %1474 = vector.broadcast %1473 : f32 to vector<8x128xf32>
      %1475 = arith.mulf %1474, %1454 : vector<8x128xf32>
      %1476 = arith.addf %1431, %1475 : vector<8x128xf32>
      %c4_735 = arith.constant 4 : index
      %1477 = arith.index_cast %1456 : i32 to index
      %1478 = memref.load %arg3[%c4_735, %1477] : memref<8x144xf32, #tpu.memory_space<smem>>
      %1479 = vector.broadcast %1478 : f32 to vector<8x128xf32>
      %1480 = arith.mulf %1479, %1454 : vector<8x128xf32>
      %1481 = arith.addf %1436, %1480 : vector<8x128xf32>
      %c5_736 = arith.constant 5 : index
      %1482 = arith.index_cast %1456 : i32 to index
      %1483 = memref.load %arg3[%c5_736, %1482] : memref<8x144xf32, #tpu.memory_space<smem>>
      %1484 = vector.broadcast %1483 : f32 to vector<8x128xf32>
      %1485 = arith.mulf %1484, %1454 : vector<8x128xf32>
      %1486 = arith.addf %1441, %1485 : vector<8x128xf32>
      %c6_737 = arith.constant 6 : index
      %1487 = arith.index_cast %1456 : i32 to index
      %1488 = memref.load %arg3[%c6_737, %1487] : memref<8x144xf32, #tpu.memory_space<smem>>
      %1489 = vector.broadcast %1488 : f32 to vector<8x128xf32>
      %1490 = arith.mulf %1489, %1454 : vector<8x128xf32>
      %1491 = arith.addf %1446, %1490 : vector<8x128xf32>
      %c7_738 = arith.constant 7 : index
      %1492 = arith.index_cast %1456 : i32 to index
      %1493 = memref.load %arg3[%c7_738, %1492] : memref<8x144xf32, #tpu.memory_space<smem>>
      %1494 = vector.broadcast %1493 : f32 to vector<8x128xf32>
      %1495 = arith.mulf %1494, %1454 : vector<8x128xf32>
      %1496 = arith.addf %1451, %1495 : vector<8x128xf32>
      %1497 = arith.index_cast %1271 : i32 to index
      %c5_739 = arith.constant 5 : index
      %c0_740 = arith.constant 0 : index
      %1498 = vector.load %arg6[%1497, %c5_739, %c0_740] : memref<24x16x128xf32, #tpu.memory_space<vmem>>, vector<1x8x128xf32>
      %1499 = vector.shape_cast %1498 : vector<1x8x128xf32> to vector<8x128xf32>
      %c6_i32_741 = arith.constant 6 : i32
      %1500 = arith.muli %1271, %c6_i32_741 : i32
      %c5_i32_742 = arith.constant 5 : i32
      %1501 = arith.addi %1500, %c5_i32_742 : i32
      %c0_743 = arith.constant 0 : index
      %1502 = arith.index_cast %1501 : i32 to index
      %1503 = memref.load %arg3[%c0_743, %1502] : memref<8x144xf32, #tpu.memory_space<smem>>
      %1504 = vector.broadcast %1503 : f32 to vector<8x128xf32>
      %1505 = arith.mulf %1504, %1499 : vector<8x128xf32>
      %1506 = arith.addf %1461, %1505 : vector<8x128xf32>
      %c1_744 = arith.constant 1 : index
      %1507 = arith.index_cast %1501 : i32 to index
      %1508 = memref.load %arg3[%c1_744, %1507] : memref<8x144xf32, #tpu.memory_space<smem>>
      %1509 = vector.broadcast %1508 : f32 to vector<8x128xf32>
      %1510 = arith.mulf %1509, %1499 : vector<8x128xf32>
      %1511 = arith.addf %1466, %1510 : vector<8x128xf32>
      %c2_745 = arith.constant 2 : index
      %1512 = arith.index_cast %1501 : i32 to index
      %1513 = memref.load %arg3[%c2_745, %1512] : memref<8x144xf32, #tpu.memory_space<smem>>
      %1514 = vector.broadcast %1513 : f32 to vector<8x128xf32>
      %1515 = arith.mulf %1514, %1499 : vector<8x128xf32>
      %1516 = arith.addf %1471, %1515 : vector<8x128xf32>
      %c3_746 = arith.constant 3 : index
      %1517 = arith.index_cast %1501 : i32 to index
      %1518 = memref.load %arg3[%c3_746, %1517] : memref<8x144xf32, #tpu.memory_space<smem>>
      %1519 = vector.broadcast %1518 : f32 to vector<8x128xf32>
      %1520 = arith.mulf %1519, %1499 : vector<8x128xf32>
      %1521 = arith.addf %1476, %1520 : vector<8x128xf32>
      %c4_747 = arith.constant 4 : index
      %1522 = arith.index_cast %1501 : i32 to index
      %1523 = memref.load %arg3[%c4_747, %1522] : memref<8x144xf32, #tpu.memory_space<smem>>
      %1524 = vector.broadcast %1523 : f32 to vector<8x128xf32>
      %1525 = arith.mulf %1524, %1499 : vector<8x128xf32>
      %1526 = arith.addf %1481, %1525 : vector<8x128xf32>
      %c5_748 = arith.constant 5 : index
      %1527 = arith.index_cast %1501 : i32 to index
      %1528 = memref.load %arg3[%c5_748, %1527] : memref<8x144xf32, #tpu.memory_space<smem>>
      %1529 = vector.broadcast %1528 : f32 to vector<8x128xf32>
      %1530 = arith.mulf %1529, %1499 : vector<8x128xf32>
      %1531 = arith.addf %1486, %1530 : vector<8x128xf32>
      %c6_749 = arith.constant 6 : index
      %1532 = arith.index_cast %1501 : i32 to index
      %1533 = memref.load %arg3[%c6_749, %1532] : memref<8x144xf32, #tpu.memory_space<smem>>
      %1534 = vector.broadcast %1533 : f32 to vector<8x128xf32>
      %1535 = arith.mulf %1534, %1499 : vector<8x128xf32>
      %1536 = arith.addf %1491, %1535 : vector<8x128xf32>
      %c7_750 = arith.constant 7 : index
      %1537 = arith.index_cast %1501 : i32 to index
      %1538 = memref.load %arg3[%c7_750, %1537] : memref<8x144xf32, #tpu.memory_space<smem>>
      %1539 = vector.broadcast %1538 : f32 to vector<8x128xf32>
      %1540 = arith.mulf %1539, %1499 : vector<8x128xf32>
      %1541 = arith.addf %1496, %1540 : vector<8x128xf32>
      scf.yield %1506, %1511, %1516, %1521, %1526, %1531, %1536, %1541 : vector<8x128xf32>, vector<8x128xf32>, vector<8x128xf32>, vector<8x128xf32>, vector<8x128xf32>, vector<8x128xf32>, vector<8x128xf32>, vector<8x128xf32>
    }
    %c12_i32_564 = arith.constant 12 : i32
    %c0_565 = arith.constant 0 : index
    %942 = memref.load %arg4[%c0_565] : memref<8xf32, #tpu.memory_space<smem>>
    %cst_566 = arith.constant 7.000000e+00 : f32
    %943 = arith.addf %942, %cst_566 : f32
    %944 = vector.broadcast %943 : f32 to vector<8x128xf32>
    %945 = arith.addf %941#0, %944 : vector<8x128xf32>
    %c0_567 = arith.constant 0 : index
    %c0_568 = arith.constant 0 : index
    %c0_569 = arith.constant 0 : index
    %946 = vector.load %arg5[%c0_567, %c0_568, %c0_569] : memref<8x8x128xf32, #tpu.memory_space<vmem>>, vector<1x8x128xf32>
    %947 = vector.shape_cast %946 : vector<1x8x128xf32> to vector<8x128xf32>
    %948 = vector.shape_cast %945 : vector<8x128xf32> to vector<1x8x128xf32>
    tpu.vector_store %arg5[%c0_567, %c0_568, %c0_569], %948 {strides = array<i32>} : memref<8x8x128xf32, #tpu.memory_space<vmem>>, vector<1x8x128xf32>,
    %c1_570 = arith.constant 1 : index
    %949 = memref.load %arg4[%c1_570] : memref<8xf32, #tpu.memory_space<smem>>
    %cst_571 = arith.constant 7.000000e+00 : f32
    %950 = arith.addf %949, %cst_571 : f32
    %951 = vector.broadcast %950 : f32 to vector<8x128xf32>
    %952 = arith.addf %941#1, %951 : vector<8x128xf32>
    %c1_572 = arith.constant 1 : index
    %c0_573 = arith.constant 0 : index
    %c0_574 = arith.constant 0 : index
    %953 = vector.load %arg5[%c1_572, %c0_573, %c0_574] : memref<8x8x128xf32, #tpu.memory_space<vmem>>, vector<1x8x128xf32>
    %954 = vector.shape_cast %953 : vector<1x8x128xf32> to vector<8x128xf32>
    %955 = vector.shape_cast %952 : vector<8x128xf32> to vector<1x8x128xf32>
    tpu.vector_store %arg5[%c1_572, %c0_573, %c0_574], %955 {strides = array<i32>} : memref<8x8x128xf32, #tpu.memory_space<vmem>>, vector<1x8x128xf32>,
    %c2_575 = arith.constant 2 : index
    %956 = memref.load %arg4[%c2_575] : memref<8xf32, #tpu.memory_space<smem>>
    %cst_576 = arith.constant 7.000000e+00 : f32
    %957 = arith.addf %956, %cst_576 : f32
    %958 = vector.broadcast %957 : f32 to vector<8x128xf32>
    %959 = arith.addf %941#2, %958 : vector<8x128xf32>
    %c2_577 = arith.constant 2 : index
    %c0_578 = arith.constant 0 : index
    %c0_579 = arith.constant 0 : index
    %960 = vector.load %arg5[%c2_577, %c0_578, %c0_579] : memref<8x8x128xf32, #tpu.memory_space<vmem>>, vector<1x8x128xf32>
    %961 = vector.shape_cast %960 : vector<1x8x128xf32> to vector<8x128xf32>
    %962 = vector.shape_cast %959 : vector<8x128xf32> to vector<1x8x128xf32>
    tpu.vector_store %arg5[%c2_577, %c0_578, %c0_579], %962 {strides = array<i32>} : memref<8x8x128xf32, #tpu.memory_space<vmem>>, vector<1x8x128xf32>,
    %c3_580 = arith.constant 3 : index
    %963 = memref.load %arg4[%c3_580] : memref<8xf32, #tpu.memory_space<smem>>
    %cst_581 = arith.constant 7.000000e+00 : f32
    %964 = arith.addf %963, %cst_581 : f32
    %965 = vector.broadcast %964 : f32 to vector<8x128xf32>
    %966 = arith.addf %941#3, %965 : vector<8x128xf32>
    %c3_582 = arith.constant 3 : index
    %c0_583 = arith.constant 0 : index
    %c0_584 = arith.constant 0 : index
    %967 = vector.load %arg5[%c3_582, %c0_583, %c0_584] : memref<8x8x128xf32, #tpu.memory_space<vmem>>, vector<1x8x128xf32>
    %968 = vector.shape_cast %967 : vector<1x8x128xf32> to vector<8x128xf32>
    %969 = vector.shape_cast %966 : vector<8x128xf32> to vector<1x8x128xf32>
    tpu.vector_store %arg5[%c3_582, %c0_583, %c0_584], %969 {strides = array<i32>} : memref<8x8x128xf32, #tpu.memory_space<vmem>>, vector<1x8x128xf32>,
    %c4_585 = arith.constant 4 : index
    %970 = memref.load %arg4[%c4_585] : memref<8xf32, #tpu.memory_space<smem>>
    %cst_586 = arith.constant 7.000000e+00 : f32
    %971 = arith.addf %970, %cst_586 : f32
    %972 = vector.broadcast %971 : f32 to vector<8x128xf32>
    %973 = arith.addf %941#4, %972 : vector<8x128xf32>
    %c4_587 = arith.constant 4 : index
    %c0_588 = arith.constant 0 : index
    %c0_589 = arith.constant 0 : index
    %974 = vector.load %arg5[%c4_587, %c0_588, %c0_589] : memref<8x8x128xf32, #tpu.memory_space<vmem>>, vector<1x8x128xf32>
    %975 = vector.shape_cast %974 : vector<1x8x128xf32> to vector<8x128xf32>
    %976 = vector.shape_cast %973 : vector<8x128xf32> to vector<1x8x128xf32>
    tpu.vector_store %arg5[%c4_587, %c0_588, %c0_589], %976 {strides = array<i32>} : memref<8x8x128xf32, #tpu.memory_space<vmem>>, vector<1x8x128xf32>,
    %c5_590 = arith.constant 5 : index
    %977 = memref.load %arg4[%c5_590] : memref<8xf32, #tpu.memory_space<smem>>
    %cst_591 = arith.constant 7.000000e+00 : f32
    %978 = arith.addf %977, %cst_591 : f32
    %979 = vector.broadcast %978 : f32 to vector<8x128xf32>
    %980 = arith.addf %941#5, %979 : vector<8x128xf32>
    %c5_592 = arith.constant 5 : index
    %c0_593 = arith.constant 0 : index
    %c0_594 = arith.constant 0 : index
    %981 = vector.load %arg5[%c5_592, %c0_593, %c0_594] : memref<8x8x128xf32, #tpu.memory_space<vmem>>, vector<1x8x128xf32>
    %982 = vector.shape_cast %981 : vector<1x8x128xf32> to vector<8x128xf32>
    %983 = vector.shape_cast %980 : vector<8x128xf32> to vector<1x8x128xf32>
    tpu.vector_store %arg5[%c5_592, %c0_593, %c0_594], %983 {strides = array<i32>} : memref<8x8x128xf32, #tpu.memory_space<vmem>>, vector<1x8x128xf32>,
    %c6_595 = arith.constant 6 : index
    %984 = memref.load %arg4[%c6_595] : memref<8xf32, #tpu.memory_space<smem>>
    %cst_596 = arith.constant 7.000000e+00 : f32
    %985 = arith.addf %984, %cst_596 : f32
    %986 = vector.broadcast %985 : f32 to vector<8x128xf32>
    %987 = arith.addf %941#6, %986 : vector<8x128xf32>
    %c6_597 = arith.constant 6 : index
    %c0_598 = arith.constant 0 : index
    %c0_599 = arith.constant 0 : index
    %988 = vector.load %arg5[%c6_597, %c0_598, %c0_599] : memref<8x8x128xf32, #tpu.memory_space<vmem>>, vector<1x8x128xf32>
    %989 = vector.shape_cast %988 : vector<1x8x128xf32> to vector<8x128xf32>
    %990 = vector.shape_cast %987 : vector<8x128xf32> to vector<1x8x128xf32>
    tpu.vector_store %arg5[%c6_597, %c0_598, %c0_599], %990 {strides = array<i32>} : memref<8x8x128xf32, #tpu.memory_space<vmem>>, vector<1x8x128xf32>,
    %c7_600 = arith.constant 7 : index
    %991 = memref.load %arg4[%c7_600] : memref<8xf32, #tpu.memory_space<smem>>
    %cst_601 = arith.constant 7.000000e+00 : f32
    %992 = arith.addf %991, %cst_601 : f32
    %993 = vector.broadcast %992 : f32 to vector<8x128xf32>
    %994 = arith.addf %941#7, %993 : vector<8x128xf32>
    %c7_602 = arith.constant 7 : index
    %c0_603 = arith.constant 0 : index
    %c0_604 = arith.constant 0 : index
    %995 = vector.load %arg5[%c7_602, %c0_603, %c0_604] : memref<8x8x128xf32, #tpu.memory_space<vmem>>, vector<1x8x128xf32>
    %996 = vector.shape_cast %995 : vector<1x8x128xf32> to vector<8x128xf32>
    %997 = vector.shape_cast %994 : vector<8x128xf32> to vector<1x8x128xf32>
    tpu.vector_store %arg5[%c7_602, %c0_603, %c0_604], %997 {strides = array<i32>} : memref<8x8x128xf32, #tpu.memory_space<vmem>>, vector<1x8x128xf32>,
    return
  }
}

</mosaic_0001>

<bundles_post_ra>
// kernel: model_forward.1
= control target key start
LH: loop header
LB: loop body
LE: loop exit
PB: predicated region body
PF: predicated region fallthrough
CT: control target
= control target key end

     0   :  { %s4835_s0 = inlined_call_operand.vmem [shape: f32[3,40,128], index: 0, kind: input, shape index: {}]   ;;  %s4836_s1 = inlined_call_operand.vmem [shape: f32[4,3], index: 1, kind: input, shape index: {}]   ;;  %s4837_s2 = inlined_call_operand.vmem [shape: f32[4], index: 2, kind: input, shape index: {}]   ;;  %s4838_s3 = inlined_call_operand.vmem [shape: f32[8,144], index: 3, kind: input, shape index: {}]   ;;  %s4839_s4 = inlined_call_operand.vmem [shape: f32[8], index: 4, kind: input, shape index: {}]   ;;  %s4840_s5 = inlined_call_operand.vmem [shape: f32[8,8,128], index: 5, kind: output, shape index: {}]  }
   0x1   :  { %4843 = sst [smem:[#allocation50_spill]] %s4840_s5 }
   0x2   :  { %10 = vsyncpa [#allocation4], 0 }
   0x3   :  { %11 = vsyncpa [#allocation6], 0  ;;  %s31_s20 = sshll.u32 %s4837_s2, 4  ;;  %s32_s20 = int_to_ptr.vmem [resolvable:$true] %s31_s20 }
   0x4   :  { %12 = vsyncpa [#allocation9], 0  ;;  %s21_s23 = sshll.u32 %s4836_s1, 4  ;;  %s2797_s24 = scalar_lea.vmem %s32_s20, 16  ;;  %s22_s23 = int_to_ptr.vmem [resolvable:$true] %s21_s23 }
   0x5   :  { %p2798_p0 = scmp.ne.s32.totalorder %s32_s20, %s2797_s24  ;;  %p2802_p1 = scmp.lt.s32.totalorder %s32_s20, %s32_s20 }
   0x6   :  { %p2803_p2 = scmp.lt.s32.totalorder %s2797_s24, %s2797_s24 }
   0x8   :  { %p2804_p3 = por %p2803_p2, %p2802_p1 }
   0xa   :  { %p2805_p4 = pnand %p2804_p3, %p2798_p0 }
   0xc   :  { %2808 = shalt.err (!%p2805_p4)
}
   0xd   :  { %s2923_s25 = smov [#allocation5]   ;;  %s2809_s26 = scalar_lea.vmem %s22_s23, 64 }
   0xe   :  { %34 = dma.vmem_to_smem %s32_s20, 16, %s2923_s25, [#allocation6]  }
   0xf   :  { %p2810_p5 = scmp.ne.s32.totalorder %s22_s23, %s2809_s26  ;;  %p2814_p6 = scmp.lt.s32.totalorder %s22_s23, %s22_s23 }
  0x10   :  { %p2815_p7 = scmp.lt.s32.totalorder %s2809_s26, %s2809_s26 }
  0x12   :  { %p2816_p8 = por %p2815_p7, %p2814_p6 }
  0x14   :  { %p2817_p9 = pnand %p2816_p8, %p2810_p5 }
  0x16   :  { %2820 = shalt.err (!%p2817_p9)
}
  0x17   :  { %s2924_s2 = smov [#allocation3]   ;;  %s41_s28 = sshll.u32 %s4838_s3, 4  ;;  %s42_s28 = int_to_ptr.vmem [resolvable:$true] %s41_s28 }
  0x18   :  { %24 = dma.vmem_to_smem %s22_s23, 64, %s2924_s2, [#allocation4]  }
  0x19   :  { %s51_s6 = sshll.u32 %s4839_s4, 4  ;;  %s2821_s7 = scalar_lea.vmem %s42_s28, 256  ;;  %s52_s6 = int_to_ptr.vmem [resolvable:$true] %s51_s6 }
  0x1a   :  { %p2822_p10 = scmp.ne.s32.totalorder %s42_s28, %s2821_s7  ;;  %p2826_p11 = scmp.lt.s32.totalorder %s42_s28, %s42_s28 }
  0x1b   :  { %p2827_p12 = scmp.lt.s32.totalorder %s2821_s7, %s2821_s7 }
  0x1d   :  { %p2828_p13 = por %p2827_p12, %p2826_p11 }
  0x1f   :  { %p2829_p0 = pnand %p2828_p13, %p2822_p10 }
  0x21   :  { %2832 = shalt.err (!%p2829_p0)
}
  0x22   :  { %s2925_s8 = smov [#allocation7]   ;;  %s2833_s9 = scalar_lea.vmem %s52_s6, 16 }
  0x23   :  { %44 = dma.vmem_to_smem %s42_s28, 256, %s2925_s8, [#allocation6]  }
  0x24   :  { %p2834_p1 = scmp.ne.s32.totalorder %s52_s6, %s2833_s9  ;;  %p2838_p2 = scmp.lt.s32.totalorder %s52_s6, %s52_s6 }
  0x25   :  { %p2839_p3 = scmp.lt.s32.totalorder %s2833_s9, %s2833_s9 }
  0x27   :  { %p2840_p4 = por %p2839_p3, %p2838_p2 }
  0x29   :  { %p2841_p5 = pnand %p2840_p4, %p2834_p1 }
  0x2b   :  { %2844 = shalt.err (!%p2841_p5)
}
  0x2c   :  { %s2926_s3 = smov [#allocation8]  }
  0x2d   :  { %54 = dma.vmem_to_smem %s52_s6, 16, %s2926_s3, [#allocation9]  }
  0x2e   :  { %2881 = dma.done.wait [#allocation4], 64  }
  0x2f   :  { %2882 = vsyncadd [#allocation4], 4294967232 }
  0x30   :  { %2883 = dma.done.wait [#allocation6], 272  }
  0x31   :  { %2884 = vsyncadd [#allocation6], 4294967024 }
  0x32   :  { %2885 = dma.done.wait [#allocation9], 16  }
  0x33   :  { %2886 = vsyncadd [#allocation9], 4294967280 }
  0x34   :  { %67 = sfence }
  0x35   :  { %v2995_v0 = vld [vmem:[%s4835_s0 + $0x10] sm:$0xff]  ;;  %v3000_v1 = vld [vmem:[%s4835_s0 + $0x8] sm:$0xff]  ;;  %s2927_s13 = smov 64   ;;  %s2928_s14 = smov 32   ;;  %v3007_v2 = vld [vmem:[%s4835_s0 + $0x18] sm:$0xff]  ;;  %v68_v19 = vlaneseq }
  0x36   :  { %97 = vrot.lane.b32.xlu1 %v2995_v0, %s2927_s13  ;;  %90 = vrot.lane.b32.xlu0 %v3000_v1, %s2928_s14  ;;  %v3014_v3 = vld [vmem:[%s4835_s0 + $0x20] sm:$0xff]  ;;  %s2929_s19 = smov 96   ;;  %v3021_v4 = vld [vmem:[%s4835_s0 + $0x38] sm:$0xff]  ;;  %s2930_s4 = smov 127  }
  0x37   :  { %v3026_v5 = vld [vmem:[%s4835_s0 + $0x30] sm:$0xff]  ;;  %v3033_v6 = vld [vmem:[%s4835_s0 + $0x40] sm:$0xff]  ;;  %v3040_v7 = vld [vmem:[%s4835_s0 + $0x48] sm:$0xff]  ;;  %s2931_s10 = smov 31   ;;  %s2932_s11 = smov 63   ;;  %v3142_v22 = vand.u32 127, %v68_v19 }
  0x38   :  { %v3047_v8 = vld [vmem:[%s4835_s0 + $0x60] sm:$0xff]  ;;  %v3052_v9 = vld [vmem:[%s4835_s0 + $0x58] sm:$0xff]  ;;  %v3059_v10 = vld [vmem:[%s4835_s0 + $0x68] sm:$0xff]  ;;  %s2933_s12 = smov 95   ;;  %s2934_s17 = smov 126  }
  0x39   :  { %v3066_v11 = vld [vmem:[%s4835_s0 + $0x70] sm:$0xff]  ;;  %v3073_v12 = vld [vmem:[%s4835_s0] sm:$0xff]  ;;  %v3086_v13 = vld [vmem:[%s4835_s0 + $0x28] sm:$0xff]  ;;  %s2935_s18 = smov 30   ;;  %s2937_s20 = smov 94   ;;  %v3159_v25 = vshra.s32 %v3142_v22, 5 }
  0x3a   :  { %99 = vrot.lane.b32.xlu1 %v3007_v2, %s2927_s13  ;;  %92 = vrot.lane.b32.xlu0 %v2995_v0, %s2928_s14  ;;  %v3099_v14 = vld [vmem:[%s4835_s0 + $0x50] sm:$0xff]  ;;  %s164_s21 = sld [smem:[#allocation3]]  ;;  %s2286_s25 = sld [smem:[#allocation3 + $0x1]] }
  0x3b   :  { %s2290_s22 = sld [smem:[#allocation3 + $0x80]]  ;;  %s3152_s26 = sld [smem:[#allocation3 + $0x81]]  ;;  %vm84_vm0 = vcmp.eq.s32.totalorder %v3159_v25, 1  ;;  %vm85_vm1 = vcmp.eq.s32.totalorder %v3159_v25, 2  ;;  %vm86_vm2 = vcmp.eq.s32.totalorder %v3159_v25, 3 }
  0x3c   :  { %s3146_s23 = sld [smem:[#allocation3 + $0x100]]  ;;  %s3154_s2 = sld [smem:[#allocation3 + $0x101]] }
  0x3d   :  { %s3148_s24 = sld [smem:[#allocation3 + $0x180]]  ;;  %s3156_s1 = sld [smem:[#allocation3 + $0x181]] }
  0x3e   :  { %106 = vrot.lane.b32.xlu1 %v3014_v3, %s2929_s19  ;;  %104 = vrot.lane.b32.xlu0 %v3007_v2, %s2929_s19  ;;  %s3163_s27 = sld [smem:[#allocation3 + $0x2]]  ;;  %s3171_s30 = sld [smem:[#allocation5]] }
  0x3f   :  { %s3165_s28 = sld [smem:[#allocation3 + $0x82]]  ;;  %s3175_s7 = sld [smem:[#allocation5 + $0x1]] }
  0x40   :  { %s3169_s29 = sld [smem:[#allocation3 + $0x102]]  ;;  %s2938_s9 = smov 125   ;;  %v3184_v28 = vstv %s164_s21  ;;  %v3201_v33 = vstv %s2286_s25 }
  0x41   :  { %s3173_s6 = sld [smem:[#allocation3 + $0x182]]  ;;  %s3182_s3 = sld [smem:[#allocation5 + $0x3]]  ;;  %v3186_v29 = vstv %s2290_s22  ;;  %v3207_v37 = vstv %s3152_s26 }
  0x42   :  { %116 = vrot.lane.b32.xlu1 %v3021_v4, %s2928_s14  ;;  %114 = vrot.lane.b32.xlu0 %v3026_v5, %s2928_s14  ;;  %s3177_s8 = sld [smem:[#allocation5 + $0x2]]  ;;  %v3196_v31 = vstv %s3146_s23  ;;  %v3210_v38 = vstv %s3154_s2  ;;  %s3782_s21 = sld [smem:[#allocation3 + $0x1]] }
  0x43   :  { %v3199_v32 = vstv %s3148_s24  ;;  %v3213_v39 = vstv %s3156_s1  ;;  %s2946_s24 = smov 60   ;;  %s3787_s22 = sld [smem:[#allocation3 + $0x101]] }
  0x44   :  { %v3223_v42 = vstv %s3163_s27  ;;  %v3245_v52 = vstv %s3171_s30  ;;  %s2947_s27 = smov 59   ;;  %s3789_s23 = sld [smem:[#allocation3 + $0x180]] }
  0x45   :  { %v3226_v43 = vstv %s3165_s28  ;;  %v3256_v56 = vstv %s3175_s7  ;;  %s2948_s28 = smov 92   ;;  %s3859_s25 = sld [smem:[#allocation3 + $0x82]] }
  0x46   :  { %123 = vrot.lane.b32.xlu1 %v3033_v6, %s2927_s13  ;;  %121 = vrot.lane.b32.xlu0 %v3021_v4, %s2927_s13  ;;  %v3238_v47 = vstv %s3169_s29  ;;  %s3863_s26 = sld [smem:[#allocation3 + $0x102]]  ;;  %s3893_s1 = sld [smem:[#allocation5]] }
  0x47   :  { %v3248_v53 = vstv %s3173_s6  ;;  %v3269_v61 = vstv %s3182_s3  ;;  %s3865_s2 = sld [smem:[#allocation3 + $0x182]]  ;;  %s3902_s29 = sld [smem:[#allocation5 + $0x3]] }
  0x48   :  { %v3259_v57 = vstv %s3177_s8  ;;  %s4278_s30 = smov 0  }
  0x4a   :  { %130 = vrot.lane.b32.xlu1 %v3040_v7, %s2929_s19  ;;  %128 = vrot.lane.b32.xlu0 %v3033_v6, %s2929_s19 }
  0x4e   :  { %140 = vrot.lane.b32.xlu1 %v3047_v8, %s2928_s14  ;;  %138 = vrot.lane.b32.xlu0 %v3052_v9, %s2928_s14  ;;  %s2944_s14 = smov 123  }
  0x52   :  { %147 = vrot.lane.b32.xlu1 %v3059_v10, %s2927_s13  ;;  %145 = vrot.lane.b32.xlu0 %v3047_v8, %s2927_s13  ;;  %s2943_s13 = smov 28  }
  0x56   :  { %154 = vrot.lane.b32.xlu1 %v3066_v11, %s2929_s19  ;;  %152 = vrot.lane.b32.xlu0 %v3059_v10, %s2929_s19  ;;  %s2936_s19 = smov 62  }
  0x5a   :  { %323 = vrot.lane.b32.xlu1 %v3000_v1, %s2930_s4  ;;  %321 = vrot.lane.b32.xlu0 %v3073_v12, %s2930_s4 }
  0x5e   :  { %328 = vrot.lane.b32.xlu1 %v2995_v0, %s2931_s10  ;;  %326 = vrot.lane.b32.xlu0 %v3000_v1, %s2931_s10 }
  0x62   :  { %335 = vrot.lane.b32.xlu1 %v3007_v2, %s2932_s11  ;;  %333 = vrot.lane.b32.xlu0 %v2995_v0, %s2932_s11 }
  0x66   :  { %342 = vrot.lane.b32.xlu1 %v3014_v3, %s2933_s12  ;;  %340 = vrot.lane.b32.xlu0 %v3007_v2, %s2933_s12 }
  0x6a   :  { %350 = vrot.lane.b32.xlu1 %v3026_v5, %s2930_s4  ;;  %348 = vrot.lane.b32.xlu0 %v3086_v13, %s2930_s4 }
  0x6e   :  { %355 = vrot.lane.b32.xlu1 %v3021_v4, %s2931_s10  ;;  %353 = vrot.lane.b32.xlu0 %v3026_v5, %s2931_s10 }
  0x72   :  { %362 = vrot.lane.b32.xlu1 %v3033_v6, %s2932_s11  ;;  %360 = vrot.lane.b32.xlu0 %v3021_v4, %s2932_s11 }
  0x76   :  { %369 = vrot.lane.b32.xlu1 %v3040_v7, %s2933_s12  ;;  %367 = vrot.lane.b32.xlu0 %v3033_v6, %s2933_s12 }
  0x7a   :  { %377 = vrot.lane.b32.xlu1 %v3052_v9, %s2930_s4  ;;  %375 = vrot.lane.b32.xlu0 %v3099_v14, %s2930_s4  ;;  %s2939_s4 = smov 29  }
  0x7e   :  { %382 = vrot.lane.b32.xlu1 %v3047_v8, %s2931_s10  ;;  %380 = vrot.lane.b32.xlu0 %v3052_v9, %s2931_s10  ;;  %s2940_s10 = smov 61  }
  0x82   :  { %389 = vrot.lane.b32.xlu1 %v3059_v10, %s2932_s11  ;;  %387 = vrot.lane.b32.xlu0 %v3047_v8, %s2932_s11  ;;  %s2941_s11 = smov 93  }
  0x86   :  { %396 = vrot.lane.b32.xlu1 %v3066_v11, %s2933_s12  ;;  %394 = vrot.lane.b32.xlu0 %v3059_v10, %s2933_s12  ;;  %s2942_s12 = smov 124  }
  0x8a   :  { %563 = vrot.lane.b32.xlu1 %v3000_v1, %s2934_s17  ;;  %561 = vrot.lane.b32.xlu0 %v3073_v12, %s2934_s17 }
  0x8e   :  { %568 = vrot.lane.b32.xlu1 %v2995_v0, %s2935_s18  ;;  %566 = vrot.lane.b32.xlu0 %v3000_v1, %s2935_s18 }
  0x92   :  { %575 = vrot.lane.b32.xlu1 %v3007_v2, %s2936_s19  ;;  %573 = vrot.lane.b32.xlu0 %v2995_v0, %s2936_s19 }
  0x96   :  { %582 = vrot.lane.b32.xlu1 %v3014_v3, %s2937_s20  ;;  %580 = vrot.lane.b32.xlu0 %v3007_v2, %s2937_s20 }
  0x9a   :  { %590 = vrot.lane.b32.xlu1 %v3026_v5, %s2934_s17  ;;  %588 = vrot.lane.b32.xlu0 %v3086_v13, %s2934_s17 }
  0x9e   :  { %595 = vrot.lane.b32.xlu1 %v3021_v4, %s2935_s18  ;;  %593 = vrot.lane.b32.xlu0 %v3026_v5, %s2935_s18 }
  0xa2   :  { %602 = vrot.lane.b32.xlu1 %v3033_v6, %s2936_s19  ;;  %600 = vrot.lane.b32.xlu0 %v3021_v4, %s2936_s19 }
  0xa6   :  { %609 = vrot.lane.b32.xlu1 %v3040_v7, %s2937_s20  ;;  %607 = vrot.lane.b32.xlu0 %v3033_v6, %s2937_s20 }
  0xa8   :  { %v3133_v15 = vpop.permute.xlu1 %97  ;;  %v91_v16 = vpop.permute.xlu0 %90 }
  0xa9   :  { %v94_v40 = vsel %vm84_vm0, %v91_v16, %v3073_v12 }
  0xaa   :  { %617 = vrot.lane.b32.xlu1 %v3052_v9, %s2934_s17  ;;  %615 = vrot.lane.b32.xlu0 %v3099_v14, %s2934_s17  ;;  %v101_v54 = vsel %vm85_vm1, %v3133_v15, %v94_v40  ;;  %s2945_s17 = smov 27  }
  0xac   :  { %v100_v17 = vpop.permute.xlu1 %99  ;;  %v93_v18 = vpop.permute.xlu0 %92 }
  0xad   :  { %v95_v30 = vsel %vm84_vm0, %v93_v18, %v3000_v1 }
  0xae   :  { %622 = vrot.lane.b32.xlu1 %v3047_v8, %s2935_s18  ;;  %620 = vrot.lane.b32.xlu0 %v3052_v9, %s2935_s18  ;;  %v102_v44 = vsel %vm85_vm1, %v100_v17, %v95_v30  ;;  %s3773_s18 = sld [smem:[#allocation3]] }
  0xb0   :  { %v107_v20 = vpop.permute.xlu1 %106  ;;  %v3139_v21 = vpop.permute.xlu0 %104 }
  0xb1   :  { %v109_v48 = vsel %vm86_vm2, %v107_v20, %v102_v44  ;;  %v108_v58 = vsel %vm86_vm2, %v3139_v21, %v101_v54 }
  0xb2   :  { %629 = vrot.lane.b32.xlu1 %v3059_v10, %s2936_s19  ;;  %627 = vrot.lane.b32.xlu0 %v3047_v8, %s2936_s19  ;;  %v167_v62 = vmul.f32 %v3184_v28, %v109_v48  ;;  %v205_v63 = vmul.f32 %v3186_v29, %v109_v48  ;;  %v244_v16 = vmul.f32 %v3196_v31, %v109_v48  ;;  %s3775_s19 = sld [smem:[#allocation3 + $0x80]] }
  0xb3   :  { %v283_v17 = vmul.f32 %v3199_v32, %v109_v48 }
  0xb4   :  { %v117_v23 = vpop.permute.xlu1 %116  ;;  %v115_v24 = vpop.permute.xlu0 %114 }
  0xb5   :  { %v119_v36 = vsel %vm84_vm0, %v117_v23, %v3026_v5  ;;  %v118_v45 = vsel %vm84_vm0, %v115_v24, %v3086_v13  ;;  %v166_v24 = vmul.f32 %v3184_v28, %v108_v58 }
  0xb6   :  { %636 = vrot.lane.b32.xlu1 %v3066_v11, %s2937_s20  ;;  %634 = vrot.lane.b32.xlu0 %v3059_v10, %s2937_s20  ;;  %s3779_s20 = sld [smem:[#allocation3 + $0x100]] }
  0xb8   :  { %v124_v26 = vpop.permute.xlu1 %123  ;;  %v122_v27 = vpop.permute.xlu0 %121 }
  0xb9   :  { %v126_v41 = vsel %vm85_vm1, %v124_v26, %v119_v36  ;;  %v125_v49 = vsel %vm85_vm1, %v122_v27, %v118_v45  ;;  %v204_v26 = vmul.f32 %v3186_v29, %v108_v58 }
  0xba   :  { %803 = vrot.lane.b32.xlu1 %v3000_v1, %s2938_s9  ;;  %801 = vrot.lane.b32.xlu0 %v3073_v12, %s2938_s9 }
  0xbc   :  { %v131_v34 = vpop.permute.xlu1 %130  ;;  %v129_v35 = vpop.permute.xlu0 %128 }
  0xbd   :  { %v133_v46 = vsel %vm86_vm2, %v131_v34, %v126_v41  ;;  %v132_v55 = vsel %vm86_vm2, %v129_v35, %v125_v49  ;;  %v243_v34 = vmul.f32 %v3196_v31, %v108_v58  ;;  %v282_v35 = vmul.f32 %v3199_v32, %v108_v58 }
  0xbe   :  { %808 = vrot.lane.b32.xlu1 %v2995_v0, %s2939_s4  ;;  %806 = vrot.lane.b32.xlu0 %v3000_v1, %s2939_s4  ;;  %v171_v59 = vmul.f32 %v3201_v33, %v133_v46  ;;  %v209_v60 = vmul.f32 %v3207_v37, %v133_v46  ;;  %v248_v11 = vmul.f32 %v3210_v38, %v133_v46 }
  0xbf   :  { %v287_v15 = vmul.f32 %v3213_v39, %v133_v46  ;;  %v170_v18 = vmul.f32 %v3201_v33, %v132_v55  ;;  %v208_v20 = vmul.f32 %v3207_v37, %v132_v55  ;;  %v247_v27 = vmul.f32 %v3210_v38, %v132_v55 }
  0xc0   :  { %v141_v50 = vpop.permute.xlu1 %140  ;;  %v139_v51 = vpop.permute.xlu0 %138  ;;  %v286_v30 = vmul.f32 %v3213_v39, %v132_v55  ;;  %v173_v36 = vadd.f32 %v171_v59, %v167_v62  ;;  %v211_v40 = vadd.f32 %v209_v60, %v205_v63  ;;  %v250_v41 = vadd.f32 %v248_v11, %v244_v16 }
  0xc1   :  { %v289_v44 = vadd.f32 %v287_v15, %v283_v17  ;;  %v143_v45 = vsel %vm84_vm0, %v141_v50, %v3052_v9  ;;  %v142_v46 = vsel %vm84_vm0, %v139_v51, %v3099_v14  ;;  %v172_v48 = vadd.f32 %v170_v18, %v166_v24 }
  0xc2   :  { %815 = vrot.lane.b32.xlu1 %v3007_v2, %s2940_s10  ;;  %813 = vrot.lane.b32.xlu0 %v2995_v0, %s2940_s10  ;;  %v210_v49 = vadd.f32 %v208_v20, %v204_v26  ;;  %v249_v59 = vadd.f32 %v247_v27, %v243_v34  ;;  %v288_v60 = vadd.f32 %v286_v30, %v282_v35 }
  0xc4   :  { %v148_v21 = vpop.permute.xlu1 %147  ;;  %v146_v23 = vpop.permute.xlu0 %145 }
  0xc5   :  { %v150_v54 = vsel %vm85_vm1, %v148_v21, %v143_v45 }
  0xc6   :  { %822 = vrot.lane.b32.xlu1 %v3014_v3, %s2941_s11  ;;  %820 = vrot.lane.b32.xlu0 %v3007_v2, %s2941_s11  ;;  %v149_v3 = vsel %vm85_vm1, %v146_v23, %v142_v46 }
  0xc8   :  { %v155_v55 = vpop.permute.xlu1 %154  ;;  %v153_v58 = vpop.permute.xlu0 %152 }
  0xc9   :  { %v157_v50 = vsel %vm86_vm2, %v155_v55, %v150_v54  ;;  %v156_v51 = vsel %vm86_vm2, %v153_v58, %v149_v3 }
  0xca   :  { %v177_v2 = vmul.f32 %v3223_v42, %v157_v50  ;;  %v215_v62 = vmul.f32 %v3226_v43, %v157_v50  ;;  %v254_v63 = vmul.f32 %v3238_v47, %v157_v50  ;;  %v293_v11 = vmul.f32 %v3248_v53, %v157_v50  ;;  %830 = vrot.lane.b32.xlu1 %v3026_v5, %s2938_s9 }
  0xcb   :  { %v176_v15 = vmul.f32 %v3223_v42, %v156_v51  ;;  %v214_v16 = vmul.f32 %v3226_v43, %v156_v51  ;;  %v253_v17 = vmul.f32 %v3238_v47, %v156_v51  ;;  %v292_v18 = vmul.f32 %v3248_v53, %v156_v51  ;;  %828 = vrot.lane.b32.xlu0 %v3086_v13, %s2938_s9 }
  0xcc   :  { %v179_v20 = vadd.f32 %v177_v2, %v173_v36  ;;  %v217_v21 = vadd.f32 %v215_v62, %v211_v40  ;;  %v256_v23 = vadd.f32 %v254_v63, %v250_v41  ;;  %v295_v24 = vadd.f32 %v293_v11, %v289_v44  ;;  %v3317_v26 = vpop.permute.xlu1 %323  ;;  %v3319_v27 = vpop.permute.xlu0 %321 }
  0xcd   :  { %v178_v30 = vadd.f32 %v176_v15, %v172_v48  ;;  %v216_v34 = vadd.f32 %v214_v16, %v210_v49  ;;  %v255_v35 = vadd.f32 %v253_v17, %v249_v59  ;;  %v294_v45 = vadd.f32 %v292_v18, %v288_v60 }
  0xce   :  { %v183_v46 = vadd.f32 %v3245_v52, %v179_v20  ;;  %v221_v54 = vadd.f32 %v3256_v56, %v217_v21  ;;  %v260_v3 = vadd.f32 %v3259_v57, %v256_v23  ;;  %v299_v55 = vadd.f32 %v3269_v61, %v295_v24  ;;  %835 = vrot.lane.b32.xlu1 %v3021_v4, %s2939_s4 }
  0xcf   :  { %v182_v36 = vadd.f32 %v3245_v52, %v178_v30  ;;  %v220_v40 = vadd.f32 %v3256_v56, %v216_v34  ;;  %833 = vrot.lane.b32.xlu0 %v3026_v5, %s2939_s4  ;;  %v259_v49 = vadd.f32 %v3259_v57, %v255_v35  ;;  %v298_v50 = vadd.f32 %v3269_v61, %v294_v45 }
  0xd0   :  { %v2289_v41 = vmul.f32 -1.442695, %v183_v46  ;;  %v2295_v44 = vmul.f32 -1.442695, %v221_v54  ;;  %v2301_v48 = vmul.f32 -1.442695, %v260_v3  ;;  %v3332_v58 = vpop.permute.xlu1 %328  ;;  %v3334_v59 = vpop.permute.xlu0 %326 }
  0xd1   :  { %v2307_v60 = vmul.f32 -1.442695, %v299_v55  ;;  %v2288_v51 = vmul.f32 -1.442695, %v182_v36  ;;  %v2294_v2 = vmul.f32 -1.442695, %v220_v40 }
  0xd2   :  { %2605 = vpow2.f32 %v2289_v41  ;;  %842 = vrot.lane.b32.xlu1 %v3033_v6, %s2940_s10  ;;  %v2300_v62 = vmul.f32 -1.442695, %v259_v49  ;;  %v2306_v15 = vmul.f32 -1.442695, %v298_v50  ;;  %v69_v16 = vshrl.u32 %v68_v19, 7 }
  0xd3   :  { %2607 = vpow2.f32 %v2295_v44  ;;  %840 = vrot.lane.b32.xlu0 %v3021_v4, %s2940_s10  ;;  %v75_v21 = vmul.u32 8, %v3159_v25  ;;  %v3370_v44 = vand.u32 31, %v3142_v22 }
  0xd4   :  { %2609 = vpow2.f32 %v2301_v48  ;;  %v3341_v63 = vpop.permute.xlu1 %335  ;;  %v3343_v11 = vpop.permute.xlu0 %333  ;;  %v70_v20 = vadd.s32 8, %v69_v16 }
  0xd5   :  { %2611 = vpow2.f32 %v2307_v60  ;;  %v76_v48 = vadd.s32 %v75_v21, %v69_v16  ;;  %vm161_vm6 = vcmp.eq.s32.totalorder %v3370_v44, 0  ;;  %vm1120_vm12 = vcmp.ge.s32.totalorder %v3370_v44, 31 }
  0xd6   :  { %2613 = vpow2.f32 %v2288_v51  ;;  %849 = vrot.lane.b32.xlu1 %v3040_v7, %s2941_s11  ;;  %v77_v45 = vadd.s32 %v75_v21, %v70_v20  ;;  %vm1360_vm15 = vcmp.ge.s32.totalorder %v3370_v44, 30 }
  0xd7   :  { %2615 = vpow2.f32 %v2294_v2  ;;  %847 = vrot.lane.b32.xlu0 %v3033_v6, %s2941_s11  ;;  %vm78_vm7 = vcmp.eq.s32.totalorder %v76_v48, 0  ;;  %vm80_vm8 = vcmp.ge.s32.totalorder %v76_v48, 35 }
  0xd8   :  { %2617 = vpow2.f32 %v2300_v62  ;;  %v3350_v17 = vpop.permute.xlu1 %342  ;;  %v3352_v18 = vpop.permute.xlu0 %340  ;;  %vm79_vm3 = vcmp.eq.s32.totalorder %v77_v45, 0  ;;  %vm81_vm4 = vcmp.ge.s32.totalorder %v77_v45, 35  ;;  %vm3393_vm10 = vmor %vm78_vm7, %vm80_vm8  ;;  %v330_v45 = vsel %vm84_vm0, %v3334_v59, %v3319_v27 }
  0xd9   :  { %2619 = vpow2.f32 %v2306_v15  ;;  %vm3376_vm5 = vmor %vm79_vm3, %vm81_vm4 }
  0xda   :  { %857 = vrot.lane.b32.xlu1 %v3052_v9, %s2938_s9  ;;  %vm3389_vm9 = vmor %vm3376_vm5, %vm161_vm6 }
  0xdb   :  { %855 = vrot.lane.b32.xlu0 %v3099_v14, %s2938_s9  ;;  %vm3421_vm11 = vmor %vm3393_vm10, %vm161_vm6 }
  0xdc   :  { %v2606_v7 = vpop.eup %2605  ;;  %v3359_v19 = vpop.permute.xlu1 %350  ;;  %vm4199_vm13 = vmor %vm3376_vm5, %vm1120_vm12 }
  0xdd   :  { %v3361_v23 = vpop.permute.xlu0 %348  ;;  %v2608_v6 = vpop.eup %2607  ;;  %v191_v24 = vadd.f32 1.0, %v2606_v7  ;;  %vm4213_vm14 = vmor %vm3393_vm10, %vm1120_vm12 }
  0xde   :  { %v2610_v30 = vpop.eup %2609  ;;  %v229_v34 = vadd.f32 1.0, %v2608_v6  ;;  %862 = vrot.lane.b32.xlu1 %v3047_v8, %s2939_s4 }
  0xdf   :  { %v2612_v35 = vpop.eup %2611  ;;  %2621 = vrcp.f32 %v191_v24  ;;  %v268_v46 = vadd.f32 1.0, %v2610_v30  ;;  %860 = vrot.lane.b32.xlu0 %v3052_v9, %s2939_s4 }
  0xe0   :  { %v2614_v14 = vpop.eup %2613  ;;  %2623 = vrcp.f32 %v229_v34  ;;  %v307_v54 = vadd.f32 1.0, %v2612_v35  ;;  %v356_v3 = vpop.permute.xlu1 %355  ;;  %v331_v35 = vsel %vm84_vm0, %v3332_v58, %v3317_v26 }
  0xe1   :  { %v3367_v55 = vpop.permute.xlu0 %353  ;;  %v2616_v36 = vpop.eup %2615  ;;  %2625 = vrcp.f32 %v268_v46  ;;  %v190_v40 = vadd.f32 1.0, %v2614_v14  ;;  %v338_v27 = vsel %vm85_vm1, %v3341_v63, %v331_v35  ;;  %v358_v58 = vsel %vm84_vm0, %v356_v3, %v3359_v19 }
  0xe2   :  { %v2618_v41 = vpop.eup %2617  ;;  %2627 = vrcp.f32 %v307_v54  ;;  %v228_v49 = vadd.f32 1.0, %v2616_v36  ;;  %869 = vrot.lane.b32.xlu1 %v3059_v10, %s2940_s10  ;;  %v345_v48 = vsel %vm86_vm2, %v3350_v17, %v338_v27 }
  0xe3   :  { %v2620_v9 = vpop.eup %2619  ;;  %2629 = vrcp.f32 %v190_v40  ;;  %v267_v60 = vadd.f32 1.0, %v2618_v41  ;;  %867 = vrot.lane.b32.xlu0 %v3047_v8, %s2940_s10  ;;  %v484_v35 = vmul.f32 %v345_v48, %v3196_v31 }
  0xe4   :  { %2631 = vrcp.f32 %v228_v49  ;;  %v306_v50 = vadd.f32 1.0, %v2620_v9  ;;  %v363_v51 = vpop.permute.xlu1 %362  ;;  %v357_v9 = vsel %vm84_vm0, %v3367_v55, %v3361_v23 }
  0xe5   :  { %v361_v2 = vpop.permute.xlu0 %360  ;;  %2633 = vrcp.f32 %v267_v60  ;;  %v365_v49 = vsel %vm85_vm1, %v363_v51, %v358_v58 }
  0xe6   :  { %2635 = vrcp.f32 %v306_v50  ;;  %1041 = vrot.lane.b32.xlu1 %v3073_v12, %s2942_s12  ;;  %v364_v16 = vsel %vm85_vm1, %v361_v2, %v357_v9  ;;  %v406_v2 = vmul.f32 %v345_v48, %v3184_v28 }
  0xe7   :  { %874 = vrot.lane.b32.xlu0 %v3059_v10, %s2941_s11 }
  0xe8   :  { %v370_v8 = vpop.permute.xlu1 %369 }
  0xe9   :  { %v368_v62 = vpop.permute.xlu0 %367  ;;  %v2622_v15 = vpop.eup %2621  ;;  %v372_v17 = vsel %vm86_vm2, %v370_v8, %v365_v49 }
  0xea   :  { %v2624_v20 = vpop.eup %2623  ;;  %v197_v7 = vadd.f32 3.0, %v2622_v15  ;;  %1046 = vrot.lane.b32.xlu1 %v3000_v1, %s2943_s13  ;;  %v337_v15 = vsel %vm85_vm1, %v3343_v11, %v330_v45  ;;  %v523_v45 = vmul.f32 %v345_v48, %v3199_v32 }
  0xeb   :  { %v2626_v10 = vpop.eup %2625  ;;  %v235_v6 = vadd.f32 3.0, %v2624_v20  ;;  %1043 = vrot.lane.b32.xlu0 %v3000_v1, %s2942_s12 }
  0xec   :  { %v2628_v24 = vpop.eup %2627  ;;  %v199_v30 = vsel %vm3389_vm9, 0.0, %v197_v7  ;;  %v274_v34 = vadd.f32 3.0, %v2626_v10  ;;  %v3411_v46 = vpop.permute.xlu1 %377  ;;  %v344_v7 = vsel %vm86_vm2, %v3352_v18, %v337_v15  ;;  %v371_v10 = vsel %vm86_vm2, %v368_v62, %v364_v16 }
  0xed   :  { %v3413_v14 = vpop.permute.xlu0 %375  ;;  %v2630_v1 = vpop.eup %2629  ;;  %201 = vst [vmem:[#allocation2 + $0x8] sm:$0xff] %v199_v30  ;;  %v237_v54 = vsel %vm3389_vm9, 0.0, %v235_v6  ;;  %v313_v36 = vadd.f32 3.0, %v2628_v24  ;;  %v410_v6 = vmul.f32 %v372_v17, %v3201_v33  ;;  %v449_v24 = vmul.f32 %v372_v17, %v3207_v37 }
  0xee   :  { %v2632_v59 = vpop.eup %2631  ;;  %240 = vst [vmem:[#allocation2 + $0x68] sm:$0xff] %v237_v54  ;;  %v276_v40 = vsel %vm3389_vm9, 0.0, %v274_v34  ;;  %v196_v41 = vadd.f32 3.0, %v2630_v1  ;;  %1068 = vrot.lane.b32.xlu1 %v3086_v13, %s2942_s12  ;;  %v445_v30 = vmul.f32 %v345_v48, %v3186_v29  ;;  %v488_v62 = vmul.f32 %v372_v17, %v3210_v38 }
  0xef   :  { %v2634_v63 = vpop.eup %2633  ;;  %279 = vst [vmem:[#allocation2 + $0xc8] sm:$0xff] %v276_v40  ;;  %v315_v19 = vsel %vm3389_vm9, 0.0, %v313_v36  ;;  %v234_v3 = vadd.f32 3.0, %v2632_v59  ;;  %1048 = vrot.lane.b32.xlu0 %v2995_v0, %s2943_s13  ;;  %v527_v34 = vmul.f32 %v372_v17, %v3213_v39  ;;  %v409_v1 = vmul.f32 %v371_v10, %v3201_v33  ;;  %v1280_v17 = vld [vmem:[%s4835_s0 + $0x8] sm:$0xff] }
  0xf0   :  { %v2636_v60 = vpop.eup %2635  ;;  %318 = vst [vmem:[#allocation2 + $0x128] sm:$0xff] %v315_v19  ;;  %v198_v50 = vsel %vm3421_vm11, 0.0, %v196_v41  ;;  %v273_v51 = vadd.f32 3.0, %v2634_v63  ;;  %v383_v23 = vpop.permute.xlu1 %382  ;;  %v448_v54 = vmul.f32 %v371_v10, %v3207_v37  ;;  %v405_v27 = vmul.f32 %v344_v7, %v3184_v28 }
  0xf1   :  { %v381_v55 = vpop.permute.xlu0 %380  ;;  %200 = vst [vmem:[#allocation2] sm:$0xff] %v198_v50  ;;  %v236_v8 = vsel %vm3421_vm11, 0.0, %v234_v3  ;;  %v312_v20 = vadd.f32 3.0, %v2636_v60  ;;  %v444_v58 = vmul.f32 %v344_v7, %v3186_v29  ;;  %v487_v59 = vmul.f32 %v371_v10, %v3210_v38 }
  0xf2   :  { %239 = vst [vmem:[#allocation2 + $0x60] sm:$0xff] %v236_v8  ;;  %v275_v11 = vsel %vm3421_vm11, 0.0, %v273_v51  ;;  %1073 = vrot.lane.b32.xlu1 %v3026_v5, %s2943_s13  ;;  %v526_v40 = vmul.f32 %v371_v10, %v3213_v39  ;;  %v522_v41 = vmul.f32 %v344_v7, %v3199_v32  ;;  %v412_v49 = vadd.f32 %v410_v6, %v406_v2 }
  0xf3   :  { %278 = vst [vmem:[#allocation2 + $0xc0] sm:$0xff] %v275_v11  ;;  %v314_v18 = vsel %vm3421_vm11, 0.0, %v312_v20  ;;  %1070 = vrot.lane.b32.xlu0 %v3026_v5, %s2942_s12  ;;  %v483_v5 = vmul.f32 %v344_v7, %v3196_v31  ;;  %v451_v48 = vadd.f32 %v449_v24, %v445_v30  ;;  %v490_v63 = vadd.f32 %v488_v62, %v484_v35 }
  0xf4   :  { %317 = vst [vmem:[#allocation2 + $0x120] sm:$0xff] %v314_v18  ;;  %v390_v36 = vpop.permute.xlu1 %389  ;;  %v529_v19 = vadd.f32 %v527_v34, %v523_v45  ;;  %v385_v3 = vsel %vm84_vm0, %v383_v23, %v3411_v46  ;;  %v384_v9 = vsel %vm84_vm0, %v381_v55, %v3413_v14  ;;  %v411_v60 = vadd.f32 %v409_v1, %v405_v27  ;;  %v1285_v1 = vld [vmem:[%s4835_s0 + $0x10] sm:$0xff] }
  0xf5   :  { %v388_v26 = vpop.permute.xlu0 %387  ;;  %v450_v50 = vadd.f32 %v448_v54, %v444_v58  ;;  %v489_v16 = vadd.f32 %v487_v59, %v483_v5  ;;  %v528_v23 = vadd.f32 %v526_v40, %v522_v41 }
  0xf6   :  { %1281 = vrot.lane.b32.xlu1 %v3073_v12, %s2944_s14  ;;  %v392_v12 = vsel %vm85_vm1, %v390_v36, %v385_v3  ;;  %v391_v51 = vsel %vm85_vm1, %v388_v26, %v384_v9 }
  0xf7   :  { %1075 = vrot.lane.b32.xlu0 %v3021_v4, %s2943_s13 }
  0xf8   :  { %v397_v46 = vpop.permute.xlu1 %396 }
  0xf9   :  { %v395_v15 = vpop.permute.xlu0 %394  ;;  %v399_v14 = vsel %vm86_vm2, %v397_v46, %v392_v12 }
  0xfa   :  { %v398_v55 = vsel %vm86_vm2, %v395_v15, %v391_v51  ;;  %v416_v8 = vmul.f32 %v399_v14, %v3223_v42  ;;  %v455_v20 = vmul.f32 %v399_v14, %v3226_v43  ;;  %v494_v7 = vmul.f32 %v399_v14, %v3238_v47  ;;  %1286 = vrot.lane.b32.xlu1 %v1280_v17, %s2945_s17 }
  0xfb   :  { %v533_v10 = vmul.f32 %v399_v14, %v3248_v53  ;;  %v415_v11 = vmul.f32 %v398_v55, %v3223_v42  ;;  %v454_v2 = vmul.f32 %v398_v55, %v3226_v43  ;;  %v493_v6 = vmul.f32 %v398_v55, %v3238_v47  ;;  %1283 = vrot.lane.b32.xlu0 %v1280_v17, %s2944_s14 }
  0xfc   :  { %v532_v24 = vmul.f32 %v398_v55, %v3248_v53  ;;  %v418_v18 = vadd.f32 %v416_v8, %v412_v49  ;;  %v457_v30 = vadd.f32 %v455_v20, %v451_v48  ;;  %v496_v62 = vadd.f32 %v494_v7, %v490_v63  ;;  %v3519_v35 = vpop.permute.xlu1 %563  ;;  %v2437_v48 = vld [vmem:[%s4835_s0 + $0x30] sm:$0xff]  ;;  %v3563_v20 = vld [vmem:[%s4835_s0 + $0x18] sm:$0xff] }
  0xfd   :  { %v535_v34 = vadd.f32 %v533_v10, %v529_v19  ;;  %v3521_v45 = vpop.permute.xlu0 %561  ;;  %v417_v54 = vadd.f32 %v415_v11, %v411_v60  ;;  %v456_v36 = vadd.f32 %v454_v2, %v450_v50  ;;  %v495_v26 = vadd.f32 %v493_v6, %v489_v16  ;;  %v3576_v11 = vld [vmem:[%s4835_s0 + $0x40] sm:$0xff] }
  0xfe   :  { %v534_v27 = vadd.f32 %v532_v24, %v528_v23  ;;  %v422_v58 = vadd.f32 %v418_v18, %v3245_v52  ;;  %v461_v59 = vadd.f32 %v457_v30, %v3256_v56  ;;  %v500_v40 = vadd.f32 %v496_v62, %v3259_v57  ;;  %1308 = vrot.lane.b32.xlu1 %v3086_v13, %s2944_s14  ;;  %v2438_v23 = vld [vmem:[%s4835_s0 + $0x38] sm:$0xff] }
  0xff   :  { %v539_v5 = vadd.f32 %v535_v34, %v3269_v61  ;;  %v421_v41 = vadd.f32 %v417_v54, %v3245_v52  ;;  %v460_v49 = vadd.f32 %v456_v36, %v3256_v56  ;;  %1288 = vrot.lane.b32.xlu0 %v1285_v1, %s2945_s17  ;;  %v499_v9 = vadd.f32 %v495_v26, %v3259_v57 }
 0x100   :  { %v2321_v63 = vmul.f32 -1.442695, %v422_v58  ;;  %v2327_v19 = vmul.f32 -1.442695, %v461_v59  ;;  %v2333_v3 = vmul.f32 -1.442695, %v500_v40  ;;  %v3539_v17 = vpop.permute.xlu1 %568  ;;  %v538_v50 = vadd.f32 %v534_v27, %v3269_v61 }
 0x101   :  { %v3541_v60 = vpop.permute.xlu0 %566  ;;  %v2339_v13 = vmul.f32 -1.442695, %v539_v5  ;;  %v2320_v12 = vmul.f32 -1.442695, %v421_v41  ;;  %v2326_v51 = vmul.f32 -1.442695, %v460_v49 }
 0x102   :  { %2637 = vpow2.f32 %v2321_v63  ;;  %1313 = vrot.lane.b32.xlu1 %v2437_v48, %s2945_s17  ;;  %v2332_v46 = vmul.f32 -1.442695, %v499_v9  ;;  %v2338_v14 = vmul.f32 -1.442695, %v538_v50 }
 0x103   :  { %2639 = vpow2.f32 %v2327_v19  ;;  %1310 = vrot.lane.b32.xlu0 %v2437_v48, %s2944_s14  ;;  %v3593_v19 = vld [vmem:[%s4835_s0 + $0x20] sm:$0xff] }
 0x104   :  { %2641 = vpow2.f32 %v2333_v3  ;;  %v3546_v15 = vpop.permute.xlu1 %575 }
 0x105   :  { %v3548_v16 = vpop.permute.xlu0 %573  ;;  %2643 = vpow2.f32 %v2339_v13 }
 0x106   :  { %2645 = vpow2.f32 %v2320_v12  ;;  %1053 = vrot.lane.b32.xlu1 %v2995_v0, %s2946_s24 }
 0x107   :  { %2647 = vpow2.f32 %v2326_v51  ;;  %1315 = vrot.lane.b32.xlu0 %v2438_v23, %s2945_s17  ;;  %v3602_v51 = vld [vmem:[%s4835_s0 + $0x50] sm:$0xff] }
 0x108   :  { %2649 = vpow2.f32 %v2332_v46  ;;  %v3556_v55 = vpop.permute.xlu1 %582 }
 0x109   :  { %v3558_v8 = vpop.permute.xlu0 %580  ;;  %2651 = vpow2.f32 %v2338_v14 }
 0x10a   :  { %1080 = vrot.lane.b32.xlu1 %v3021_v4, %s2946_s24 }
 0x10b   :  { %1055 = vrot.lane.b32.xlu0 %v3563_v20, %s2946_s24 }
 0x10c   :  { %v2638_v0 = vpop.eup %2637  ;;  %v3569_v7 = vpop.permute.xlu1 %590 }
 0x10d   :  { %v3571_v10 = vpop.permute.xlu0 %588  ;;  %v2640_v2 = vpop.eup %2639  ;;  %v430_v6 = vadd.f32 1.0, %v2638_v0 }
 0x10e   :  { %v2642_v24 = vpop.eup %2641  ;;  %v469_v18 = vadd.f32 1.0, %v2640_v2  ;;  %1293 = vrot.lane.b32.xlu1 %v1285_v1, %s2947_s27 }
 0x10f   :  { %v2644_v4 = vpop.eup %2643  ;;  %2653 = vrcp.f32 %v430_v6  ;;  %v508_v30 = vadd.f32 1.0, %v2642_v24  ;;  %1082 = vrot.lane.b32.xlu0 %v3576_v11, %s2946_s24  ;;  %v3613_v6 = vld [vmem:[%s4835_s0 + $0x48] sm:$0xff] }
 0x110   :  { %v2646_v62 = vpop.eup %2645  ;;  %2655 = vrcp.f32 %v469_v18  ;;  %v547_v34 = vadd.f32 1.0, %v2644_v4  ;;  %v596_v54 = vpop.permute.xlu1 %595 }
 0x111   :  { %v3581_v36 = vpop.permute.xlu0 %593  ;;  %v2648_v26 = vpop.eup %2647  ;;  %2657 = vrcp.f32 %v508_v30  ;;  %v429_v27 = vadd.f32 1.0, %v2646_v62  ;;  %v571_v30 = vsel %vm84_vm0, %v3539_v17, %v3519_v35  ;;  %v570_v62 = vsel %vm84_vm0, %v3541_v60, %v3521_v45 }
 0x112   :  { %v2650_v58 = vpop.eup %2649  ;;  %2659 = vrcp.f32 %v547_v34  ;;  %v468_v59 = vadd.f32 1.0, %v2648_v26  ;;  %1320 = vrot.lane.b32.xlu1 %v2438_v23, %s2947_s27 }
 0x113   :  { %v2652_v1 = vpop.eup %2651  ;;  %2661 = vrcp.f32 %v429_v27  ;;  %v507_v40 = vadd.f32 1.0, %v2650_v58  ;;  %1295 = vrot.lane.b32.xlu0 %v3563_v20, %s2947_s27  ;;  %v578_v58 = vsel %vm85_vm1, %v3546_v15, %v571_v30 }
 0x114   :  { %2663 = vrcp.f32 %v468_v59  ;;  %v546_v5 = vadd.f32 1.0, %v2652_v1  ;;  %v603_v41 = vpop.permute.xlu1 %602  ;;  %v598_v59 = vsel %vm84_vm0, %v596_v54, %v3569_v7  ;;  %v585_v60 = vsel %vm86_vm2, %v3556_v55, %v578_v58  ;;  %v3647_v7 = vld [vmem:[%s4835_s0 + $0x58] sm:$0xff] }
 0x115   :  { %v601_v49 = vpop.permute.xlu0 %600  ;;  %2665 = vrcp.f32 %v507_v40  ;;  %v605_v15 = vsel %vm85_vm1, %v603_v41, %v598_v59  ;;  %v597_v55 = vsel %vm84_vm0, %v3581_v36, %v3571_v10 }
 0x116   :  { %2667 = vrcp.f32 %v546_v5  ;;  %1060 = vrot.lane.b32.xlu1 %v3563_v20, %s2948_s28 }
 0x117   :  { %1322 = vrot.lane.b32.xlu0 %v3576_v11, %s2947_s27 }
 0x118   :  { %v610_v48 = vpop.permute.xlu1 %609 }
 0x119   :  { %v608_v63 = vpop.permute.xlu0 %607  ;;  %v2654_v3 = vpop.eup %2653  ;;  %v612_v5 = vsel %vm86_vm2, %v610_v48, %v605_v15 }
 0x11a   :  { %v2656_v9 = vpop.eup %2655  ;;  %v436_v13 = vadd.f32 3.0, %v2654_v3  ;;  %1087 = vrot.lane.b32.xlu1 %v3576_v11, %s2948_s28 }
 0x11b   :  { %v2658_v50 = vpop.eup %2657  ;;  %v475_v12 = vadd.f32 3.0, %v2656_v9  ;;  %1062 = vrot.lane.b32.xlu0 %v3593_v19, %s2948_s28 }
 0x11c   :  { %v2660_v46 = vpop.eup %2659  ;;  %v438_v23 = vsel %vm3376_vm5, 0.0, %v436_v13  ;;  %v514_v14 = vadd.f32 3.0, %v2658_v50  ;;  %v3606_v0 = vpop.permute.xlu1 %617  ;;  %v577_v50 = vsel %vm85_vm1, %v3548_v16, %v570_v62  ;;  %v767_v62 = vmul.f32 %v612_v5, %v3213_v39 }
 0x11d   :  { %v3608_v2 = vpop.permute.xlu0 %615  ;;  %v2662_v24 = vpop.eup %2661  ;;  %441 = vst [vmem:[#allocation2 + $0x18] sm:$0xff] %v438_v23  ;;  %v477_v18 = vsel %vm3376_vm5, 0.0, %v475_v12  ;;  %v553_v4 = vadd.f32 3.0, %v2660_v46  ;;  %v604_v12 = vsel %vm85_vm1, %v601_v49, %v597_v55  ;;  %v584_v36 = vsel %vm86_vm2, %v3558_v8, %v577_v50 }
 0x11e   :  { %v2664_v34 = vpop.eup %2663  ;;  %480 = vst [vmem:[#allocation2 + $0x78] sm:$0xff] %v477_v18  ;;  %v516_v26 = vsel %vm3376_vm5, 0.0, %v514_v14  ;;  %v435_v27 = vadd.f32 3.0, %v2662_v24  ;;  %1095 = vrot.lane.b32.xlu1 %v3602_v51, %s2942_s12  ;;  %v611_v48 = vsel %vm86_vm2, %v608_v63, %v604_v12  ;;  %v646_v49 = vmul.f32 %v585_v60, %v3184_v28  ;;  %v3686_v18 = vld [vmem:[%s4835_s0 + $0x60] sm:$0xff] }
 0x11f   :  { %v2666_v35 = vpop.eup %2665  ;;  %519 = vst [vmem:[#allocation2 + $0xd8] sm:$0xff] %v516_v26  ;;  %v555_v45 = vsel %vm3376_vm5, 0.0, %v553_v4  ;;  %v474_v17 = vadd.f32 3.0, %v2664_v34  ;;  %1089 = vrot.lane.b32.xlu0 %v3613_v6, %s2948_s28  ;;  %v650_v46 = vmul.f32 %v612_v5, %v3201_v33  ;;  %v685_v8 = vmul.f32 %v585_v60, %v3186_v29 }
 0x120   :  { %v2668_v54 = vpop.eup %2667  ;;  %558 = vst [vmem:[#allocation2 + $0x138] sm:$0xff] %v555_v45  ;;  %v437_v1 = vsel %vm3393_vm10, 0.0, %v435_v27  ;;  %v513_v40 = vadd.f32 3.0, %v2666_v35  ;;  %v623_v41 = vpop.permute.xlu1 %622  ;;  %v724_v23 = vmul.f32 %v585_v60, %v3196_v31  ;;  %v689_v63 = vmul.f32 %v612_v5, %v3207_v37 }
 0x121   :  { %v621_v3 = vpop.permute.xlu0 %620  ;;  %440 = vst [vmem:[#allocation2 + $0x10] sm:$0xff] %v437_v1  ;;  %v476_v9 = vsel %vm3393_vm10, 0.0, %v474_v17  ;;  %v552_v13 = vadd.f32 3.0, %v2668_v54  ;;  %v728_v14 = vmul.f32 %v612_v5, %v3210_v38  ;;  %v763_v4 = vmul.f32 %v585_v60, %v3199_v32 }
 0x122   :  { %479 = vst [vmem:[#allocation2 + $0x70] sm:$0xff] %v476_v9  ;;  %v515_v10 = vsel %vm3393_vm10, 0.0, %v513_v40  ;;  %1100 = vrot.lane.b32.xlu1 %v3647_v7, %s2943_s13  ;;  %v645_v30 = vmul.f32 %v584_v36, %v3184_v28  ;;  %v649_v34 = vmul.f32 %v611_v48, %v3201_v33  ;;  %v684_v27 = vmul.f32 %v584_v36, %v3186_v29 }
 0x123   :  { %518 = vst [vmem:[#allocation2 + $0xd0] sm:$0xff] %v515_v10  ;;  %v554_v16 = vsel %vm3393_vm10, 0.0, %v552_v13  ;;  %1097 = vrot.lane.b32.xlu0 %v3647_v7, %s2942_s12  ;;  %v723_v58 = vmul.f32 %v584_v36, %v3196_v31  ;;  %v762_v59 = vmul.f32 %v584_v36, %v3199_v32  ;;  %v688_v35 = vmul.f32 %v611_v48, %v3207_v37  ;;  %s2949_s12 = smov 91  }
 0x124   :  { %557 = vst [vmem:[#allocation2 + $0x130] sm:$0xff] %v554_v16  ;;  %v630_v24 = vpop.permute.xlu1 %629  ;;  %v652_v45 = vadd.f32 %v650_v46, %v646_v49  ;;  %v727_v28 = vmul.f32 %v611_v48, %v3210_v38  ;;  %v766_v17 = vmul.f32 %v611_v48, %v3213_v39  ;;  %v625_v33 = vsel %vm84_vm0, %v623_v41, %v3606_v0 }
 0x125   :  { %v628_v26 = vpop.permute.xlu0 %627  ;;  %v691_v29 = vadd.f32 %v689_v63, %v685_v8  ;;  %v730_v31 = vadd.f32 %v728_v14, %v724_v23  ;;  %v624_v32 = vsel %vm84_vm0, %v621_v3, %v3608_v2  ;;  %v632_v37 = vsel %vm85_vm1, %v630_v24, %v625_v33  ;;  %v2381_v33 = vld [vmem:[%s4835_s0 + $0x70] sm:$0xff] }
 0x126   :  { %1300 = vrot.lane.b32.xlu1 %v3563_v20, %s2949_s12  ;;  %v769_v38 = vadd.f32 %v767_v62, %v763_v4  ;;  %v651_v60 = vadd.f32 %v649_v34, %v645_v30  ;;  %v631_v39 = vsel %vm85_vm1, %v628_v26, %v624_v32  ;;  %v690_v55 = vadd.f32 %v688_v35, %v684_v27 }
 0x127   :  { %1102 = vrot.lane.b32.xlu0 %v3686_v18, %s2943_s13  ;;  %v729_v5 = vadd.f32 %v727_v28, %v723_v58  ;;  %v768_v41 = vadd.f32 %v766_v17, %v762_v59 }
 0x128   :  { %v637_v20 = vpop.permute.xlu1 %636 }
 0x129   :  { %v639_v0 = vsel %vm86_vm2, %v637_v20, %v632_v37  ;;  %v635_v15 = vpop.permute.xlu0 %634 }
 0x12a   :  { %v656_v54 = vmul.f32 %v639_v0, %v3223_v42  ;;  %v695_v1 = vmul.f32 %v639_v0, %v3226_v43  ;;  %v734_v40 = vmul.f32 %v639_v0, %v3238_v47  ;;  %v773_v2 = vmul.f32 %v639_v0, %v3248_v53  ;;  %1327 = vrot.lane.b32.xlu1 %v3576_v11, %s2949_s12 }
 0x12b   :  { %v638_v3 = vsel %vm86_vm2, %v635_v15, %v631_v39  ;;  %1302 = vrot.lane.b32.xlu0 %v3593_v19, %s2949_s12 }
 0x12c   :  { %v658_v9 = vadd.f32 %v656_v54, %v652_v45  ;;  %v697_v13 = vadd.f32 %v695_v1, %v691_v29  ;;  %v736_v50 = vadd.f32 %v734_v40, %v730_v31  ;;  %v775_v12 = vadd.f32 %v773_v2, %v769_v38  ;;  %v804_v10 = vpop.permute.xlu1 %803  ;;  %v2412_v45 = vld [vmem:[%s4835_s0 + $0x68] sm:$0xff]  ;;  %s3785_s0 = sld [smem:[#allocation3 + $0x81]] }
 0x12d   :  { %v655_v36 = vmul.f32 %v638_v3, %v3223_v42  ;;  %v694_v48 = vmul.f32 %v638_v3, %v3226_v43  ;;  %v733_v11 = vmul.f32 %v638_v3, %v3238_v47  ;;  %v772_v16 = vmul.f32 %v638_v3, %v3248_v53  ;;  %v3728_v49 = vpop.permute.xlu0 %801 }
 0x12e   :  { %v662_v46 = vadd.f32 %v658_v9, %v3245_v52  ;;  %v701_v8 = vadd.f32 %v697_v13, %v3256_v56  ;;  %v740_v19 = vadd.f32 %v736_v50, %v3259_v57  ;;  %v779_v23 = vadd.f32 %v775_v12, %v3269_v61  ;;  %1335 = vrot.lane.b32.xlu1 %v3602_v51, %s2944_s14 }
 0x12f   :  { %v657_v42 = vadd.f32 %v655_v36, %v651_v60  ;;  %v696_v63 = vadd.f32 %v694_v48, %v690_v55  ;;  %v735_v43 = vadd.f32 %v733_v11, %v729_v5  ;;  %v774_v14 = vadd.f32 %v772_v16, %v768_v41  ;;  %1329 = vrot.lane.b32.xlu0 %v3613_v6, %s2949_s12 }
 0x130   :  { %v2353_v47 = vmul.f32 -1.442695, %v662_v46  ;;  %v2359_v53 = vmul.f32 -1.442695, %v701_v8  ;;  %v2365_v24 = vmul.f32 -1.442695, %v740_v19  ;;  %v809_v4 = vpop.permute.xlu1 %808  ;;  %v3804_v36 = vstv %s3773_s18 }
 0x131   :  { %v2371_v30 = vmul.f32 -1.442695, %v779_v23  ;;  %v661_v62 = vadd.f32 %v657_v42, %v3245_v52  ;;  %v700_v34 = vadd.f32 %v696_v63, %v3256_v56  ;;  %v739_v26 = vadd.f32 %v735_v43, %v3259_v57  ;;  %v3741_v27 = vpop.permute.xlu0 %806 }
 0x132   :  { %2669 = vpow2.f32 %v2353_v47  ;;  %v778_v51 = vadd.f32 %v774_v14, %v3269_v61  ;;  %v811_v58 = vsel %vm84_vm0, %v809_v4, %v804_v10  ;;  %1340 = vrot.lane.b32.xlu1 %v3647_v7, %s2945_s17  ;;  %v3807_v48 = vstv %s3775_s19 }
 0x133   :  { %2671 = vpow2.f32 %v2359_v53  ;;  %v2352_v6 = vmul.f32 -1.442695, %v661_v62  ;;  %v2358_v59 = vmul.f32 -1.442695, %v700_v34  ;;  %1337 = vrot.lane.b32.xlu0 %v3647_v7, %s2944_s14  ;;  %v2364_v52 = vmul.f32 -1.442695, %v739_v26 }
 0x134   :  { %2673 = vpow2.f32 %v2365_v24  ;;  %v816_v56 = vpop.permute.xlu1 %815  ;;  %v2370_v57 = vmul.f32 -1.442695, %v778_v51  ;;  %v3812_v11 = vstv %s3782_s21  ;;  %v3815_v16 = vstv %s3785_s0 }
 0x135   :  { %2675 = vpow2.f32 %v2371_v30  ;;  %v818_v61 = vsel %vm85_vm1, %v816_v56, %v811_v58  ;;  %v3752_v35 = vpop.permute.xlu0 %813  ;;  %v3818_v46 = vstv %s3787_s22  ;;  %v3821_v8 = vstv %s3779_s20 }
 0x136   :  { %2677 = vpow2.f32 %v2352_v6  ;;  %1107 = vrot.lane.b32.xlu1 %v3686_v18, %s2946_s24  ;;  %v3824_v19 = vstv %s3789_s23 }
 0x137   :  { %2679 = vpow2.f32 %v2358_v59  ;;  %1342 = vrot.lane.b32.xlu0 %v3686_v18, %s2945_s17 }
 0x138   :  { %2681 = vpow2.f32 %v2364_v52  ;;  %v823_v7 = vpop.permute.xlu1 %822 }
 0x139   :  { %2683 = vpow2.f32 %v2370_v57  ;;  %v3763_v28 = vsel %vm86_vm2, %v823_v7, %v818_v61  ;;  %v3765_v17 = vpop.permute.xlu0 %820 }
 0x13a   :  { %1347 = vrot.lane.b32.xlu1 %v3686_v18, %s2947_s27  ;;  %v886_v43 = vmul.f32 %v3804_v36, %v3763_v28  ;;  %v925_v14 = vmul.f32 %v3807_v48, %v3763_v28  ;;  %v964_v58 = vmul.f32 %v3821_v8, %v3763_v28  ;;  %v1003_v6 = vmul.f32 %v3824_v19, %v3763_v28 }
 0x13b   :  { %1109 = vrot.lane.b32.xlu0 %v2412_v45, %s2946_s24  ;;  %s3791_s24 = sld [smem:[#allocation3 + $0x181]] }
 0x13c   :  { %v2670_v29 = vpop.eup %2669  ;;  %v831_v31 = vpop.permute.xlu1 %830 }
 0x13d   :  { %v2672_v32 = vpop.eup %2671  ;;  %v670_v37 = vadd.f32 1.0, %v2670_v29  ;;  %v3777_v20 = vpop.permute.xlu0 %828 }
 0x13e   :  { %v2674_v38 = vpop.eup %2673  ;;  %v709_v60 = vadd.f32 1.0, %v2672_v32  ;;  %876 = vrot.lane.b32.xlu1 %v2381_v33, %s2941_s11  ;;  %s3857_s11 = sld [smem:[#allocation3 + $0x2]] }
 0x13f   :  { %v2676_v18 = vpop.eup %2675  ;;  %2685 = vrcp.f32 %v670_v37  ;;  %v748_v39 = vadd.f32 1.0, %v2674_v38  ;;  %1349 = vrot.lane.b32.xlu0 %v2412_v45, %s2947_s27  ;;  %s3895_s27 = sld [smem:[#allocation5 + $0x1]] }
 0x140   :  { %v2678_v0 = vpop.eup %2677  ;;  %2687 = vrcp.f32 %v709_v60  ;;  %v787_v15 = vadd.f32 1.0, %v2676_v18  ;;  %v836_v54 = vpop.permute.xlu1 %835 }
 0x141   :  { %v2680_v1 = vpop.eup %2679  ;;  %2689 = vrcp.f32 %v748_v39  ;;  %v669_v40 = vadd.f32 1.0, %v2678_v0  ;;  %v838_v2 = vsel %vm84_vm0, %v836_v54, %v831_v31  ;;  %v3795_v55 = vpop.permute.xlu0 %833  ;;  %v3827_v23 = vstv %s3791_s24 }
 0x142   :  { %v2682_v5 = vpop.eup %2681  ;;  %2691 = vrcp.f32 %v787_v15  ;;  %v708_v41 = vadd.f32 1.0, %v2680_v1  ;;  %1116 = vrot.lane.b32.xlu1 %v2381_v33, %s2948_s28 }
 0x143   :  { %v2684_v3 = vpop.eup %2683  ;;  %2693 = vrcp.f32 %v669_v40  ;;  %v747_v9 = vadd.f32 1.0, %v2682_v5  ;;  %1114 = vrot.lane.b32.xlu0 %v2412_v45, %s2948_s28  ;;  %s3900_s28 = sld [smem:[#allocation5 + $0x2]] }
 0x144   :  { %2695 = vrcp.f32 %v708_v41  ;;  %v786_v13 = vadd.f32 1.0, %v2684_v3  ;;  %v843_v50 = vpop.permute.xlu1 %842 }
 0x145   :  { %2697 = vrcp.f32 %v747_v9  ;;  %v845_v12 = vsel %vm85_vm1, %v843_v50, %v838_v2  ;;  %v3801_v10 = vpop.permute.xlu0 %840  ;;  %v837_v2 = vsel %vm84_vm0, %v3795_v55, %v3777_v20  ;;  %v810_v20 = vsel %vm84_vm0, %v3741_v27, %v3728_v49 }
 0x146   :  { %2699 = vrcp.f32 %v786_v13  ;;  %1356 = vrot.lane.b32.xlu1 %v2381_v33, %s2949_s12  ;;  %v844_v9 = vsel %vm85_vm1, %v3801_v10, %v837_v2 }
 0x147   :  { %1354 = vrot.lane.b32.xlu0 %v2412_v45, %s2949_s12 }
 0x148   :  { %v850_v42 = vpop.permute.xlu1 %849 }
 0x149   :  { %v2686_v63 = vpop.eup %2685  ;;  %v852_v47 = vsel %vm86_vm2, %v850_v42, %v845_v12  ;;  %v848_v53 = vpop.permute.xlu0 %847  ;;  %v817_v42 = vsel %vm85_vm1, %v3752_v35, %v810_v20 }
 0x14a   :  { %v2688_v24 = vpop.eup %2687  ;;  %v676_v4 = vadd.f32 3.0, %v2686_v63  ;;  %v890_v30 = vmul.f32 %v3812_v11, %v852_v47  ;;  %v929_v62 = vmul.f32 %v3815_v16, %v852_v47  ;;  %v968_v34 = vmul.f32 %v3818_v46, %v852_v47 }
 0x14b   :  { %v2690_v26 = vpop.eup %2689  ;;  %v715_v51 = vadd.f32 3.0, %v2688_v24  ;;  %v1007_v59 = vmul.f32 %v3827_v23, %v852_v47  ;;  %v851_v55 = vsel %vm86_vm2, %v848_v53, %v844_v9  ;;  %v824_v49 = vsel %vm86_vm2, %v3765_v17, %v817_v42 }
 0x14c   :  { %v2692_v52 = vpop.eup %2691  ;;  %v678_v56 = vsel %vm3376_vm5, 0.0, %v676_v4  ;;  %v754_v57 = vadd.f32 3.0, %v2690_v26  ;;  %v3845_v61 = vadd.f32 %v890_v30, %v886_v43  ;;  %v3847_v7 = vadd.f32 %v929_v62, %v925_v14  ;;  %v858_v45 = vpop.permute.xlu1 %857 }
 0x14d   :  { %v2694_v33 = vpop.eup %2693  ;;  %681 = vst [vmem:[#allocation2 + $0x28] sm:$0xff] %v678_v56  ;;  %v717_v29 = vsel %vm3376_vm5, 0.0, %v715_v51  ;;  %v793_v31 = vadd.f32 3.0, %v2692_v52  ;;  %v3851_v32 = vadd.f32 %v968_v34, %v964_v58  ;;  %v3853_v28 = vadd.f32 %v1007_v59, %v1003_v6  ;;  %v856_v37 = vpop.permute.xlu0 %855 }
 0x14e   :  { %v2696_v38 = vpop.eup %2695  ;;  %720 = vst [vmem:[#allocation2 + $0x88] sm:$0xff] %v717_v29  ;;  %v756_v60 = vsel %vm3376_vm5, 0.0, %v754_v57  ;;  %v675_v18 = vadd.f32 3.0, %v2694_v33  ;;  %v889_v63 = vmul.f32 %v3812_v11, %v851_v55  ;;  %v928_v14 = vmul.f32 %v3815_v16, %v851_v55 }
 0x14f   :  { %v2698_v39 = vpop.eup %2697  ;;  %759 = vst [vmem:[#allocation2 + $0xe8] sm:$0xff] %v756_v60  ;;  %v795_v0 = vsel %vm3376_vm5, 0.0, %v793_v31  ;;  %v714_v15 = vadd.f32 3.0, %v2696_v38  ;;  %v967_v47 = vmul.f32 %v3818_v46, %v851_v55  ;;  %v1006_v53 = vmul.f32 %v3827_v23, %v851_v55 }
 0x150   :  { %v2700_v54 = vpop.eup %2699  ;;  %798 = vst [vmem:[#allocation2 + $0x148] sm:$0xff] %v795_v0  ;;  %v677_v1 = vsel %vm3393_vm10, 0.0, %v675_v18  ;;  %v753_v40 = vadd.f32 3.0, %v2698_v39  ;;  %v863_v5 = vpop.permute.xlu1 %862  ;;  %v3913_v24 = vstv %s3857_s11  ;;  %v885_v17 = vmul.f32 %v3804_v36, %v824_v49 }
 0x151   :  { %680 = vst [vmem:[#allocation2 + $0x20] sm:$0xff] %v677_v1  ;;  %v716_v41 = vsel %vm3393_vm10, 0.0, %v714_v15  ;;  %v792_v3 = vadd.f32 3.0, %v2700_v54  ;;  %v861_v13 = vpop.permute.xlu0 %860  ;;  %v865_v12 = vsel %vm84_vm0, %v863_v5, %v858_v45  ;;  %v3917_v4 = vstv %s3859_s25 }
 0x152   :  { %719 = vst [vmem:[#allocation2 + $0x80] sm:$0xff] %v716_v41  ;;  %v755_v50 = vsel %vm3393_vm10, 0.0, %v753_v40  ;;  %v3920_v30 = vstv %s3863_s26  ;;  %v3923_v62 = vstv %s3865_s2  ;;  %v924_v34 = vmul.f32 %v3807_v48, %v824_v49 }
 0x153   :  { %758 = vst [vmem:[#allocation2 + $0xe0] sm:$0xff] %v755_v50  ;;  %v794_v10 = vsel %vm3393_vm10, 0.0, %v792_v3  ;;  %v963_v26 = vmul.f32 %v3821_v8, %v824_v49  ;;  %v1002_v51 = vmul.f32 %v3824_v19, %v824_v49  ;;  %v864_v58 = vsel %vm84_vm0, %v861_v13, %v856_v37 }
 0x154   :  { %797 = vst [vmem:[#allocation2 + $0x140] sm:$0xff] %v794_v10  ;;  %v870_v27 = vpop.permute.xlu1 %869  ;;  %v891_v59 = vadd.f32 %v889_v63, %v885_v17  ;;  %v930_v57 = vadd.f32 %v928_v14, %v924_v34  ;;  %v3939_v18 = vstv %s3893_s1  ;;  %v3942_v39 = vstv %s3895_s27 }
 0x155   :  { %v3907_v35 = vsel %vm85_vm1, %v870_v27, %v865_v12  ;;  %v868_v43 = vpop.permute.xlu0 %867  ;;  %v969_v45 = vadd.f32 %v967_v47, %v963_v26  ;;  %v1008_v33 = vadd.f32 %v1006_v53, %v1002_v51  ;;  %v3945_v0 = vstv %s3900_s28 }
 0x156   :  { %v871_v52 = vsel %vm85_vm1, %v868_v43, %v864_v58  ;;  %v3948_v15 = vstv %s3902_s29 }
 0x158   :  { %v1042_v6 = vpop.permute.xlu1 %1041 }
 0x159   :  { %v875_v56 = vpop.permute.xlu0 %874 }
 0x15a   :  { %v878_v29 = vsel %vm86_vm2, %v875_v56, %v871_v52 }
 0x15b   :  { %v895_v31 = vmul.f32 %v3913_v24, %v878_v29  ;;  %v934_v38 = vmul.f32 %v3917_v4, %v878_v29  ;;  %v973_v60 = vmul.f32 %v3920_v30, %v878_v29  ;;  %v1012_v37 = vmul.f32 %v3923_v62, %v878_v29 }
 0x15c   :  { %v1047_v54 = vpop.permute.xlu1 %1046 }
 0x15d   :  { %v897_v1 = vadd.f32 %v895_v31, %v891_v59  ;;  %v936_v40 = vadd.f32 %v934_v38, %v930_v57  ;;  %v975_v2 = vadd.f32 %v973_v60, %v969_v45  ;;  %v1014_v5 = vadd.f32 %v1012_v37, %v1008_v33  ;;  %v1044_v41 = vpop.permute.xlu0 %1043 }
 0x15e   :  { %v3952_v3 = vsel %vm84_vm0, %v1047_v54, %v1042_v6 }
 0x15f   :  { %v901_v9 = vadd.f32 %v3939_v18, %v897_v1  ;;  %v940_v13 = vadd.f32 %v3942_v39, %v936_v40  ;;  %v979_v50 = vadd.f32 %v3945_v0, %v975_v2  ;;  %v1018_v20 = vadd.f32 %v3948_v15, %v1014_v5 }
 0x160   :  { %v1069_v55 = vpop.permute.xlu1 %1068 }
 0x161   :  { %v2384_v12 = vmul.f32 -1.442695, %v901_v9  ;;  %v2390_v10 = vmul.f32 -1.442695, %v940_v13  ;;  %v2396_v42 = vmul.f32 -1.442695, %v979_v50  ;;  %v1049_v49 = vpop.permute.xlu0 %1048 }
 0x162   :  { %v2402_v27 = vmul.f32 -1.442695, %v1018_v20  ;;  %v3960_v63 = vsel %vm84_vm0, %v1049_v49, %v1044_v41 }
 0x163   :  { %2701 = vpow2.f32 %v2384_v12 }
 0x164   :  { %2703 = vpow2.f32 %v2390_v10  ;;  %v1074_v43 = vpop.permute.xlu1 %1073 }
 0x165   :  { %2705 = vpow2.f32 %v2396_v42  ;;  %v1077_v14 = vsel %vm84_vm0, %v1074_v43, %v1069_v55  ;;  %v1071_v47 = vpop.permute.xlu0 %1070 }
 0x166   :  { %2707 = vpow2.f32 %v2402_v27 }
 0x168   :  { %v1282_v53 = vpop.permute.xlu1 %1281 }
 0x169   :  { %v1076_v17 = vpop.permute.xlu0 %1075 }
 0x16a   :  { %v3966_v34 = vsel %vm84_vm0, %v1076_v17, %v1071_v47 }
 0x16c   :  { %v1287_v26 = vpop.permute.xlu1 %1286 }
 0x16d   :  { %v2702_v51 = vpop.eup %2701  ;;  %v1290_v58 = vsel %vm84_vm0, %v1287_v26, %v1282_v53  ;;  %v1284_v6 = vpop.permute.xlu0 %1283 }
 0x16e   :  { %v2704_v59 = vpop.eup %2703  ;;  %v909_v52 = vadd.f32 1.0, %v2702_v51 }
 0x16f   :  { %v2706_v56 = vpop.eup %2705  ;;  %v948_v57 = vadd.f32 1.0, %v2704_v59 }
 0x170   :  { %v2708_v45 = vpop.eup %2707  ;;  %2709 = vrcp.f32 %v909_v52  ;;  %v987_v33 = vadd.f32 1.0, %v2706_v56  ;;  %v1309_v29 = vpop.permute.xlu1 %1308 }
 0x171   :  { %2711 = vrcp.f32 %v948_v57  ;;  %v1026_v31 = vadd.f32 1.0, %v2708_v45  ;;  %v1289_v38 = vpop.permute.xlu0 %1288 }
 0x172   :  { %2713 = vrcp.f32 %v987_v33  ;;  %v3972_v60 = vsel %vm84_vm0, %v1289_v38, %v1284_v6 }
 0x173   :  { %2715 = vrcp.f32 %v1026_v31 }
 0x174   :  { %v1314_v37 = vpop.permute.xlu1 %1313 }
 0x175   :  { %v1317_v54 = vsel %vm84_vm0, %v1314_v37, %v1309_v29  ;;  %v1311_v1 = vpop.permute.xlu0 %1310 }
 0x178   :  { %v1054_v40 = vpop.permute.xlu1 %1053 }
 0x179   :  { %v1316_v2 = vpop.permute.xlu0 %1315  ;;  %v1057_v56 = vsel %vm85_vm1, %v1054_v40, %v3952_v3 }
 0x17a   :  { %v2710_v5 = vpop.eup %2709  ;;  %v3978_v41 = vsel %vm84_vm0, %v1316_v2, %v1311_v1 }
 0x17b   :  { %v2712_v9 = vpop.eup %2711  ;;  %v915_v13 = vadd.f32 3.0, %v2710_v5 }
 0x17c   :  { %v2714_v50 = vpop.eup %2713  ;;  %v954_v20 = vadd.f32 3.0, %v2712_v9  ;;  %v1081_v55 = vpop.permute.xlu1 %1080 }
 0x17d   :  { %v2716_v12 = vpop.eup %2715  ;;  %v917_v10 = vsel %vm3393_vm10, 0.0, %v915_v13  ;;  %v993_v42 = vadd.f32 3.0, %v2714_v50  ;;  %v1056_v49 = vpop.permute.xlu0 %1055  ;;  %v1084_v29 = vsel %vm85_vm1, %v1081_v55, %v1077_v14 }
 0x17e   :  { %920 = vst [vmem:[#allocation2 + $0x30] sm:$0xff] %v917_v10  ;;  %v956_v27 = vsel %vm3393_vm10, 0.0, %v954_v20  ;;  %v1032_v43 = vadd.f32 3.0, %v2716_v12 }
 0x17f   :  { %959 = vst [vmem:[#allocation2 + $0x90] sm:$0xff] %v956_v27  ;;  %v995_v47 = vsel %vm3393_vm10, 0.0, %v993_v42 }
 0x180   :  { %998 = vst [vmem:[#allocation2 + $0xf0] sm:$0xff] %v995_v47  ;;  %v1034_v53 = vsel %vm3393_vm10, 0.0, %v1032_v43  ;;  %v1294_v17 = vpop.permute.xlu1 %1293 }
 0x181   :  { %1037 = vst [vmem:[#allocation2 + $0x150] sm:$0xff] %v1034_v53  ;;  %v1297_v26 = vsel %vm85_vm1, %v1294_v17, %v1290_v58  ;;  %v1083_v51 = vpop.permute.xlu0 %1082  ;;  %v1058_v58 = vsel %vm85_vm1, %v1056_v49, %v3960_v63 }
 0x182   :  { %v1085_v10 = vsel %vm85_vm1, %v1083_v51, %v3966_v34 }
 0x184   :  { %v1321_v6 = vpop.permute.xlu1 %1320 }
 0x185   :  { %v1324_v59 = vsel %vm85_vm1, %v1321_v6, %v1317_v54  ;;  %v1296_v52 = vpop.permute.xlu0 %1295 }
 0x188   :  { %v1061_v57 = vpop.permute.xlu1 %1060 }
 0x189   :  { %v1064_v45 = vsel %vm86_vm2, %v1061_v57, %v1057_v56  ;;  %v1323_v33 = vpop.permute.xlu0 %1322 }
 0x18a   :  { %v1125_v31 = vmul.f32 %v1064_v45, %v3804_v36  ;;  %v1164_v37 = vmul.f32 %v1064_v45, %v3807_v48  ;;  %v1203_v54 = vmul.f32 %v1064_v45, %v3821_v8  ;;  %v1242_v3 = vmul.f32 %v1064_v45, %v3824_v19 }
 0x18c   :  { %v1088_v38 = vpop.permute.xlu1 %1087 }
 0x18d   :  { %v1091_v1 = vsel %vm86_vm2, %v1088_v38, %v1084_v29  ;;  %v1063_v40 = vpop.permute.xlu0 %1062 }
 0x18e   :  { %v1129_v2 = vmul.f32 %v1091_v1, %v3812_v11  ;;  %v1168_v14 = vmul.f32 %v1091_v1, %v3815_v16  ;;  %v1207_v5 = vmul.f32 %v1091_v1, %v3818_v46  ;;  %v1246_v63 = vmul.f32 %v1091_v1, %v3827_v23 }
 0x18f   :  { %v1065_v9 = vsel %vm86_vm2, %v1063_v40, %v1058_v58 }
 0x190   :  { %v4014_v13 = vadd.f32 %v1129_v2, %v1125_v31  ;;  %v4016_v50 = vadd.f32 %v1168_v14, %v1164_v37  ;;  %v4018_v20 = vadd.f32 %v1207_v5, %v1203_v54  ;;  %v4020_v55 = vadd.f32 %v1246_v63, %v1242_v3  ;;  %v4022_v12 = vpop.permute.xlu1 %1095 }
 0x191   :  { %v1126_v42 = vmul.f32 %v1065_v9, %v3804_v36  ;;  %v1090_v49 = vpop.permute.xlu0 %1089  ;;  %v1165_v27 = vmul.f32 %v1065_v9, %v3807_v48  ;;  %v1204_v43 = vmul.f32 %v1065_v9, %v3821_v8  ;;  %v1243_v47 = vmul.f32 %v1065_v9, %v3824_v19 }
 0x192   :  { %v1092_v53 = vsel %vm86_vm2, %v1090_v49, %v1085_v10  ;;  %v1298_v3 = vsel %vm85_vm1, %v1296_v52, %v3972_v60 }
 0x193   :  { %v1130_v17 = vmul.f32 %v1092_v53, %v3812_v11  ;;  %v1169_v6 = vmul.f32 %v1092_v53, %v3815_v16  ;;  %v1208_v56 = vmul.f32 %v1092_v53, %v3818_v46  ;;  %v1247_v34 = vmul.f32 %v1092_v53, %v3827_v23 }
 0x194   :  { %v1101_v51 = vpop.permute.xlu1 %1100  ;;  %v1325_v53 = vsel %vm85_vm1, %v1323_v33, %v3978_v41 }
 0x195   :  { %v4037_v57 = vadd.f32 %v1130_v17, %v1126_v42  ;;  %v4039_v45 = vadd.f32 %v1169_v6, %v1165_v27  ;;  %v4041_v29 = vadd.f32 %v1208_v56, %v1204_v43  ;;  %v4043_v58 = vadd.f32 %v1247_v34, %v1243_v47  ;;  %v1098_v31 = vpop.permute.xlu0 %1097 }
 0x198   :  { %v1301_v38 = vpop.permute.xlu1 %1300 }
 0x199   :  { %v1304_v37 = vsel %vm86_vm2, %v1301_v38, %v1297_v26  ;;  %v1103_v54 = vpop.permute.xlu0 %1102 }
 0x19a   :  { %v1365_v1 = vmul.f32 %v1304_v37, %v3804_v36  ;;  %v1404_v2 = vmul.f32 %v1304_v37, %v3807_v48  ;;  %v1443_v14 = vmul.f32 %v1304_v37, %v3821_v8  ;;  %v1482_v5 = vmul.f32 %v1304_v37, %v3824_v19 }
 0x19c   :  { %v1328_v40 = vpop.permute.xlu1 %1327 }
 0x19d   :  { %v1331_v63 = vsel %vm86_vm2, %v1328_v40, %v1324_v59  ;;  %v1303_v9 = vpop.permute.xlu0 %1302 }
 0x19e   :  { %v1369_v26 = vmul.f32 %v1331_v63, %v3812_v11  ;;  %v1408_v10 = vmul.f32 %v1331_v63, %v3815_v16  ;;  %v1447_v42 = vmul.f32 %v1331_v63, %v3818_v46  ;;  %v1486_v60 = vmul.f32 %v1331_v63, %v3827_v23 }
 0x19f   :  { %v1305_v52 = vsel %vm86_vm2, %v1303_v9, %v1298_v3 }
 0x1a0   :  { %v4062_v49 = vadd.f32 %v1369_v26, %v1365_v1  ;;  %v4064_v27 = vadd.f32 %v1408_v10, %v1404_v2  ;;  %v4066_v43 = vadd.f32 %v1447_v42, %v1443_v14  ;;  %v4068_v47 = vadd.f32 %v1486_v60, %v1482_v5  ;;  %v4070_v59 = vpop.permute.xlu1 %1335 }
 0x1a1   :  { %v1366_v17 = vmul.f32 %v1305_v52, %v3804_v36  ;;  %v1330_v6 = vpop.permute.xlu0 %1329  ;;  %v1405_v56 = vmul.f32 %v1305_v52, %v3807_v48  ;;  %v1444_v34 = vmul.f32 %v1305_v52, %v3821_v8  ;;  %v1483_v38 = vmul.f32 %v1305_v52, %v3824_v19 }
 0x1a2   :  { %v1332_v37 = vsel %vm86_vm2, %v1330_v6, %v1325_v53  ;;  %v1104_v52 = vsel %vm84_vm0, %v1101_v51, %v4022_v12 }
 0x1a3   :  { %v1370_v3 = vmul.f32 %v1332_v37, %v3812_v11  ;;  %v1409_v1 = vmul.f32 %v1332_v37, %v3815_v16  ;;  %v1448_v40 = vmul.f32 %v1332_v37, %v3818_v46  ;;  %v1487_v41 = vmul.f32 %v1332_v37, %v3827_v23 }
 0x1a4   :  { %v4085_v33 = vpop.permute.xlu1 %1340  ;;  %v1105_v46 = vsel %vm84_vm0, %v1103_v54, %v1098_v31 }
 0x1a5   :  { %v4087_v36 = vadd.f32 %v1370_v3, %v1366_v17  ;;  %v4089_v48 = vadd.f32 %v1409_v1, %v1405_v56  ;;  %v4091_v8 = vadd.f32 %v1448_v40, %v1444_v34  ;;  %v4093_v19 = vadd.f32 %v1487_v41, %v1483_v38  ;;  %v1338_v2 = vpop.permute.xlu0 %1337 }
 0x1a8   :  { %v1108_v14 = vpop.permute.xlu1 %1107 }
 0x1a9   :  { %v1343_v5 = vpop.permute.xlu0 %1342  ;;  %v1111_v34 = vsel %vm85_vm1, %v1108_v14, %v1104_v52 }
 0x1aa   :  { %v1345_v31 = vsel %vm84_vm0, %v1343_v5, %v1338_v2 }
 0x1ac   :  { %v4095_v11 = vpop.permute.xlu1 %1347 }
 0x1ad   :  { %v1110_v16 = vpop.permute.xlu0 %1109 }
 0x1ae   :  { %v1112_v54 = vsel %vm85_vm1, %v1110_v16, %v1105_v46 }
 0x1b0   :  { %v877_v63 = vpop.permute.xlu1 %876 }
 0x1b1   :  { %v879_v23 = vsel %vm86_vm2, %v877_v63, %v3907_v35  ;;  %v1350_v9 = vpop.permute.xlu0 %1349 }
 0x1b2   :  { %v896_v26 = vmul.f32 %v3913_v24, %v879_v23  ;;  %v935_v10 = vmul.f32 %v3917_v4, %v879_v23  ;;  %v974_v42 = vmul.f32 %v3920_v30, %v879_v23  ;;  %v1013_v60 = vmul.f32 %v3923_v62, %v879_v23 }
 0x1b3   :  { %v1352_v12 = vsel %vm85_vm1, %v1350_v9, %v1345_v31 }
 0x1b4   :  { %v898_v35 = vadd.f32 %v896_v26, %v3845_v61  ;;  %v937_v53 = vadd.f32 %v935_v10, %v3847_v7  ;;  %v976_v17 = vadd.f32 %v974_v42, %v3851_v32  ;;  %v1015_v6 = vadd.f32 %v1013_v60, %v3853_v28  ;;  %v1117_v56 = vpop.permute.xlu1 %1116 }
 0x1b5   :  { %v1119_v51 = vsel %vm86_vm2, %v1117_v56, %v1112_v54  ;;  %v1115_v38 = vpop.permute.xlu0 %1114 }
 0x1b6   :  { %v902_v37 = vadd.f32 %v3939_v18, %v898_v35  ;;  %v941_v61 = vadd.f32 %v3942_v39, %v937_v53  ;;  %v980_v7 = vadd.f32 %v3945_v0, %v976_v17  ;;  %v1019_v32 = vadd.f32 %v3948_v15, %v1015_v6 }
 0x1b7   :  { %v1136_v28 = vmul.f32 %v1119_v51, %v3913_v24  ;;  %v1175_v3 = vmul.f32 %v1119_v51, %v3917_v4  ;;  %v1214_v1 = vmul.f32 %v1119_v51, %v3920_v30  ;;  %v1253_v40 = vmul.f32 %v1119_v51, %v3923_v62 }
 0x1b8   :  { %v2385_v41 = vmul.f32 -1.442695, %v902_v37  ;;  %v2391_v2 = vmul.f32 -1.442695, %v941_v61  ;;  %v2397_v14 = vmul.f32 -1.442695, %v980_v7  ;;  %v1118_v5 = vsel %vm86_vm2, %v1115_v38, %v1111_v34  ;;  %v1357_v31 = vpop.permute.xlu1 %1356 }
 0x1b9   :  { %v2403_v16 = vmul.f32 -1.442695, %v1019_v32  ;;  %v1138_v63 = vadd.f32 %v1136_v28, %v4037_v57  ;;  %v1177_v46 = vadd.f32 %v1175_v3, %v4039_v45  ;;  %v1216_v23 = vadd.f32 %v1214_v1, %v4041_v29  ;;  %v1355_v28 = vpop.permute.xlu0 %1354 }
 0x1ba   :  { %2717 = vpow2.f32 %v2385_v41  ;;  %v1255_v9 = vadd.f32 %v1253_v40, %v4043_v58  ;;  %v1135_v26 = vmul.f32 %v1118_v5, %v3913_v24  ;;  %v1174_v10 = vmul.f32 %v1118_v5, %v3917_v4 }
 0x1bb   :  { %2719 = vpow2.f32 %v2391_v2  ;;  %v1142_v42 = vadd.f32 %v1138_v63, %v3939_v18  ;;  %v1181_v60 = vadd.f32 %v1177_v46, %v3942_v39  ;;  %v1220_v52 = vadd.f32 %v1216_v23, %v3945_v0 }
 0x1bc   :  { %2721 = vpow2.f32 %v2397_v14  ;;  %v1259_v57 = vadd.f32 %v1255_v9, %v3948_v15  ;;  %v1137_v45 = vadd.f32 %v1135_v26, %v4014_v13  ;;  %v1176_v29 = vadd.f32 %v1174_v10, %v4016_v50 }
 0x1bd   :  { %2723 = vpow2.f32 %v2403_v16  ;;  %v2417_v58 = vmul.f32 -1.442695, %v1142_v42  ;;  %v2423_v54 = vmul.f32 -1.442695, %v1181_v60  ;;  %v2429_v35 = vmul.f32 -1.442695, %v1220_v52 }
 0x1be   :  { %v2435_v53 = vmul.f32 -1.442695, %v1259_v57  ;;  %v1141_v17 = vadd.f32 %v1137_v45, %v3939_v18  ;;  %v1180_v6 = vadd.f32 %v1176_v29, %v3942_v39  ;;  %v1213_v56 = vmul.f32 %v1118_v5, %v3920_v30 }
 0x1bf   :  { %2725 = vpow2.f32 %v2417_v58  ;;  %v1252_v34 = vmul.f32 %v1118_v5, %v3923_v62  ;;  %v1359_v13 = vsel %vm86_vm2, %v1357_v31, %v1352_v12  ;;  %v1344_v32 = vsel %vm84_vm0, %v4085_v33, %v4070_v59  ;;  %vm4234_vm0 = vmor %vm3376_vm5, %vm1360_vm15 }
 0x1c0   :  { %2727 = vpow2.f32 %v2423_v54  ;;  %v2416_v50 = vmul.f32 -1.442695, %v1141_v17  ;;  %v2422_v51 = vmul.f32 -1.442695, %v1180_v6  ;;  %v1215_v38 = vadd.f32 %v1213_v56, %v4018_v20 }
 0x1c1   :  { %2729 = vpow2.f32 %v2429_v35  ;;  %v1254_v37 = vadd.f32 %v1252_v34, %v4020_v55  ;;  %v1376_v7 = vmul.f32 %v1359_v13, %v3913_v24  ;;  %v1415_v1 = vmul.f32 %v1359_v13, %v3917_v4 }
 0x1c2   :  { %2731 = vpow2.f32 %v2435_v53  ;;  %v1219_v61 = vadd.f32 %v1215_v38, %v3945_v0  ;;  %v1454_v55 = vmul.f32 %v1359_v13, %v3920_v30  ;;  %v1351_v41 = vsel %vm85_vm1, %v4095_v11, %v1344_v32  ;;  %vm4246_vm1 = vmor %vm3393_vm10, %vm1360_vm15 }
 0x1c3   :  { %2733 = vpow2.f32 %v2416_v50  ;;  %v1258_v12 = vadd.f32 %v1254_v37, %v3948_v15  ;;  %v1493_v14 = vmul.f32 %v1359_v13, %v3923_v62  ;;  %v1378_v5 = vadd.f32 %v1376_v7, %v4087_v36 }
 0x1c4   :  { %v2718_v3 = vpop.eup %2717  ;;  %2735 = vpow2.f32 %v2422_v51  ;;  %v2428_v20 = vmul.f32 -1.442695, %v1219_v61  ;;  %v1358_v16 = vsel %vm86_vm2, %v1355_v28, %v1351_v41  ;;  %v1417_v26 = vadd.f32 %v1415_v1, %v4089_v48 }
 0x1c5   :  { %v2720_v40 = vpop.eup %2719  ;;  %v910_v2 = vadd.f32 1.0, %v2718_v3  ;;  %v2434_v23 = vmul.f32 -1.442695, %v1258_v12  ;;  %v1456_v11 = vadd.f32 %v1454_v55, %v4091_v8  ;;  %v1495_v42 = vadd.f32 %v1493_v14, %v4093_v19 }
 0x1c6   :  { %v2722_v59 = vpop.eup %2721  ;;  %v949_v33 = vadd.f32 1.0, %v2720_v40  ;;  %2737 = vpow2.f32 %v2428_v20  ;;  %v1375_v60 = vmul.f32 %v1358_v16, %v3913_v24  ;;  %v1414_v36 = vmul.f32 %v1358_v16, %v3917_v4 }
 0x1c7   :  { %v2724_v63 = vpop.eup %2723  ;;  %2739 = vrcp.f32 %v910_v2  ;;  %v988_v46 = vadd.f32 1.0, %v2722_v59  ;;  %v1382_v57 = vadd.f32 %v1378_v5, %v3939_v18  ;;  %v1453_v45 = vmul.f32 %v1358_v16, %v3920_v30 }
 0x1c8   :  { %2741 = vrcp.f32 %v949_v33  ;;  %v1027_v9 = vadd.f32 1.0, %v2724_v63  ;;  %v1377_v48 = vadd.f32 %v1375_v60, %v4062_v49  ;;  %v1492_v8 = vmul.f32 %v1358_v16, %v3923_v62 }
 0x1c9   :  { %v2726_v10 = vpop.eup %2725  ;;  %2743 = vrcp.f32 %v988_v46  ;;  %v1421_v24 = vadd.f32 %v1417_v26, %v3942_v39  ;;  %v1460_v4 = vadd.f32 %v1456_v11, %v3945_v0  ;;  %v1499_v53 = vadd.f32 %v1495_v42, %v3948_v15 }
 0x1ca   :  { %v2728_v25 = vpop.eup %2727  ;;  %2745 = vrcp.f32 %v1027_v9  ;;  %v1150_v52 = vadd.f32 1.0, %v2726_v10  ;;  %v1416_v30 = vadd.f32 %v1414_v36, %v4064_v27  ;;  %v2449_v49 = vmul.f32 -1.442695, %v1382_v57 }
 0x1cb   :  { %v2730_v29 = vpop.eup %2729  ;;  %v1189_v31 = vadd.f32 1.0, %v2728_v25  ;;  %2747 = vpow2.f32 %v2434_v23  ;;  %v1455_v62 = vadd.f32 %v1453_v45, %v4066_v43  ;;  %v1381_v34 = vadd.f32 %v1377_v48, %v3939_v18 }
 0x1cc   :  { %v2732_v58 = vpop.eup %2731  ;;  %2749 = vrcp.f32 %v1150_v52  ;;  %v1228_v19 = vadd.f32 1.0, %v2730_v29  ;;  %v1494_v13 = vadd.f32 %v1492_v8, %v4068_v47  ;;  %v2455_v51 = vmul.f32 -1.442695, %v1421_v24 }
 0x1cd   :  { %v2734_v54 = vpop.eup %2733  ;;  %2751 = vrcp.f32 %v1189_v31  ;;  %v1267_v35 = vadd.f32 1.0, %v2732_v58  ;;  %v2461_v37 = vmul.f32 -1.442695, %v1460_v4  ;;  %v1420_v61 = vadd.f32 %v1416_v30, %v3942_v39 }
 0x1ce   :  { %v2736_v17 = vpop.eup %2735  ;;  %2753 = vrcp.f32 %v1228_v19  ;;  %v1149_v6 = vadd.f32 1.0, %v2734_v54  ;;  %v2467_v43 = vmul.f32 -1.442695, %v1499_v53  ;;  %v1459_v12 = vadd.f32 %v1455_v62, %v3945_v0 }
 0x1cf   :  { %2755 = vrcp.f32 %v1267_v35  ;;  %v1188_v56 = vadd.f32 1.0, %v2736_v17  ;;  %v2448_v47 = vmul.f32 -1.442695, %v1381_v34  ;;  %v1498_v3 = vadd.f32 %v1494_v13, %v3948_v15 }
 0x1d0   :  { %v2738_v50 = vpop.eup %2737  ;;  %2757 = vrcp.f32 %v1149_v6  ;;  %v2454_v0 = vmul.f32 -1.442695, %v1420_v61  ;;  %v2460_v33 = vmul.f32 -1.442695, %v1459_v12 }
 0x1d1   :  { %v2740_v38 = vpop.eup %2739  ;;  %2759 = vrcp.f32 %v1188_v56  ;;  %v1227_v27 = vadd.f32 1.0, %v2738_v50  ;;  %v2466_v46 = vmul.f32 -1.442695, %v1498_v3 }
 0x1d2   :  { %v2742_v7 = vpop.eup %2741  ;;  %v916_v32 = vadd.f32 3.0, %v2740_v38  ;;  %2761 = vpow2.f32 %v2449_v49 }
 0x1d3   :  { %v2744_v18 = vpop.eup %2743  ;;  %v955_v28 = vadd.f32 3.0, %v2742_v7  ;;  %2763 = vrcp.f32 %v1227_v27 }
 0x1d4   :  { %v2746_v20 = vpop.eup %2745  ;;  %v918_v1 = vsel %vm3376_vm5, 0.0, %v916_v32  ;;  %v994_v55 = vadd.f32 3.0, %v2744_v18  ;;  %2765 = vpow2.f32 %v2455_v51 }
 0x1d5   :  { %v2748_v40 = vpop.eup %2747  ;;  %921 = vst [vmem:[#allocation2 + $0x38] sm:$0xff] %v918_v1  ;;  %v957_v39 = vsel %vm3376_vm5, 0.0, %v955_v28  ;;  %v1033_v41 = vadd.f32 3.0, %v2746_v20  ;;  %2767 = vpow2.f32 %v2461_v37 }
 0x1d6   :  { %v2750_v2 = vpop.eup %2749  ;;  %960 = vst [vmem:[#allocation2 + $0x98] sm:$0xff] %v957_v39  ;;  %v996_v14 = vsel %vm3376_vm5, 0.0, %v994_v55  ;;  %v1266_v59 = vadd.f32 1.0, %v2748_v40  ;;  %2769 = vpow2.f32 %v2467_v43 }
 0x1d7   :  { %v2752_v5 = vpop.eup %2751  ;;  %999 = vst [vmem:[#allocation2 + $0xf8] sm:$0xff] %v996_v14  ;;  %v1035_v16 = vsel %vm3376_vm5, 0.0, %v1033_v41  ;;  %v1156_v63 = vadd.f32 3.0, %v2750_v2  ;;  %2771 = vpow2.f32 %v2448_v47 }
 0x1d8   :  { %v2754_v23 = vpop.eup %2753  ;;  %1038 = vst [vmem:[#allocation2 + $0x158] sm:$0xff] %v1035_v16  ;;  %v1195_v9 = vadd.f32 3.0, %v2752_v5  ;;  %2773 = vrcp.f32 %v1266_v59 }
 0x1d9   :  { %v2756_v26 = vpop.eup %2755  ;;  %v1158_v11 = vsel %vm4199_vm13, 0.0, %v1156_v63  ;;  %v1234_v10 = vadd.f32 3.0, %v2754_v23  ;;  %2775 = vpow2.f32 %v2454_v0  ;;  %v4262_v23 = vmov 0.0  }
 0x1da   :  { %v2758_v42 = vpop.eup %2757  ;;  %1161 = vst [vmem:[#allocation2 + $0x48] sm:$0xff] %v1158_v11  ;;  %v1197_v60 = vsel %vm4199_vm13, 0.0, %v1195_v9  ;;  %v1273_v36 = vadd.f32 3.0, %v2756_v26  ;;  %2777 = vpow2.f32 %v2460_v33  ;;  %v4264_v9 = vmov 0.0  }
 0x1db   :  { %v2760_v52 = vpop.eup %2759  ;;  %1200 = vst [vmem:[#allocation2 + $0xa8] sm:$0xff] %v1197_v60  ;;  %v1236_v57 = vsel %vm4199_vm13, 0.0, %v1234_v10  ;;  %v1155_v45 = vadd.f32 3.0, %v2758_v42  ;;  %2779 = vpow2.f32 %v2466_v46  ;;  %v4266_v26 = vmov 0.0  }
 0x1dc   :  { %v2762_v29 = vpop.eup %2761  ;;  %1239 = vst [vmem:[#allocation2 + $0x108] sm:$0xff] %v1236_v57  ;;  %v1275_v31 = vsel %vm4199_vm13, 0.0, %v1273_v36  ;;  %v1194_v48 = vadd.f32 3.0, %v2760_v52  ;;  %v4268_v11 = vmov 0.0   ;;  %v4270_v10 = vmov 0.0  }
 0x1dd   :  { %v2764_v8 = vpop.eup %2763  ;;  %1278 = vst [vmem:[#allocation2 + $0x168] sm:$0xff] %v1275_v31  ;;  %v1157_v58 = vsel %vm4213_vm14, 0.0, %v1155_v45  ;;  %v1390_v19 = vadd.f32 1.0, %v2762_v29  ;;  %v4272_v42 = vmov 0.0   ;;  %v4274_v60 = vmov 0.0  }
 0x1de   :  { %v2766_v24 = vpop.eup %2765  ;;  %1160 = vst [vmem:[#allocation2 + $0x40] sm:$0xff] %v1157_v58  ;;  %v1196_v4 = vsel %vm4213_vm14, 0.0, %v1194_v48  ;;  %v1233_v54 = vadd.f32 3.0, %v2764_v8  ;;  %v4276_v36 = vmov 0.0  }
 0x1df   :  { %v2768_v35 = vpop.eup %2767  ;;  %1199 = vst [vmem:[#allocation2 + $0xa0] sm:$0xff] %v1196_v4  ;;  %2781 = vrcp.f32 %v1390_v19  ;;  %v1429_v53 = vadd.f32 1.0, %v2766_v24 }
 0x1e0   :  { %v2770_v30 = vpop.eup %2769  ;;  %v1235_v17 = vsel %vm4213_vm14, 0.0, %v1233_v54  ;;  %v1468_v6 = vadd.f32 1.0, %v2768_v35 }
 0x1e1   :  { %v2772_v49 = vpop.eup %2771  ;;  %1238 = vst [vmem:[#allocation2 + $0x100] sm:$0xff] %v1235_v17  ;;  %2783 = vrcp.f32 %v1429_v53  ;;  %v1507_v62 = vadd.f32 1.0, %v2770_v30 }
 0x1e2   :  { %v2774_v56 = vpop.eup %2773  ;;  %2785 = vrcp.f32 %v1468_v6  ;;  %v1389_v34 = vadd.f32 1.0, %v2772_v49 }
 0x1e3   :  { %v2776_v13 = vpop.eup %2775  ;;  %v1272_v50 = vadd.f32 3.0, %v2774_v56  ;;  %2787 = vrcp.f32 %v1507_v62 }
 0x1e4   :  { %v2778_v51 = vpop.eup %2777  ;;  %2789 = vrcp.f32 %v1389_v34  ;;  %v1428_v38 = vadd.f32 1.0, %v2776_v13 }
 0x1e5   :  { %v2780_v27 = vpop.eup %2779  ;;  %v1274_v37 = vsel %vm4213_vm14, 0.0, %v1272_v50  ;;  %v1467_v61 = vadd.f32 1.0, %v2778_v51 }
 0x1e6   :  { %1277 = vst [vmem:[#allocation2 + $0x160] sm:$0xff] %v1274_v37  ;;  %2791 = vrcp.f32 %v1428_v38  ;;  %v1506_v7 = vadd.f32 1.0, %v2780_v27 }
 0x1e7   :  { %2793 = vrcp.f32 %v1467_v61 }
 0x1e8   :  { %2795 = vrcp.f32 %v1506_v7 }
 0x1e9   :  { %v2782_v32 = vpop.eup %2781 }
 0x1ea   :  { %v1396_v12 = vadd.f32 3.0, %v2782_v32 }
 0x1eb   :  { %v2784_v18 = vpop.eup %2783 }
 0x1ec   :  { %v2786_v28 = vpop.eup %2785  ;;  %v1398_v47 = vsel %vm4234_vm0, 0.0, %v1396_v12  ;;  %v1435_v3 = vadd.f32 3.0, %v2784_v18 }
 0x1ed   :  { %v2788_v20 = vpop.eup %2787  ;;  %1401 = vst [vmem:[#allocation2 + $0x58] sm:$0xff] %v1398_v47  ;;  %v1474_v1 = vadd.f32 3.0, %v2786_v28 }
 0x1ee   :  { %v2790_v55 = vpop.eup %2789  ;;  %v1437_v40 = vsel %vm4234_vm0, 0.0, %v1435_v3  ;;  %v1513_v39 = vadd.f32 3.0, %v2788_v20 }
 0x1ef   :  { %1440 = vst [vmem:[#allocation2 + $0xb8] sm:$0xff] %v1437_v40  ;;  %v1476_v41 = vsel %vm4234_vm0, 0.0, %v1474_v1  ;;  %v1395_v0 = vadd.f32 3.0, %v2790_v55 }
 0x1f0   :  { %v2792_v2 = vpop.eup %2791  ;;  %1479 = vst [vmem:[#allocation2 + $0x118] sm:$0xff] %v1476_v41  ;;  %v1515_v14 = vsel %vm4234_vm0, 0.0, %v1513_v39 }
 0x1f1   :  { %v2794_v15 = vpop.eup %2793  ;;  %1518 = vst [vmem:[#allocation2 + $0x178] sm:$0xff] %v1515_v14  ;;  %v1397_v44 = vsel %vm4246_vm1, 0.0, %v1395_v0  ;;  %v1434_v21 = vadd.f32 3.0, %v2792_v2 }
 0x1f2   :  { %v2796_v59 = vpop.eup %2795  ;;  %1400 = vst [vmem:[#allocation2 + $0x50] sm:$0xff] %v1397_v44  ;;  %v1473_v33 = vadd.f32 3.0, %v2794_v15 }
 0x1f3   :  { %v1436_v5 = vsel %vm4246_vm1, 0.0, %v1434_v21  ;;  %v1512_v16 = vadd.f32 3.0, %v2796_v59 }
 0x1f4   :  { %1439 = vst [vmem:[#allocation2 + $0xb0] sm:$0xff] %v1436_v5  ;;  %v1475_v63 = vsel %vm4246_vm1, 0.0, %v1473_v33 }
 0x1f5   :  { %1478 = vst [vmem:[#allocation2 + $0x110] sm:$0xff] %v1475_v63  ;;  %v1514_v46 = vsel %vm4246_vm1, 0.0, %v1512_v16 }
 0x1f6   :  { %1517 = vst [vmem:[#allocation2 + $0x170] sm:$0xff] %v1514_v46 }
 0x1f7 LB: > { %4860 = sst [smem:[#allocation13_spill]] %s2921_s30  ;;  %s4309_s7 = smul.u32 12, %s2921_s30  ;;  %s2921_s30 = sphi %s4278_s30, %s1524_s30   ;;  %v2917_v36 = vphi %v4276_v36, %v4962_v36   ;;  %v2913_v60 = vphi %v4274_v60, %v4961_v60   ;;  %v2909_v42 = vphi %v4272_v42, %v4960_v42   ;;  %v2905_v10 = vphi %v4270_v10, %v4959_v10   ;;  %v2901_v11 = vphi %v4268_v11, %v4958_v11   ;;  %v2897_v26 = vphi %v4266_v26, %v4957_v26   ;;  %v2893_v9 = vphi %v4264_v9, %v4956_v9   ;;  %v2889_v23 = vphi %v4262_v23, %v4955_v23  }
 0x1f8   : > { %s2468_s8 = sshll.u32 %s2921_s30, 1 }
 0x1f9   : > { %s1538_s9 = sshra.s32 %s4309_s7, 7  ;;  %s1542_s3 = sand.u32 127, %s4309_s7 }
 0x1fa   : > { %s2470_s4 = sshll.u32 %s1538_s9, 10  ;;  %s1548_s10 = sadd.s32 128, %s1542_s3 }
 0x1fb   : > { %s1543_s15 = sadd.s32 %s2470_s4, %s1542_s3  ;;  %s4314_s12 = sadd.s32 1, %s2468_s8 }
 0x1fc   : > { %s4316_s13 = sld [smem:[#allocation7 + %s1543_s15]]  ;;  %s1549_s14 = sadd.s32 %s2470_s4, %s1548_s10 }
 0x1fd   : > { %s1554_s16 = sadd.s32 256, %s1542_s3  ;;  %s1560_s17 = sadd.s32 384, %s1542_s3 }
 0x1fe   : > { %s1555_s18 = sadd.s32 %s2470_s4, %s1554_s16  ;;  %s1561_s19 = sadd.s32 %s2470_s4, %s1560_s17 }
 0x1ff   : > { %s4318_s20 = sld [smem:[#allocation7 + %s1549_s14]]  ;;  %s1566_s0 = sadd.s32 512, %s1542_s3 }
 0x200   : > { %s4320_s21 = sld [smem:[#allocation7 + %s1555_s18]]  ;;  %s1572_s22 = sadd.s32 640, %s1542_s3 }
 0x201   : > { %s4322_s23 = sld [smem:[#allocation7 + %s1561_s19]]  ;;  %s1567_s24 = sadd.s32 %s2470_s4, %s1566_s0 }
 0x202   : > { %s4324_s11 = sld [smem:[#allocation7 + %s1567_s24]]  ;;  %s1573_s25 = sadd.s32 %s2470_s4, %s1572_s22  ;;  %v1545_v52 = vstv %s4316_s13 }
 0x203   : > { %s1578_s26 = sadd.s32 768, %s1542_s3  ;;  %s1584_s2 = sadd.s32 896, %s1542_s3 }
 0x204   : > { %s1579_s1 = sadd.s32 %s2470_s4, %s1578_s26  ;;  %s1585_s27 = sadd.s32 %s2470_s4, %s1584_s2 }
 0x205   : > { %s4326_s28 = sld [smem:[#allocation7 + %s1573_s25]]  ;;  %s1591_s9 = sadd.s32 1, %s4309_s7  ;;  %v1551_v57 = vstv %s4318_s20 }
 0x206   : > { %s4328_s29 = sld [smem:[#allocation7 + %s1579_s1]]  ;;  %s1592_s10 = sshra.s32 %s1591_s9, 7  ;;  %v1557_v31 = vstv %s4320_s21 }
 0x207   : > { %s4330_s8 = sld [smem:[#allocation7 + %s1585_s27]]  ;;  %s1596_s15 = sand.u32 127, %s1591_s9  ;;  %v1563_v48 = vstv %s4322_s23 }
 0x208   : > { %s2471_s14 = sshll.u32 %s1592_s10, 10  ;;  %s1602_s16 = sadd.s32 128, %s1596_s15  ;;  %v1569_v8 = vstv %s4324_s11 }
 0x209   : > { %s1597_s17 = sadd.s32 %s2471_s14, %s1596_s15  ;;  %s1603_s18 = sadd.s32 %s2471_s14, %s1602_s16 }
 0x20a   : > { %s4333_s19 = sld [smem:[#allocation7 + %s1597_s17]]  ;;  %s1645_s0 = sadd.s32 2, %s4309_s7 }
 0x20b   : > { %s1608_s22 = sadd.s32 256, %s1596_s15  ;;  %s1614_s3 = sadd.s32 384, %s1596_s15  ;;  %v1575_v58 = vstv %s4326_s28 }
 0x20c   : > { %s4336_s24 = sld [smem:[#allocation7 + %s1603_s18]]  ;;  %s1609_s4 = sadd.s32 %s2471_s14, %s1608_s22  ;;  %v1581_v19 = vstv %s4328_s29 }
 0x20d   : > { %4861 = sst [smem:[#allocation14_spill]] %s4330_s8  ;;  %s1615_s26 = sadd.s32 %s2471_s14, %s1614_s3 }
 0x20e   : > { %s4338_s25 = sld [smem:[#allocation7 + %s1609_s4]]  ;;  %s1620_s2 = sadd.s32 512, %s1596_s15 }
 0x20f   : > { %s1626_s1 = sadd.s32 640, %s1596_s15  ;;  %s1621_s27 = sadd.s32 %s2471_s14, %s1620_s2 }
 0x210   : > { %4862 = sst [smem:[#allocation15_spill]] %s4333_s19  ;;  %s1627_s6 = sadd.s32 %s2471_s14, %s1626_s1 }
 0x211   : > { %s4340_s9 = sld [smem:[#allocation7 + %s1615_s26]]  ;;  %s1632_s16 = sadd.s32 768, %s1596_s15 }
 0x212   : > { %4863 = sst [smem:[#allocation16_spill]] %s4336_s24  ;;  %s1638_s17 = sadd.s32 896, %s1596_s15 }
 0x213   : > { %s4342_s10 = sld [smem:[#allocation7 + %s1621_s27]]  ;;  %s1633_s19 = sadd.s32 %s2471_s14, %s1632_s16 }
 0x214   : > { %4864 = sst [smem:[#allocation17_spill]] %s4338_s25  ;;  %s1639_s18 = sadd.s32 %s2471_s14, %s1638_s17 }
 0x215   : > { %s4344_s5 = sld [smem:[#allocation7 + %s1627_s6]]  ;;  %s1646_s22 = sshra.s32 %s1645_s0, 7 }
 0x216   : > { %s4346_s8 = sld [smem:[#allocation7 + %s1633_s19]]  ;;  %s1650_s4 = sand.u32 127, %s1645_s0 }
 0x217   : > { %4865 = sst [smem:[#allocation18_spill]] %s4340_s9  ;;  %s2472_s25 = sshll.u32 %s1646_s22, 10 }
 0x218   : > { %s1656_s3 = sadd.s32 128, %s1650_s4  ;;  %s4348_s24 = sld [smem:[#allocation7 + %s1639_s18]] }
 0x219   : > { %4866 = sst [smem:[#allocation19_spill]] %s4342_s10  ;;  %s1651_s2 = sadd.s32 %s2472_s25, %s1650_s4 }
 0x21a   : > { %s4350_s1 = sld [smem:[#allocation7 + %s1651_s2]]  ;;  %s1657_s26 = sadd.s32 %s2472_s25, %s1656_s3 }
 0x21b   : > { %4867 = sst [smem:[#allocation20_spill]] %s4344_s5  ;;  %s1662_s27 = sadd.s32 256, %s1650_s4 }
 0x21c   : > { %4868 = sst [smem:[#allocation21_spill]] %s4346_s8  ;;  %s1668_s10 = sadd.s32 384, %s1650_s4 }
 0x21d   : > { %s1663_s9 = sadd.s32 %s2472_s25, %s1662_s27  ;;  %s1669_s15 = sadd.s32 %s2472_s25, %s1668_s10 }
 0x21e   : > { %4869 = sst [smem:[#allocation22_spill]] %s4348_s24  ;;  %s1674_s14 = sadd.s32 512, %s1650_s4 }
 0x21f   : > { %s4352_s6 = sld [smem:[#allocation7 + %s1657_s26]]  ;;  %s1680_s16 = sadd.s32 640, %s1650_s4 }
 0x220   : > { %4870 = sst [smem:[#allocation23_spill]] %s4350_s1  ;;  %s1675_s17 = sadd.s32 %s2472_s25, %s1674_s14 }
 0x221   : > { %s4354_s19 = sld [smem:[#allocation7 + %s1663_s9]]  ;;  %s1681_s22 = sadd.s32 %s2472_s25, %s1680_s16 }
 0x222   : > { %s4356_s0 = sld [smem:[#allocation7 + %s1669_s15]]  ;;  %s1686_s2 = sadd.s32 768, %s1650_s4 }
 0x223   : > { %s4358_s18 = sld [smem:[#allocation7 + %s1675_s17]]  ;;  %s1692_s3 = sadd.s32 896, %s1650_s4 }
 0x224   : > { %s1687_s1 = sadd.s32 %s2472_s25, %s1686_s2  ;;  %s1693_s24 = sadd.s32 %s2472_s25, %s1692_s3 }
 0x225   : > { %4871 = sst [smem:[#allocation24_spill]] %s4352_s6  ;;  %s1699_s9 = sadd.s32 3, %s4309_s7 }
 0x226   : > { %s4360_s27 = sld [smem:[#allocation7 + %s1681_s22]]  ;;  %s1704_s6 = sand.u32 127, %s1699_s9 }
 0x227   : > { %4872 = sst [smem:[#allocation25_spill]] %s4354_s19  ;;  %s1700_s19 = sshra.s32 %s1699_s9, 7 }
 0x228   : > { %4873 = sst [smem:[#allocation26_spill]] %s4356_s0  ;;  %s2473_s15 = sshll.u32 %s1700_s19, 10 }
 0x229   : > { %4874 = sst [smem:[#allocation27_spill]] %s4358_s18  ;;  %s1710_s0 = sadd.s32 128, %s1704_s6 }
 0x22a   : > { %s4362_s10 = sld [smem:[#allocation7 + %s1687_s1]]  ;;  %s1705_s14 = sadd.s32 %s2473_s15, %s1704_s6 }
 0x22b   : > { %s4364_s26 = sld [smem:[#allocation7 + %s1693_s24]]  ;;  %s1711_s17 = sadd.s32 %s2473_s15, %s1710_s0 }
 0x22c   : > { %4875 = sst [smem:[#allocation28_spill]] %s4360_s27  ;;  %s1753_s16 = sadd.s32 4, %s4309_s7 }
 0x22d   : > { %s4367_s18 = sld [smem:[#allocation7 + %s1705_s14]]  ;;  %s1716_s8 = sadd.s32 256, %s1704_s6 }
 0x22e   : > { %s1722_s4 = sadd.s32 384, %s1704_s6  ;;  %s4370_s2 = sld [smem:[#allocation7 + %s1711_s17]] }
 0x22f   : > { %s1717_s25 = sadd.s32 %s2473_s15, %s1716_s8  ;;  %s1723_s1 = sadd.s32 %s2473_s15, %s1722_s4 }
 0x230   : > { %4876 = sst [smem:[#allocation29_spill]] %s4362_s10  ;;  %s1728_s24 = sadd.s32 512, %s1704_s6 }
 0x231   : > { %4877 = sst [smem:[#allocation30_spill]] %s4364_s26  ;;  %s1734_s3 = sadd.s32 640, %s1704_s6 }
 0x232   : > { %s4372_s22 = sld [smem:[#allocation7 + %s1717_s25]]  ;;  %s1729_s26 = sadd.s32 %s2473_s15, %s1728_s24 }
 0x233   : > { %4878 = sst [smem:[#allocation31_spill]] %s4367_s18  ;;  %s1735_s10 = sadd.s32 %s2473_s15, %s1734_s3 }
 0x234   : > { %4879 = sst [smem:[#allocation32_spill]] %s4370_s2  ;;  %s1740_s0 = sadd.s32 768, %s1704_s6 }
 0x235   : > { %s4374_s9 = sld [smem:[#allocation7 + %s1723_s1]]  ;;  %s1746_s14 = sadd.s32 896, %s1704_s6 }
 0x236   : > { %s4376_s19 = sld [smem:[#allocation7 + %s1729_s26]]  ;;  %s1741_s27 = sadd.s32 %s2473_s15, %s1740_s0 }
 0x237   : > { %s4378_s18 = sld [smem:[#allocation7 + %s1735_s10]]  ;;  %s1747_s17 = sadd.s32 %s2473_s15, %s1746_s14 }
 0x238   : > { %4880 = sst [smem:[#allocation33_spill]] %s4372_s22  ;;  %s1754_s8 = sshra.s32 %s1753_s16, 7 }
 0x239   : > { %s4380_s5 = sld [smem:[#allocation7 + %s1741_s27]]  ;;  %s1758_s25 = sand.u32 127, %s1753_s16 }
 0x23a   : > { %s2474_s22 = sshll.u32 %s1754_s8, 10  ;;  %s1764_s4 = sadd.s32 128, %s1758_s25 }
 0x23b   : > { %4881 = sst [smem:[#allocation34_spill]] %s4374_s9  ;;  %s1759_s24 = sadd.s32 %s2474_s22, %s1758_s25 }
 0x23c   : > { %4882 = sst [smem:[#allocation35_spill]] %s4376_s19  ;;  %s1765_s1 = sadd.s32 %s2474_s22, %s1764_s4 }
 0x23d   : > { %s4382_s2 = sld [smem:[#allocation7 + %s1747_s17]]  ;;  %s1770_s26 = sadd.s32 256, %s1758_s25 }
 0x23e   : > { %s4384_s3 = sld [smem:[#allocation7 + %s1759_s24]]  ;;  %s1776_s19 = sadd.s32 384, %s1758_s25 }
 0x23f   : > { %s1771_s9 = sadd.s32 %s2474_s22, %s1770_s26  ;;  %s1777_s6 = sadd.s32 %s2474_s22, %s1776_s19 }
 0x240   : > { %s4386_s10 = sld [smem:[#allocation7 + %s1765_s1]]  ;;  %s1782_s15 = sadd.s32 512, %s1758_s25 }
 0x241   : > { %s4388_s27 = sld [smem:[#allocation7 + %s1771_s9]]  ;;  %s1788_s0 = sadd.s32 640, %s1758_s25 }
 0x242   : > { %s4390_s16 = sld [smem:[#allocation7 + %s1777_s6]]  ;;  %s1783_s14 = sadd.s32 %s2474_s22, %s1782_s15 }
 0x243   : > { %4883 = sst [smem:[#allocation36_spill]] %s4382_s2  ;;  %s1789_s8 = sadd.s32 %s2474_s22, %s1788_s0 }
 0x244   : > { %4884 = sst [smem:[#allocation37_spill]] %s4384_s3  ;;  %s1794_s24 = sadd.s32 768, %s1758_s25 }
 0x245   : > { %s4392_s17 = sld [smem:[#allocation7 + %s1783_s14]]  ;;  %s1800_s4 = sadd.s32 896, %s1758_s25 }
 0x246   : > { %4885 = sst [smem:[#allocation38_spill]] %s4386_s10  ;;  %s1795_s3 = sadd.s32 %s2474_s22, %s1794_s24 }
 0x247   : > { %4886 = sst [smem:[#allocation39_spill]] %s4388_s27  ;;  %s1801_s2 = sadd.s32 %s2474_s22, %s1800_s4 }
 0x248   : > { %4887 = sst [smem:[#allocation40_spill]] %s4390_s16  ;;  %s1807_s9 = sadd.s32 5, %s4309_s7 }
 0x249   : > { %s4394_s26 = sld [smem:[#allocation7 + %s1789_s8]]  ;;  %s1808_s27 = sshra.s32 %s1807_s9, 7 }
 0x24a   : > { %s4396_s19 = sld [smem:[#allocation7 + %s1795_s3]]  ;;  %s1812_s10 = sand.u32 127, %s1807_s9 }
 0x24b   : > { %4888 = sst [smem:[#allocation41_spill]] %s4392_s17  ;;  %s2475_s6 = sshll.u32 %s1808_s27, 10 }
 0x24c   : > { %s4398_s1 = sld [smem:[#allocation7 + %s1801_s2]]  ;;  %s1818_s16 = sadd.s32 128, %s1812_s10 }
 0x24d   : > { %s1813_s15 = sadd.s32 %s2475_s6, %s1812_s10  ;;  %s1819_s14 = sadd.s32 %s2475_s6, %s1818_s16 }
 0x24e   : > { %s4401_s17 = sld [smem:[#allocation7 + %s1813_s15]]  ;;  %s4404_s0 = smul.u32 6, %s4314_s12 }
 0x24f   : > { %s1824_s25 = sadd.s32 256, %s1812_s10  ;;  %s1830_s24 = sadd.s32 384, %s1812_s10 }
 0x250   : > { %4889 = sst [smem:[#allocation42_spill]] %s4396_s19  ;;  %s1825_s3 = sadd.s32 %s2475_s6, %s1824_s25 }
 0x251   : > { %s4406_s22 = sld [smem:[#allocation7 + %s1819_s14]]  ;;  %s1831_s7 = sadd.s32 %s2475_s6, %s1830_s24 }
 0x252   : > { %4890 = sst [smem:[#allocation43_spill]] %s4398_s1  ;;  %s1836_s8 = sadd.s32 512, %s1812_s10 }
 0x253   : > { %s4408_s2 = sld [smem:[#allocation7 + %s1825_s3]]  ;;  %s1842_s4 = sadd.s32 640, %s1812_s10 }
 0x254   : > { %4891 = sst [smem:[#allocation44_spill]] %s4401_s17  ;;  %s1837_s27 = sadd.s32 %s2475_s6, %s1836_s8 }
 0x255   : > { %s1843_s9 = sadd.s32 %s2475_s6, %s1842_s4  ;;  %s4410_s1 = sld [smem:[#allocation7 + %s1831_s7]] }
 0x256   : > { %s4412_s16 = sld [smem:[#allocation7 + %s1837_s27]]  ;;  %s1848_s12 = sadd.s32 768, %s1812_s10 }
 0x257   : > { %4892 = sst [smem:[#allocation45_spill]] %s4406_s22  ;;  %s1854_s15 = sadd.s32 896, %s1812_s10 }
 0x258   : > { %s4414_s17 = sld [smem:[#allocation7 + %s1843_s9]]  ;;  %s1849_s14 = sadd.s32 %s2475_s6, %s1848_s12 }
 0x259   : > { %s4416_s22 = sld [smem:[#allocation7 + %s1849_s14]]  ;;  %s1855_s25 = sadd.s32 %s2475_s6, %s1854_s15 }
 0x25a   : > { %s1865_s19 = sshra.s32 %s4404_s0, 7  ;;  %s4420_s3 = sand.u32 127, %s4404_s0 }
 0x25b   : > { %s4422_s24 = sshll.u32 %s1865_s19, 10  ;;  %s1875_s10 = sadd.s32 128, %s4420_s3 }
 0x25c   : > { %s4425_s6 = sld [smem:[#allocation7 + %s1855_s25]]  ;;  %s1870_s7 = sadd.s32 %s4422_s24, %s4420_s3 }
 0x25d   : > { %s4429_s8 = sld [smem:[#allocation7 + %s1870_s7]]  ;;  %s1876_s4 = sadd.s32 %s4422_s24, %s1875_s10 }
 0x25e   : > { %s1881_s27 = sadd.s32 256, %s4420_s3  ;;  %s1887_s9 = sadd.s32 384, %s4420_s3 }
 0x25f   : > { %4893 = sst [smem:[#allocation46_spill]] %s4416_s22  ;;  %s1882_s19 = sadd.s32 %s4422_s24, %s1881_s27 }
 0x260   : > { %s1888_s12 = sadd.s32 %s4422_s24, %s1887_s9  ;;  %s4436_s15 = sld [smem:[#allocation7 + %s1876_s4]] }
 0x261   : > { %s4438_s14 = sld [smem:[#allocation7 + %s1882_s19]]  ;;  %s1893_s25 = sadd.s32 512, %s4420_s3 }
 0x262   : > { %4894 = sst [smem:[#allocation47_spill]] %s4425_s6  ;;  %s1899_s6 = sadd.s32 640, %s4420_s3 }
 0x263   : > { %s4897_s22 = sshll.u32 %s2921_s30, 5  ;;  %s4449_s10 = sld [smem:[#allocation7 + %s1888_s12]] }
 0x264   : > { %s4444_s7 = scalar_lea.vmem [#allocation2], %s4897_s22  ;;  %s1894_s4 = sadd.s32 %s4422_s24, %s1893_s25 }
 0x265   : > { %v1536_v25 = vld [vmem:[%s4444_s7] sm:$0xff]  ;;  %s4898_s27 = sld [smem:[#allocation14_spill]]  ;;  %s1900_s19 = sadd.s32 %s4422_s24, %s1899_s6 }
 0x266   : > { %4895 = sst [smem:[#allocation48_spill]] %s4436_s15  ;;  %s1911_s30 = sadd.s32 896, %s4420_s3  ;;  %v1546_v45 = vmul.f32 %v1545_v52, %v1536_v25  ;;  %v1552_v29 = vmul.f32 %v1551_v57, %v1536_v25  ;;  %v1558_v4 = vmul.f32 %v1557_v31, %v1536_v25  ;;  %v1564_v54 = vmul.f32 %v1563_v48, %v1536_v25  ;;  %v1590_v35 = vld [vmem:[%s4444_s7 + $0x1] sm:$0xff] }
 0x267   : > { %4896 = sst [smem:[#allocation49_spill]] %s4438_s14  ;;  %s1905_s14 = sadd.s32 768, %s4420_s3  ;;  %v1570_v49 = vmul.f32 %v1569_v8, %v1536_v25  ;;  %v1576_v62 = vmul.f32 %v1575_v58, %v1536_v25  ;;  %v1582_v56 = vmul.f32 %v1581_v19, %v1536_v25  ;;  %v1644_v0 = vld [vmem:[%s4444_s7 + $0x2] sm:$0xff] }
 0x268   : > { %s4452_s9 = sld [smem:[#allocation7 + %s1894_s4]]  ;;  %s1906_s13 = sadd.s32 %s4422_s24, %s1905_s14  ;;  %v1547_v17 = vadd.f32 %v2917_v36, %v1546_v45  ;;  %v1553_v6 = vadd.f32 %v2913_v60, %v1552_v29  ;;  %v1559_v61 = vadd.f32 %v2909_v42, %v1558_v4  ;;  %v1565_v7 = vadd.f32 %v2905_v10, %v1564_v54  ;;  %v1698_v52 = vld [vmem:[%s4444_s7 + $0x3] sm:$0xff] }
 0x269   : > { %s4900_s22 = sld [smem:[#allocation15_spill]]  ;;  %s4901_s15 = sld [smem:[#allocation16_spill]]  ;;  %v1571_v28 = vadd.f32 %v2901_v11, %v1570_v49  ;;  %v1577_v47 = vadd.f32 %v2897_v26, %v1576_v62  ;;  %v1583_v1 = vadd.f32 %v2893_v9, %v1582_v56 }
 0x26a   : > { %s1912_s20 = sadd.s32 %s4422_s24, %s1911_s30  ;;  %s4463_s12 = sld [smem:[#allocation7 + %s1900_s19]] }
 0x26b   : > { %s4465_s25 = sld [smem:[#allocation7 + %s1906_s13]]  ;;  %v1587_v24 = vstv %s4898_s27  ;;  %s1918_s3 = sadd.s32 1, %s4404_s0 }
 0x26c   : > { %s4469_s6 = sld [smem:[#allocation7 + %s1912_s20]]  ;;  %s1919_s21 = sshra.s32 %s1918_s3, 7  ;;  %v1588_v34 = vmul.f32 %v1587_v24, %v1536_v25 }
 0x26d   : > { %s4902_s4 = sld [smem:[#allocation17_spill]]  ;;  %s4904_s30 = sld [smem:[#allocation19_spill]] }
 0x26e   : > { %4899 = sst [smem:[#allocation14_spill]] %s4452_s9  ;;  %s4903_s9 = sld [smem:[#allocation18_spill]]  ;;  %v1589_v55 = vadd.f32 %v2889_v23, %v1588_v34 }
 0x26f   : > { %v1599_v53 = vstv %s4900_s22  ;;  %v1605_v30 = vstv %s4901_s15  ;;  %s4475_s23 = sand.u32 127, %s1918_s3  ;;  %s4905_s11 = sld [smem:[#allocation20_spill]] }
 0x270   : > { %s4479_s28 = sshll.u32 %s1919_s21, 10  ;;  %s1929_s29 = sadd.s32 128, %s4475_s23  ;;  %v1600_v51 = vmul.f32 %v1599_v53, %v1590_v35  ;;  %v1606_v38 = vmul.f32 %v1605_v30, %v1590_v35 }
 0x271   : > { %s4906_s24 = sld [smem:[#allocation21_spill]]  ;;  %s4907_s15 = sld [smem:[#allocation22_spill]] }
 0x272   : > { %s1924_s14 = sadd.s32 %s4479_s28, %s4475_s23  ;;  %s1930_s27 = sadd.s32 %s4479_s28, %s1929_s29  ;;  %v1601_v40 = vadd.f32 %v1600_v51, %v1547_v17  ;;  %v1607_v39 = vadd.f32 %v1606_v38, %v1553_v6  ;;  %v1743_v51 = vstv %s4380_s5 }
 0x273   : > { %v1611_v13 = vstv %s4902_s4  ;;  %v1623_v27 = vstv %s4904_s30  ;;  %s4489_s19 = sld [smem:[#allocation7 + %s1924_s14]]  ;;  %s1935_s13 = sadd.s32 256, %s4475_s23 }
 0x274   : > { %v1617_v50 = vstv %s4903_s9  ;;  %s1941_s20 = sadd.s32 384, %s4475_s23  ;;  %v1612_v32 = vmul.f32 %v1611_v13, %v1590_v35  ;;  %s4498_s9 = sld [smem:[#allocation7 + %s1930_s27]]  ;;  %v1624_v3 = vmul.f32 %v1623_v27, %v1590_v35 }
 0x275   : > { %v1629_v37 = vstv %s4905_s11  ;;  %v1618_v43 = vmul.f32 %v1617_v50, %v1590_v35  ;;  %s1936_s3 = sadd.s32 %s4479_s28, %s1935_s13  ;;  %s4910_s4 = sld [smem:[#allocation23_spill]] }
 0x276   : > { %s4911_s21 = sld [smem:[#allocation24_spill]]  ;;  %v1630_v20 = vmul.f32 %v1629_v37, %v1590_v35  ;;  %s1942_s11 = sadd.s32 %s4479_s28, %s1941_s20  ;;  %v1613_v15 = vadd.f32 %v1612_v32, %v1559_v61  ;;  %v1625_v33 = vadd.f32 %v1624_v3, %v1571_v28  ;;  %v1752_v61 = vld [vmem:[%s4444_s7 + $0x4] sm:$0xff] }
 0x277   : > { %v1635_v12 = vstv %s4906_s24  ;;  %v1641_v18 = vstv %s4907_s15  ;;  %s4503_s30 = sld [smem:[#allocation7 + %s1936_s3]]  ;;  %s1947_s15 = sadd.s32 512, %s4475_s23  ;;  %v1619_v44 = vadd.f32 %v1618_v43, %v1565_v7 }
 0x278   : > { %s4913_s29 = sld [smem:[#allocation25_spill]]  ;;  %s4914_s24 = sld [smem:[#allocation26_spill]]  ;;  %v1636_v22 = vmul.f32 %v1635_v12, %v1590_v35  ;;  %v1642_v41 = vmul.f32 %v1641_v18, %v1590_v35  ;;  %v1631_v5 = vadd.f32 %v1630_v20, %v1577_v47  ;;  %v1737_v35 = vstv %s4378_s18 }
 0x279   : > { %4908 = sst [smem:[#allocation15_spill]] %s4489_s19  ;;  %s1953_s14 = sadd.s32 640, %s4475_s23  ;;  %v1738_v50 = vmul.f32 %v1737_v35, %v1698_v52  ;;  %v1744_v47 = vmul.f32 %v1743_v51, %v1698_v52  ;;  %v1872_v35 = vstv %s4429_s8 }
 0x27a   : > { %4909 = sst [smem:[#allocation16_spill]] %s4498_s9  ;;  %s4915_s27 = sld [smem:[#allocation27_spill]]  ;;  %v1637_v11 = vadd.f32 %v1636_v22, %v1583_v1  ;;  %v1643_v10 = vadd.f32 %v1642_v41, %v1589_v55  ;;  %v1791_v1 = vstv %s4394_s26 }
 0x27b   : > { %s4916_s13 = sld [smem:[#allocation28_spill]]  ;;  %v1653_v2 = vstv %s4910_s4  ;;  %s1948_s20 = sadd.s32 %s4479_s28, %s1947_s15 }
 0x27c   : > { %v1659_v14 = vstv %s4911_s21  ;;  %s4917_s3 = sld [smem:[#allocation29_spill]]  ;;  %s1954_s22 = sadd.s32 %s4479_s28, %s1953_s14  ;;  %v1654_v46 = vmul.f32 %v1653_v2, %v1644_v0 }
 0x27d   : > { %4912 = sst [smem:[#allocation17_spill]] %s4503_s30  ;;  %s4918_s30 = sld [smem:[#allocation30_spill]]  ;;  %v1660_v23 = vmul.f32 %v1659_v14, %v1644_v0 }
 0x27e   : > { %v1665_v21 = vstv %s4913_s29  ;;  %v1671_v59 = vstv %s4914_s24  ;;  %s4517_s9 = sld [smem:[#allocation7 + %s1942_s11]]  ;;  %s1959_s4 = sadd.s32 768, %s4475_s23  ;;  %v1655_v58 = vadd.f32 %v1654_v46, %v1601_v40 }
 0x27f   : > { %s4519_s19 = sld [smem:[#allocation7 + %s1948_s20]]  ;;  %s1965_s21 = sadd.s32 896, %s4475_s23  ;;  %v1666_v42 = vmul.f32 %v1665_v21, %v1644_v0  ;;  %v1672_v60 = vmul.f32 %v1671_v59, %v1644_v0  ;;  %v1661_v19 = vadd.f32 %v1660_v23, %v1607_v39  ;;  %v1806_v21 = vld [vmem:[%s4444_s7 + $0x5] sm:$0xff]  ;;  %v1827_v23 = vstv %s4408_s2 }
 0x280   : > { %v1677_v16 = vstv %s4915_s27  ;;  %s4919_s15 = sld [smem:[#allocation31_spill]]  ;;  %s4920_s14 = sld [smem:[#allocation32_spill]] }
 0x281   : > { %v1683_v63 = vstv %s4916_s13  ;;  %s4527_s11 = sld [smem:[#allocation7 + %s1954_s22]]  ;;  %s1960_s29 = sadd.s32 %s4479_s28, %s1959_s4  ;;  %v1678_v36 = vmul.f32 %v1677_v16, %v1644_v0  ;;  %v1667_v53 = vadd.f32 %v1666_v42, %v1613_v15  ;;  %v1673_v30 = vadd.f32 %v1672_v60, %v1619_v44 }
 0x282   : > { %v1689_v9 = vstv %s4917_s3  ;;  %s4921_s24 = sld [smem:[#allocation33_spill]]  ;;  %s4922_s20 = sld [smem:[#allocation34_spill]]  ;;  %v1684_v25 = vmul.f32 %v1683_v63, %v1644_v0  ;;  %v1792_v44 = vmul.f32 %v1791_v1, %v1752_v61 }
 0x283   : > { %v1695_v26 = vstv %s4918_s30  ;;  %s4530_s27 = sld [smem:[#allocation7 + %s1960_s29]]  ;;  %s1966_s23 = sadd.s32 %s4479_s28, %s1965_s21  ;;  %v1690_v29 = vmul.f32 %v1689_v9, %v1644_v0  ;;  %v1679_v49 = vadd.f32 %v1678_v36, %v1625_v33  ;;  %v1833_v9 = vstv %s4410_s1 }
 0x284   : > { %s4924_s13 = sld [smem:[#allocation35_spill]]  ;;  %s4925_s3 = sadd.s32 2, %s4404_s0  ;;  %v1696_v31 = vmul.f32 %v1695_v26, %v1644_v0  ;;  %v1685_v62 = vadd.f32 %v1684_v25, %v1631_v5 }
 0x285   : > { %s1973_s22 = sshra.s32 %s4925_s3, 7  ;;  %s4926_s30 = smov %s4925_s3  ;;  %v1691_v56 = vadd.f32 %v1690_v29, %v1637_v11  ;;  %v1839_v29 = vstv %s4412_s16 }
 0x286   : > { %v1707_v57 = vstv %s4919_s15  ;;  %v1713_v45 = vstv %s4920_s14  ;;  %s4540_s4 = sand.u32 127, %s4926_s30  ;;  %s4544_s29 = sshll.u32 %s1973_s22, 10  ;;  %v1697_v34 = vadd.f32 %v1696_v31, %v1643_v10  ;;  %v1739_v40 = vadd.f32 %v1738_v50, %v1685_v62 }
 0x287   : > { %s1983_s28 = sadd.s32 128, %s4540_s4  ;;  %s4547_s21 = sld [smem:[#allocation7 + %s1966_s23]]  ;;  %v1708_v24 = vmul.f32 %v1707_v57, %v1698_v52  ;;  %v1714_v4 = vmul.f32 %v1713_v45, %v1698_v52  ;;  %v1745_v5 = vadd.f32 %v1744_v47, %v1691_v56  ;;  %v1828_v57 = vmul.f32 %v1827_v23, %v1806_v21  ;;  %v2480_v47 = vld [vmem:[%s4444_s7 + $0x11] sm:$0xff] }
 0x288   : > { %v1719_v48 = vstv %s4921_s24  ;;  %v1725_v8 = vstv %s4922_s20  ;;  %s1978_s15 = sadd.s32 %s4544_s29, %s4540_s4  ;;  %s1984_s24 = sadd.s32 %s4544_s29, %s1983_s28  ;;  %v1834_v45 = vmul.f32 %v1833_v9, %v1806_v21  ;;  %v1845_v31 = vstv %s4414_s17 }
 0x289   : > { %4923 = sst [smem:[#allocation18_spill]] %s4530_s27  ;;  %s4929_s20 = sld [smem:[#allocation36_spill]]  ;;  %v1720_v17 = vmul.f32 %v1719_v48, %v1698_v52  ;;  %v1726_v6 = vmul.f32 %v1725_v8, %v1698_v52  ;;  %v1709_v27 = vadd.f32 %v1708_v24, %v1655_v58  ;;  %v1715_v37 = vadd.f32 %v1714_v4, %v1661_v19 }
 0x28a   : > { %v1731_v54 = vstv %s4924_s13  ;;  %s4553_s14 = sld [smem:[#allocation7 + %s1978_s15]]  ;;  %s1989_s3 = sadd.s32 256, %s4540_s4 }
 0x28b   : > { %s1995_s23 = sadd.s32 384, %s4540_s4  ;;  %s4930_s22 = sld [smem:[#allocation37_spill]]  ;;  %v1732_v13 = vmul.f32 %v1731_v54, %v1698_v52  ;;  %v1721_v43 = vadd.f32 %v1720_v17, %v1667_v53  ;;  %v1727_v12 = vadd.f32 %v1726_v6, %v1673_v30  ;;  %v2478_v54 = vld [vmem:[%s4444_s7 + $0x10] sm:$0xff]  ;;  %v1840_v30 = vmul.f32 %v1839_v29, %v1806_v21 }
 0x28c   : > { %s4931_s30 = sld [smem:[#allocation38_spill]]  ;;  %s1990_s18 = sadd.s32 %s4544_s29, %s1989_s3  ;;  %v1846_v17 = vmul.f32 %v1845_v31, %v1806_v21  ;;  %v1873_v50 = vmul.f32 %v2478_v54, %v1872_v35 }
 0x28d   : > { %4927 = sst [smem:[#allocation19_spill]] %s4547_s21  ;;  %s1996_s13 = sadd.s32 %s4544_s29, %s1995_s23  ;;  %v1733_v55 = vadd.f32 %v1732_v13, %v1679_v49  ;;  %v1890_v49 = vstv %s4449_s10 }
 0x28e   : > { %s4932_s15 = sld [smem:[#allocation39_spill]]  ;;  %s4933_s28 = sld [smem:[#allocation40_spill]] }
 0x28f   : > { %v1749_v38 = vstv %s4929_s20  ;;  %s4564_s21 = sld [smem:[#allocation7 + %s1990_s18]]  ;;  %s2001_s3 = sadd.s32 512, %s4540_s4 }
 0x290   : > { %4928 = sst [smem:[#allocation20_spill]] %s4553_s14  ;;  %s4936_s27 = sld [smem:[#allocation41_spill]]  ;;  %v1750_v3 = vmul.f32 %v1749_v38, %v1698_v52  ;;  %v1793_v52 = vadd.f32 %v1792_v44, %v1739_v40 }
 0x291   : > { %s4562_s14 = sld [smem:[#allocation7 + %s1984_s24]]  ;;  %v1761_v7 = vstv %s4930_s22  ;;  %s2007_s23 = sadd.s32 640, %s4540_s4 }
 0x292   : > { %v1767_v32 = vstv %s4931_s30  ;;  %s4573_s5 = sld [smem:[#allocation7 + %s1996_s13]]  ;;  %s2002_s20 = sadd.s32 %s4544_s29, %s2001_s3  ;;  %v1762_v39 = vmul.f32 %v1761_v7, %v1752_v61  ;;  %v1751_v16 = vadd.f32 %v1750_v3, %v1697_v34  ;;  %v1908_v7 = vstv %s4465_s25 }
 0x293   : > { %s4937_s24 = sld [smem:[#allocation42_spill]]  ;;  %s4938_s18 = sld [smem:[#allocation43_spill]]  ;;  %v1768_v22 = vmul.f32 %v1767_v32, %v1752_v61  ;;  %v1914_v32 = vstv %s4469_s6  ;;  %v1909_v40 = vmul.f32 %v2478_v54, %v1908_v7 }
 0x294   : > { %v1773_v18 = vstv %s4932_s15  ;;  %v1779_v28 = vstv %s4933_s28  ;;  %s4578_s22 = sld [smem:[#allocation7 + %s2002_s20]]  ;;  %s2008_s30 = sadd.s32 %s4544_s29, %s2007_s23  ;;  %v1763_v26 = vadd.f32 %v1762_v39, %v1709_v27  ;;  %v1902_v27 = vstv %s4463_s12 }
 0x295   : > { %4935 = sst [smem:[#allocation22_spill]] %s4564_s21  ;;  %s4939_s21 = sld [smem:[#allocation44_spill]]  ;;  %v1774_v41 = vmul.f32 %v1773_v18, %v1752_v61  ;;  %v1780_v0 = vmul.f32 %v1779_v28, %v1752_v61  ;;  %v1769_v11 = vadd.f32 %v1768_v22, %v1715_v37  ;;  %v1903_v28 = vmul.f32 %v2478_v54, %v1902_v27 }
 0x296   : > { %v1785_v20 = vstv %s4936_s27  ;;  %s2013_s13 = sadd.s32 768, %s4540_s4  ;;  %s2019_s15 = sadd.s32 896, %s4540_s4  ;;  %v1915_v39 = vmul.f32 %v2478_v54, %v1914_v32 }
 0x297   : > { %4934 = sst [smem:[#allocation21_spill]] %s4562_s14  ;;  %s2014_s27 = sadd.s32 %s4544_s29, %s2013_s13  ;;  %v1786_v15 = vmul.f32 %v1785_v20, %v1752_v61  ;;  %v1775_v60 = vadd.f32 %v1774_v41, %v1721_v43  ;;  %v1781_v36 = vadd.f32 %v1780_v0, %v1727_v12  ;;  %v1847_v12 = vadd.f32 %v1846_v17, %v1793_v52 }
 0x298   : > { %s4940_s14 = sld [smem:[#allocation45_spill]]  ;;  %s2020_s26 = sadd.s32 %s4544_s29, %s2019_s15 }
 0x299   : > { %v1797_v2 = vstv %s4937_s24  ;;  %v1803_v14 = vstv %s4938_s18  ;;  %s4590_s28 = sld [smem:[#allocation7 + %s2008_s30]]  ;;  %s2026_s23 = sadd.s32 3, %s4404_s0  ;;  %v1787_v25 = vadd.f32 %v1786_v15, %v1733_v55  ;;  %v1829_v62 = vadd.f32 %v1828_v57, %v1775_v60 }
 0x29a   : > { %s4592_s3 = sld [smem:[#allocation7 + %s2014_s27]]  ;;  %v1798_v63 = vmul.f32 %v1797_v2, %v1752_v61  ;;  %v1804_v46 = vmul.f32 %v1803_v14, %v1752_v61  ;;  %s2027_s24 = sshra.s32 %s2026_s23, 7  ;;  %v1835_v56 = vadd.f32 %v1834_v45, %v1781_v36  ;;  %v1891_v61 = vmul.f32 %v2478_v54, %v1890_v49 }
 0x29b   : > { %v1815_v59 = vstv %s4939_s21  ;;  %s4594_s4 = sld [smem:[#allocation7 + %s2020_s26]]  ;;  %s4599_s29 = sand.u32 127, %s2026_s23  ;;  %v1841_v43 = vadd.f32 %v1840_v30, %v1787_v25  ;;  %v4699_v30 = vld [vmem:[%s4444_s7 + $0x13] sm:$0xff] }
 0x29c   : > { %v1816_v10 = vmul.f32 %v1815_v59, %v1806_v21  ;;  %s4601_s21 = sshll.u32 %s2027_s24, 10  ;;  %s2037_s20 = sadd.s32 128, %s4599_s29  ;;  %v1799_v48 = vadd.f32 %v1798_v63, %v1745_v5  ;;  %v1805_v8 = vadd.f32 %v1804_v46, %v1751_v16  ;;  %v1892_v2 = vadd.f32 %v1891_v61, %v1835_v56 }
 0x29d   : > { %s4942_s2 = sld [smem:[#allocation47_spill]]  ;;  %s2032_s1 = sadd.s32 %s4601_s21, %s4599_s29  ;;  %v1950_v5 = vstv %s4519_s19  ;;  %v1956_v16 = vstv %s4527_s11 }
 0x29e   : > { %v1821_v33 = vstv %s4940_s14  ;;  %s4941_s14 = sld [smem:[#allocation46_spill]]  ;;  %s2038_s18 = sadd.s32 %s4601_s21, %s2037_s20  ;;  %v1817_v24 = vadd.f32 %v1816_v10, %v1763_v26  ;;  %v4673_v10 = vld [vmem:[%s4444_s7 + $0x12] sm:$0xff]  ;;  %v1951_v52 = vmul.f32 %v2480_v47, %v1950_v5  ;;  %v1957_v57 = vmul.f32 %v2480_v47, %v1956_v16 }
 0x29f   : > { %v1822_v42 = vmul.f32 %v1821_v33, %v1806_v21  ;;  %s4943_s30 = sld [smem:[#allocation48_spill]]  ;;  %s2080_s15 = sadd.s32 4, %s4404_s0  ;;  %v1904_v33 = vadd.f32 %v1903_v28, %v1847_v12 }
 0x2a0   : > { %s4609_s13 = sld [smem:[#allocation7 + %s2032_s1]]  ;;  %s2043_s26 = sadd.s32 256, %s4599_s29  ;;  %v1874_v22 = vadd.f32 %v1873_v50, %v1817_v24  ;;  %v2010_v24 = vstv %s4590_s28  ;;  %v2016_v27 = vstv %s4592_s3 }
 0x2a1   : > { %s4944_s27 = sld [smem:[#allocation49_spill]]  ;;  %s2049_s23 = sadd.s32 384, %s4599_s29  ;;  %v1823_v4 = vadd.f32 %v1822_v42, %v1769_v11 }
 0x2a2   : > { %s4619_s17 = sld [smem:[#allocation7 + %s2038_s18]]  ;;  %s2044_s24 = sadd.s32 %s4601_s21, %s2043_s26 }
 0x2a3   : > { %v1857_v19 = vstv %s4942_s2  ;;  %s4945_s16 = sld [smem:[#allocation14_spill]]  ;;  %s2050_s20 = sadd.s32 %s4601_s21, %s2049_s23 }
 0x2a4   : > { %v1851_v58 = vstv %s4941_s14  ;;  %s4624_s14 = sld [smem:[#allocation7 + %s2044_s24]]  ;;  %v1858_v13 = vmul.f32 %v1857_v19, %v1806_v21  ;;  %s2055_s8 = sadd.s32 512, %s4599_s29  ;;  %v2004_v19 = vstv %s4578_s22 }
 0x2a5   : > { %v1878_v53 = vstv %s4943_s30  ;;  %v1852_v34 = vmul.f32 %v1851_v58, %v1806_v21  ;;  %s2061_s2 = sadd.s32 640, %s4599_s29  ;;  %s4946_s1 = sld [smem:[#allocation15_spill]]  ;;  %v1944_v21 = vstv %s4517_s9  ;;  %v2005_v56 = vmul.f32 %v4673_v10, %v2004_v19 }
 0x2a6   : > { %v1879_v51 = vmul.f32 %v2478_v54, %v1878_v53  ;;  %s2056_s10 = sadd.s32 %s4601_s21, %s2055_s8  ;;  %s4947_s18 = sld [smem:[#allocation16_spill]]  ;;  %v1859_v55 = vadd.f32 %v1858_v13, %v1805_v8  ;;  %v1945_v11 = vmul.f32 %v2480_v47, %v1944_v21  ;;  %v2034_v17 = vstv %s4609_s13 }
 0x2a7   : > { %v1884_v6 = vstv %s4944_s27  ;;  %s2062_s30 = sadd.s32 %s4601_s21, %s2061_s2  ;;  %s4635_s27 = sld [smem:[#allocation7 + %s2050_s20]]  ;;  %v1853_v1 = vadd.f32 %v1852_v34, %v1799_v48  ;;  %v1998_v48 = vstv %s4573_s5  ;;  %v2011_v34 = vmul.f32 %v4673_v10, %v2010_v24 }
 0x2a8   : > { %v1885_v37 = vmul.f32 %v2478_v54, %v1884_v6  ;;  %s4637_s26 = sld [smem:[#allocation7 + %s2056_s10]]  ;;  %s2067_s23 = sadd.s32 768, %s4599_s29  ;;  %v1880_v41 = vadd.f32 %v1879_v51, %v1823_v4  ;;  %v1916_v46 = vadd.f32 %v1915_v39, %v1859_v55  ;;  %v1999_v53 = vmul.f32 %v4673_v10, %v1998_v48 }
 0x2a9   : > { %v1896_v38 = vstv %s4945_s16  ;;  %s2073_s16 = sadd.s32 896, %s4599_s29  ;;  %s4644_s12 = sld [smem:[#allocation7 + %s2062_s30]]  ;;  %v1910_v63 = vadd.f32 %v1909_v40, %v1853_v1  ;;  %v2040_v6 = vstv %s4619_s17  ;;  %v2035_v61 = vmul.f32 %v4699_v30, %v2034_v17  ;;  %v4732_v40 = vld [vmem:[%s4444_s7 + $0x14] sm:$0xff] }
 0x2aa   : > { %v1897_v18 = vmul.f32 %v2478_v54, %v1896_v38  ;;  %s4948_s25 = sld [smem:[#allocation17_spill]]  ;;  %s2068_s6 = sadd.s32 %s4601_s21, %s2067_s23  ;;  %v1886_v0 = vadd.f32 %v1885_v37, %v1829_v62  ;;  %v1946_v54 = vadd.f32 %v1945_v11, %v1892_v2  ;;  %v1958_v62 = vadd.f32 %v1957_v57, %v1904_v33 }
 0x2ab   : > { %v1926_v3 = vstv %s4946_s1  ;;  %s4647_s24 = sld [smem:[#allocation7 + %s2068_s6]]  ;;  %s2074_s29 = sadd.s32 %s4601_s21, %s2073_s16  ;;  %v2022_v37 = vstv %s4594_s4  ;;  %v2041_v7 = vmul.f32 %v4699_v30, %v2040_v6  ;;  %v2046_v12 = vstv %s4624_s14 }
 0x2ac   : > { %v1932_v20 = vstv %s4947_s18  ;;  %s2081_s20 = sshra.s32 %s2080_s15, 7  ;;  %s4949_s8 = sld [smem:[#allocation18_spill]]  ;;  %v1927_v14 = vmul.f32 %v2480_v47, %v1926_v3  ;;  %v1898_v59 = vadd.f32 %v1897_v18, %v1841_v43  ;;  %v2000_v43 = vadd.f32 %v1999_v53, %v1946_v54 }
 0x2ad   : > { %s4654_s2 = sand.u32 127, %s2080_s15  ;;  %s4950_s1 = sld [smem:[#allocation19_spill]]  ;;  %v1933_v15 = vmul.f32 %v2480_v47, %v1932_v20  ;;  %v2052_v18 = vstv %s4635_s27  ;;  %v2017_v1 = vmul.f32 %v4673_v10, %v2016_v27  ;;  %v2023_v55 = vmul.f32 %v4673_v10, %v2022_v37 }
 0x2ae   : > { %s4658_s10 = sshll.u32 %s2081_s20, 10  ;;  %s2091_s21 = sadd.s32 128, %s4654_s2  ;;  %v1928_v36 = vadd.f32 %v1927_v14, %v1874_v22  ;;  %v1952_v49 = vadd.f32 %v1951_v52, %v1898_v59  ;;  %v2058_v3 = vstv %s4637_s26  ;;  %v2047_v2 = vmul.f32 %v4699_v30, %v2046_v12  ;;  %v2488_v52 = vld [vmem:[%s4444_s7 + $0x15] sm:$0xff] }
 0x2af   : > { %s4951_s18 = sld [smem:[#allocation20_spill]]  ;;  %s4952_s30 = sld [smem:[#allocation21_spill]]  ;;  %v1934_v25 = vadd.f32 %v1933_v15, %v1880_v41  ;;  %v2064_v20 = vstv %s4644_s12  ;;  %v2053_v14 = vmul.f32 %v4699_v30, %v2052_v18  ;;  %v2059_v15 = vmul.f32 %v4699_v30, %v2058_v3 }
 0x2b0   : > { %v1938_v44 = vstv %s4948_s25  ;;  %s4663_s15 = sld [smem:[#allocation7 + %s2074_s29]]  ;;  %s2086_s23 = sadd.s32 %s4658_s10, %s4654_s2  ;;  %v2006_v28 = vadd.f32 %v2005_v56, %v1952_v49 }
 0x2b1   : > { %s4669_s9 = sld [smem:[#allocation7 + %s2086_s23]]  ;;  %s2092_s16 = sadd.s32 %s4658_s10, %s2091_s21  ;;  %v1939_v26 = vmul.f32 %v2480_v47, %v1938_v44  ;;  %v2065_v44 = vmul.f32 %v4699_v30, %v2064_v20  ;;  %v2070_v21 = vstv %s4647_s24 }
 0x2b2   : > { %v1962_v23 = vstv %s4949_s8  ;;  %s4953_s25 = sld [smem:[#allocation22_spill]]  ;;  %s2097_s19 = sadd.s32 256, %s4654_s2  ;;  %v2060_v57 = vadd.f32 %v2059_v15, %v2006_v28 }
 0x2b3   : > { %v1968_v9 = vstv %s4950_s1  ;;  %s2103_s11 = sadd.s32 384, %s4654_s2  ;;  %s2098_s6 = sadd.s32 %s4658_s10, %s2097_s19  ;;  %v1963_v45 = vmul.f32 %v2480_v47, %v1962_v23  ;;  %v1940_v4 = vadd.f32 %v1939_v26, %v1886_v0  ;;  %v2054_v26 = vadd.f32 %v2053_v14, %v2000_v43 }
 0x2b4   : > { %s2104_s29 = sadd.s32 %s4658_s10, %s2103_s11  ;;  %v1969_v29 = vmul.f32 %v2480_v47, %v1968_v9  ;;  %s4683_s20 = sld [smem:[#allocation7 + %s2092_s16]]  ;;  %v2012_v47 = vadd.f32 %v2011_v34, %v1958_v62 }
 0x2b5   : > { %v1980_v42 = vstv %s4951_s18  ;;  %v1986_v60 = vstv %s4952_s30  ;;  %s4685_s8 = sld [smem:[#allocation7 + %s2098_s6]]  ;;  %s2109_s1 = sadd.s32 512, %s4654_s2  ;;  %v1964_v13 = vadd.f32 %v1963_v45, %v1910_v63 }
 0x2b6   : > { %v1981_v8 = vmul.f32 %v4673_v10, %v1980_v42  ;;  %v1987_v58 = vmul.f32 %v4673_v10, %v1986_v60  ;;  %s2115_s21 = sadd.s32 640, %s4654_s2  ;;  %s4693_s5 = sld [smem:[#allocation7 + %s2104_s29]]  ;;  %v1970_v50 = vadd.f32 %v1969_v29, %v1916_v46  ;;  %v2076_v59 = vstv %s4663_s15 }
 0x2b7   : > { %s2110_s18 = sadd.s32 %s4658_s10, %s2109_s1  ;;  %s2116_s28 = sadd.s32 %s4658_s10, %s2115_s21  ;;  %v2088_v39 = vstv %s4669_s9  ;;  %v2018_v46 = vadd.f32 %v2017_v1, %v1964_v13  ;;  %v2071_v42 = vmul.f32 %v4699_v30, %v2070_v21  ;;  %v2077_v60 = vmul.f32 %v4699_v30, %v2076_v59 }
 0x2b8   : > { %v1992_v31 = vstv %s4953_s25  ;;  %s4703_s22 = sld [smem:[#allocation7 + %s2110_s18]]  ;;  %s2121_s30 = sadd.s32 768, %s4654_s2  ;;  %v1982_v51 = vadd.f32 %v1981_v8, %v1928_v36  ;;  %v1988_v38 = vadd.f32 %v1987_v58, %v1934_v25  ;;  %v2089_v33 = vmul.f32 %v4732_v40, %v2088_v39 }
 0x2b9   : > { %v1993_v35 = vmul.f32 %v4673_v10, %v1992_v31  ;;  %s2127_s23 = sadd.s32 896, %s4654_s2  ;;  %s2122_s13 = sadd.s32 %s4658_s10, %s2121_s30  ;;  %v2024_v23 = vadd.f32 %v2023_v55, %v1970_v50  ;;  %v2066_v45 = vadd.f32 %v2065_v44, %v2012_v47  ;;  %v2072_v53 = vadd.f32 %v2071_v42, %v2018_v46 }
 0x2ba   : > { %s2128_s17 = sadd.s32 %s4658_s10, %s2127_s23  ;;  %s4716_s16 = sld [smem:[#allocation7 + %s2116_s28]]  ;;  %v2094_v22 = vstv %s4683_s20  ;;  %v2036_v41 = vadd.f32 %v2035_v61, %v1982_v51  ;;  %v2042_v0 = vadd.f32 %v2041_v7, %v1988_v38 }
 0x2bb   : > { %s4718_s2 = sld [smem:[#allocation7 + %s2122_s13]]  ;;  %v1994_v32 = vadd.f32 %v1993_v35, %v1940_v4  ;;  %s2134_s10 = sadd.s32 5, %s4404_s0  ;;  %v2095_v5 = vmul.f32 %v4732_v40, %v2094_v22  ;;  %v2100_v16 = vstv %s4685_s8  ;;  %v2078_v30 = vadd.f32 %v2077_v60, %v2024_v23 }
 0x2bc   : > { %s4722_s25 = sld [smem:[#allocation7 + %s2128_s17]]  ;;  %s2135_s3 = sshra.s32 %s2134_s10, 7  ;;  %v2106_v63 = vstv %s4693_s5  ;;  %v2101_v36 = vmul.f32 %v4732_v40, %v2100_v16  ;;  %v2090_v29 = vadd.f32 %v2089_v33, %v2036_v41 }
 0x2bd   : > { %s4727_s4 = sand.u32 127, %s2134_s10  ;;  %s4736_s0 = sshll.u32 %s2135_s3, 10  ;;  %v2048_v9 = vadd.f32 %v2047_v2, %v1994_v32  ;;  %v2107_v25 = vmul.f32 %v4732_v40, %v2106_v63  ;;  %v2096_v31 = vadd.f32 %v2095_v5, %v2042_v0 }
 0x2be   : > { %s2145_s14 = sadd.s32 128, %s4727_s4  ;;  %s2140_s27 = sadd.s32 %s4736_s0, %s4727_s4  ;;  %v2112_v11 = vstv %s4703_s22 }
 0x2bf   : > { %s2146_s26 = sadd.s32 %s4736_s0, %s2145_s14  ;;  %s4748_s12 = sld [smem:[#allocation7 + %s2140_s27]]  ;;  %v2113_v48 = vmul.f32 %v4732_v40, %v2112_v11  ;;  %v2102_v17 = vadd.f32 %v2101_v36, %v2048_v9  ;;  %v2108_v6 = vadd.f32 %v2107_v25, %v2054_v26 }
 0x2c0   : > { %s4750_s9 = sld [smem:[#allocation7 + %s2146_s26]]  ;;  %s2151_s19 = sadd.s32 256, %s4727_s4  ;;  %v2118_v10 = vstv %s4716_s16 }
 0x2c1   : > { %s2157_s11 = sadd.s32 384, %s4727_s4  ;;  %s2152_s24 = sadd.s32 %s4736_s0, %s2151_s19  ;;  %v2119_v8 = vmul.f32 %v4732_v40, %v2118_v10  ;;  %v2124_v24 = vstv %s4718_s2  ;;  %v2114_v27 = vadd.f32 %v2113_v48, %v2060_v57 }
 0x2c2   : > { %s2158_s15 = sadd.s32 %s4736_s0, %s2157_s11  ;;  %s4762_s6 = sld [smem:[#allocation7 + %s2152_s24]]  ;;  %v2130_v4 = vstv %s4722_s25  ;;  %v2125_v13 = vmul.f32 %v4732_v40, %v2124_v24 }
 0x2c3   : > { %s4764_s29 = sld [smem:[#allocation7 + %s2158_s15]]  ;;  %s2163_s20 = sadd.s32 512, %s4727_s4  ;;  %v2131_v50 = vmul.f32 %v4732_v40, %v2130_v4  ;;  %v2120_v37 = vadd.f32 %v2119_v8, %v2066_v45 }
 0x2c4   : > { %s2169_s8 = sadd.s32 640, %s4727_s4  ;;  %s2164_s1 = sadd.s32 %s4736_s0, %s2163_s20  ;;  %v2126_v28 = vadd.f32 %v2125_v13, %v2072_v53 }
 0x2c5   : > { %s2170_s21 = sadd.s32 %s4736_s0, %s2169_s8  ;;  %v2142_v58 = vstv %s4748_s12  ;;  %s4779_s7 = sld [smem:[#allocation7 + %s2164_s1]]  ;;  %v2132_v47 = vadd.f32 %v2131_v50, %v2078_v30 }
 0x2c6   : > { %v2148_v19 = vstv %s4750_s9  ;;  %s2171_s5 = sld [smem:[#allocation7 + %s2170_s21]]  ;;  %v2143_v54 = vmul.f32 %v2488_v52, %v2142_v58  ;;  %s2175_s18 = sadd.s32 768, %s4727_s4 }
 0x2c7   : > { %v2149_v35 = vmul.f32 %v2488_v52, %v2148_v19  ;;  %s2181_s22 = sadd.s32 896, %s4727_s4  ;;  %s2176_s28 = sadd.s32 %s4736_s0, %s2175_s18 }
 0x2c8   : > { %s2182_s30 = sadd.s32 %s4736_s0, %s2181_s22  ;;  %v2144_v49 = vadd.f32 %v2143_v54, %v2090_v29   ;;  %v2154_v56 = vstv %s4762_s6  ;;  %s2177_s23 = sld [smem:[#allocation7 + %s2176_s28]] }
 0x2c9   : > { %v2150_v62 = vadd.f32 %v2149_v35, %v2096_v31   ;;  %v2160_v34 = vstv %s4764_s29  ;;  %s2183_s13 = sld [smem:[#allocation7 + %s2182_s30]]  ;;  %v2155_v51 = vmul.f32 %v2488_v52, %v2154_v56 }
 0x2ca   : > { %v2161_v38 = vmul.f32 %v2488_v52, %v2160_v34  ;;  %s4954_s17 = sld [smem:[#allocation13_spill]]  ;;  %v4962_v36 = vmov %v2144_v49 }
 0x2cb   : > { %v2156_v61 = vadd.f32 %v2155_v51, %v2102_v17   ;;  %v2166_v32 = vstv %s4779_s7  ;;  %v4961_v60 = vmov %v2150_v62 }
 0x2cc   : > { %v2162_v7 = vadd.f32 %v2161_v38, %v2108_v6   ;;  %v2172_v43 = vstv %s2171_s5  ;;  %v2167_v12 = vmul.f32 %v2488_v52, %v2166_v32 }
 0x2cd   : > { %v2173_v18 = vmul.f32 %v2488_v52, %v2172_v43  ;;  %v4960_v42 = vmov %v2156_v61 }
 0x2ce   : > { %v2168_v3 = vadd.f32 %v2167_v12, %v2114_v27   ;;  %v2178_v1 = vstv %s2177_s23  ;;  %v4959_v10 = vmov %v2162_v7 }
 0x2cf   : > { %v2174_v20 = vadd.f32 %v2173_v18, %v2120_v37   ;;  %v2184_v55 = vstv %s2183_s13  ;;  %v2179_v39 = vmul.f32 %v2488_v52, %v2178_v1 }
 0x2d0   : > { %v2185_v22 = vmul.f32 %v2488_v52, %v2184_v55  ;;  %s1524_s30 = sadd.s32 1, %s4954_s17   ;;  %v4958_v11 = vmov %v2168_v3 }
 0x2d1   : > { %v2180_v41 = vadd.f32 %v2179_v39, %v2126_v28   ;;  %p1521_p6 = scmp.ge.s32.totalorder %s1524_s30, 12   ;;  %v4957_v26 = vmov %v2174_v20 }
 0x2d2   : > { %v2186_v40 = vadd.f32 %v2185_v22, %v2132_v47   ;;  %s2187_s16 = sld [smem:[#allocation8]] (%p1521_p6)  ;;  %s2490_s2 = sld [smem:[#allocation8 + $0x1]] (%p1521_p6) }
 0x2d3   : > { %v4956_v9 = vmov %v2180_v41  ;;  %1523 = sbr.rel (!%p1521_p6) target bundleno = 503 (0x1f7), region = 97  ;;  %s2492_s25 = sld [smem:[#allocation8 + $0x2]] (%p1521_p6) }
 0x2d4   : > { %v4955_v23 = vmov %v2186_v40  ;;  %s2494_s10 = sld [smem:[#allocation8 + $0x3]] (%p1521_p6)  ;;  %s2496_s3 = sld [smem:[#allocation8 + $0x4]] (%p1521_p6) }
 0x2d5   :  { %s2498_s4 = sld [smem:[#allocation8 + $0x5]] (%p1521_p6)  ;;  %s2500_s0 = sld [smem:[#allocation8 + $0x6]] (%p1521_p6) }
 0x2d6   :  { %s2502_s14 = sld [smem:[#allocation8 + $0x7]] (%p1521_p6) }
 0x2d7   :  { %s4963_s15 = sld [smem:[#allocation50_spill]] (%p1521_p6) }
 0x2d8   :  { %s2188_s27 = sadd.f32 (%p1521_p6), 7.0, %s2187_s16 }
 0x2d9   :  { %s2193_s26 = sadd.f32 (%p1521_p6), 7.0, %s2490_s2 }
 0x2da   :  { %v2189_v0 = vstv %s2188_s27  ;;  %s2199_s12 = sadd.f32 7.0, %s2492_s25 }
 0x2db   :  { %v2190_v2 = vadd.f32 %v2189_v0, %v2144_v49  ;;  %v2194_v14 = vstv %s2193_s26  ;;  %s2205_s9 = sadd.f32 7.0, %s2494_s10 }
 0x2dc   :  { %v2195_v15 = vadd.f32 %v2194_v14, %v2150_v62  ;;  %v2200_v44 = vstv %s2199_s12  ;;  %s2211_s19 = sadd.f32 7.0, %s2496_s3 }
 0x2dd   :  { %2191 = vst [vmem:[%s4963_s15] sm:$0xff] %v2190_v2  ;;  %v2201_v21 = vadd.f32 %v2200_v44, %v2156_v61  ;;  %v2206_v59 = vstv %s2205_s9  ;;  %s2217_s6 = sadd.f32 7.0, %s2498_s4 }
 0x2de   :  { %2491 = vst [vmem:[%s4963_s15 + $0x8] sm:$0xff] %v2195_v15  ;;  %v2207_v33 = vadd.f32 %v2206_v59, %v2162_v7  ;;  %v2212_v5 = vstv %s2211_s19  ;;  %s2223_s8 = sadd.f32 7.0, %s2500_s0 }
 0x2df   :  { %2493 = vst [vmem:[%s4963_s15 + $0x10] sm:$0xff] %v2201_v21  ;;  %v2213_v16 = vadd.f32 %v2212_v5, %v2168_v3  ;;  %v2218_v63 = vstv %s2217_s6  ;;  %s2229_s7 = sadd.f32 7.0, %s2502_s14 }
 0x2e0   :  { %2495 = vst [vmem:[%s4963_s15 + $0x18] sm:$0xff] %v2207_v33  ;;  %v2219_v46 = vadd.f32 %v2218_v63, %v2174_v20  ;;  %v2224_v23 = vstv %s2223_s8 }
 0x2e1   :  { %2497 = vst [vmem:[%s4963_s15 + $0x20] sm:$0xff] %v2213_v16  ;;  %v2225_v9 = vadd.f32 %v2224_v23, %v2180_v41  ;;  %v2230_v26 = vstv %s2229_s7 }
 0x2e2   :  { %2499 = vst [vmem:[%s4963_s15 + $0x28] sm:$0xff] %v2219_v46  ;;  %v2231_v11 = vadd.f32 %v2230_v26, %v2186_v40 }
 0x2e3   :  { %2501 = vst [vmem:[%s4963_s15 + $0x30] sm:$0xff] %v2225_v9 }
 0x2e4   :  { %2503 = vst [vmem:[%s4963_s15 + $0x38] sm:$0xff] %v2231_v11 }
 0x2e5   :  { %2238 = vsyncpa [#allocation4], 1 }
 0x2e6   :  { %2239 = vsyncpa [#allocation6], 1 }
 0x2e7   :  { %2240 = vsyncpa [#allocation9], 1 }

</bundles_post_ra>
